<compile_context>
chip_gen: v6e
topology: v6e:2x2x1
jax: 0.10.0
libtpu: 0.0.40
codegen_flags: <defaults>
</compile_context>

<pallas_src>
import functools
import math

import jax
import jax.numpy as jnp
from jax.experimental import pallas as pl
from jax.experimental.pallas import tpu as pltpu

CFG = dict(vocab_size=64, hidden=32, layers=2, heads=2, intermediate=64,
           max_pos=16, type_vocab=2, num_text_labels=2, num_rationale_labels=2)

_VMEM = pl.BlockSpec(memory_space=pltpu.MemorySpace.VMEM)


# ---------------------------- fused Pallas kernel ----------------------------

def _fused_model_kernel(onehot_ref, tt_ref, mask_ref,
                        word_ref, pos_ref, typ_ref, embln_ref,
                        wqkv_ref, bqkv_ref, wo_ref, wi_ref, bi_ref, wo2_ref,
                        lvec_ref, ratw_ref, ratb_ref, clsw_ref, clsb_ref,
                        out_ref, *, S, L, H, NH, n_layers):
    """Both BERT encoders + rationale scoring + weighted pooling + classifier."""
    dh = H // NH
    scale = 1.0 / math.sqrt(dh)
    bf16 = jnp.bfloat16

    def layernorm(x, g, b):
        mu = jnp.mean(x, axis=-1, keepdims=True)
        xc = x - mu
        var = jnp.mean(xc * xc, axis=-1, keepdims=True)
        return xc * jax.lax.rsqrt(var + 1e-12) * g + b

    def gelu(x):
        # TODO(synk): exact erf-based BERT GELU; tanh approximation used.
        return 0.5 * x * (1.0 + jnp.tanh(
            0.7978845608028654 * (x + 0.044715 * x * x * x)))

    # Hoisted once; reused by both BERTs and all layers/heads.
    onehot = onehot_ref[...]                      # (S*L, V)   bf16 one-hot ids
    tt = tt_ref[...]                              # (S*L, 1)   f32 token types
    addmask = mask_ref[...]                       # (S*L, S*L) f32 additive mask
                                                  #   block-diag over sentences
                                                  #   + (-1e4) on PAD keys

    def encoder(b):
        # --- embeddings: one-hot @ word table (MXU) + positional + segment ---
        wemb = jnp.dot(onehot, word_ref[b],
                       preferred_element_type=jnp.float32)        # (S*L, H)
        pos = pos_ref[b, 0:L, :]                                   # (L, H)
        pos_t = jnp.concatenate([pos] * S, axis=0)                 # (S*L, H)
        t0 = typ_ref[b, 0:1, :]
        t1 = typ_ref[b, 1:2, :]
        temb = t0 + tt * (t1 - t0)                                 # (S*L, H)
        h = layernorm(wemb + pos_t + temb,
                      embln_ref[b, 0:1, :], embln_ref[b, 1:2, :])

        for li in range(n_layers):
            lvec = lvec_ref[b, li]                                 # (6, H) f32
            bo, ln1g, ln1b = lvec[0:1, :], lvec[1:2, :], lvec[2:3, :]
            bo2, ln2g, ln2b = lvec[3:4, :], lvec[4:5, :], lvec[5:6, :]

            # Fused QKV projection: one (S*L,H) x (H,3H) bf16 matmul.
            qkv = (jnp.dot(h.astype(bf16), wqkv_ref[b, li],
                           preferred_element_type=jnp.float32)
                   + bqkv_ref[b, li])                              # (S*L, 3H)

            # Attention batched over all sentences via block-diagonal mask:
            # NH score matmuls + NH PV matmuls per layer.
            ctx_heads = []
            for hh in range(NH):
                c0 = hh * dh
                q = qkv[:, c0:c0 + dh]
                k = qkv[:, H + c0:H + c0 + dh]
                v = qkv[:, 2 * H + c0:2 * H + c0 + dh]
                sc = jnp.dot(q.astype(bf16), k.T.astype(bf16),
                             preferred_element_type=jnp.float32)   # (S*L,S*L)
                sc = sc * scale + addmask
                sc = sc - jnp.max(sc, axis=-1, keepdims=True)
                p = jnp.exp(sc)
                p = p / jnp.sum(p, axis=-1, keepdims=True)         # exact div
                ctx_heads.append(
                    jnp.dot(p.astype(bf16), v.astype(bf16),
                            preferred_element_type=jnp.float32))   # (S*L, dh)
            ctx = jnp.concatenate(ctx_heads, axis=-1)              # (S*L, H)

            # Single un-folded output projection per layer.
            attn_out = (jnp.dot(ctx.astype(bf16), wo_ref[b, li],
                                preferred_element_type=jnp.float32) + bo)
            h1 = layernorm(attn_out + h, ln1g, ln1b)

            inter = gelu(jnp.dot(h1.astype(bf16), wi_ref[b, li],
                                 preferred_element_type=jnp.float32)
                         + bi_ref[b, li])
            ffn = (jnp.dot(inter.astype(bf16), wo2_ref[b, li],
                           preferred_element_type=jnp.float32) + bo2)
            h = layernorm(ffn + h1, ln2g, ln2b)
        return h

    h_rat = encoder(0)   # rationale BERT token reps  (S*L, H)
    h_seq = encoder(1)   # sequence  BERT token reps  (S*L, H)

    # --- fused classification head (token_logits_2_sent_weights + AVG pool) ---
    # softmax over the 2 rationale labels -> P(label=1) per token; PAD tokens
    # are included in the per-sentence mean, matching the PyTorch reference.
    rlog = (jnp.dot(h_rat, ratw_ref[...],
                    preferred_element_type=jnp.float32) + ratb_ref[...])
    z = jnp.clip(rlog[:, 1:2] - rlog[:, 0:1], -30.0, 30.0)
    p1 = 1.0 / (1.0 + jnp.exp(-z))                                 # (S*L, 1)

    # Weighted CLS pooling: pooled = sum_s (sum_t p1[s,t]) * cls_s / sum(p1)
    # (identical to normalizing the per-sentence means, since L is constant).
    num = None
    for s in range(S):
        w_s = jnp.sum(p1[s * L:(s + 1) * L, :], axis=0, keepdims=True)  # (1,1)
        term = w_s * h_seq[s * L:s * L + 1, :]                          # CLS row
        num = term if num is None else num + term
    pooled = num / jnp.sum(p1, axis=0, keepdims=True)              # (1, H)

    out_ref[...] = (jnp.dot(pooled, clsw_ref[...],
                            preferred_element_type=jnp.float32) + clsb_ref[...])


# ---------------------------- parameter packing ----------------------------

def pack_params(params):
    """Pack both BERTs' weights once (outside jit); bf16 for MXU operands."""
    berts = (params["rationale_bert"], params["seq_bert"])

    def stack(fn, dtype=jnp.float32):
        return jnp.stack([fn(b) for b in berts], axis=0).astype(dtype)

    return dict(
        word=stack(lambda b: b["word_emb"], jnp.bfloat16),
        pos=stack(lambda b: b["pos_emb"]),
        typ=stack(lambda b: b["type_emb"]),
        embln=stack(lambda b: jnp.stack([b["emb_ln_g"], b["emb_ln_b"]], axis=0)),
        wqkv=stack(lambda b: jnp.stack(
            [jnp.concatenate([lp["wq"], lp["wk"], lp["wv"]], axis=1)
             for lp in b["layers"]], axis=0), jnp.bfloat16),
        bqkv=stack(lambda b: jnp.stack(
            [jnp.concatenate([lp["bq"], lp["bk"], lp["bv"]], axis=0)[None, :]
             for lp in b["layers"]], axis=0)),
        wo=stack(lambda b: jnp.stack([lp["wo"] for lp in b["layers"]], axis=0),
                 jnp.bfloat16),
        wi=stack(lambda b: jnp.stack([lp["wi"] for lp in b["layers"]], axis=0),
                 jnp.bfloat16),
        bi=stack(lambda b: jnp.stack([lp["bi"][None, :] for lp in b["layers"]],
                                     axis=0)),
        wo2=stack(lambda b: jnp.stack([lp["wo2"] for lp in b["layers"]], axis=0),
                  jnp.bfloat16),
        lvec=stack(lambda b: jnp.stack(
            [jnp.stack([lp["bo"], lp["ln1_g"], lp["ln1_b"],
                        lp["bo2"], lp["ln2_g"], lp["ln2_b"]], axis=0)
             for lp in b["layers"]], axis=0)),
        ratw=params["rationale_w"].astype(jnp.float32),
        ratb=params["rationale_b"][None, :].astype(jnp.float32),
        clsw=params["cls_w"].astype(jnp.float32),
        clsb=params["cls_b"][None, :].astype(jnp.float32),
    )


# ---------------------------- full model forward ----------------------------

def two_berts_forward(packed, input_ids, token_type_ids, attention_mask, cfg):
    S, L = input_ids.shape
    H, V = cfg["hidden"], cfg["vocab_size"]
    NH, nL = cfg["heads"], cfg["layers"]
    NTL = cfg["num_text_labels"]

    # Tiny per-call input prep (one small XLA fusion feeding the kernel):
    # one-hot token ids for the in-kernel embedding matmul, token-type column,
    # and the block-diagonal additive attention mask (-1e4 on PAD keys like
    # HF BERT, -1e9 on cross-sentence keys).
    onehot = jax.nn.one_hot(input_ids.reshape(-1), V, dtype=jnp.bfloat16)
    tt_col = token_type_ids.reshape(S * L, 1).astype(jnp.float32)
    key_add = (attention_mask.reshape(1, S * L).astype(jnp.float32) - 1.0) * 10000.0
    sent = jnp.repeat(jnp.arange(S, dtype=jnp.int32), L)
    addmask = jnp.where(sent[:, None] == sent[None, :], key_add, -1.0e9)

    kernel = functools.partial(_fused_model_kernel, S=S, L=L, H=H, NH=NH,
                               n_layers=nL)
    return pl.pallas_call(
        kernel,
        out_shape=jax.ShapeDtypeStruct((1, NTL), jnp.float32),
        in_specs=[_VMEM] * 18,
        out_specs=_VMEM,
    )(onehot, tt_col, addmask,
      packed["word"], packed["pos"], packed["typ"], packed["embln"],
      packed["wqkv"], packed["bqkv"], packed["wo"], packed["wi"],
      packed["bi"], packed["wo2"], packed["lvec"],
      packed["ratw"], packed["ratb"], packed["clsw"], packed["clsb"])


# ---------------------------- deterministic param init ----------------------------

def _init_bert_params(key, cfg):
    H, I = cfg["hidden"], cfg["intermediate"]
    keys = jax.random.split(key, 3 + cfg["layers"])

    def n(k, shape):
        return jax.random.normal(k, shape, jnp.float32) * 0.02

    params = dict(
        word_emb=n(keys[0], (cfg["vocab_size"], H)),
        pos_emb=n(keys[1], (cfg["max_pos"], H)),
        type_emb=n(keys[2], (cfg["type_vocab"], H)),
        emb_ln_g=jnp.ones((H,), jnp.float32),
        emb_ln_b=jnp.zeros((H,), jnp.float32),
        layers=[],
    )
    for li in range(cfg["layers"]):
        lk = jax.random.split(keys[3 + li], 6)
        params["layers"].append(dict(
            wq=n(lk[0], (H, H)), bq=jnp.zeros((H,), jnp.float32),
            wk=n(lk[1], (H, H)), bk=jnp.zeros((H,), jnp.float32),
            wv=n(lk[2], (H, H)), bv=jnp.zeros((H,), jnp.float32),
            wo=n(lk[3], (H, H)), bo=jnp.zeros((H,), jnp.float32),
            ln1_g=jnp.ones((H,), jnp.float32), ln1_b=jnp.zeros((H,), jnp.float32),
            wi=n(lk[4], (H, I)), bi=jnp.zeros((I,), jnp.float32),
            wo2=n(lk[5], (I, H)), bo2=jnp.zeros((H,), jnp.float32),
            ln2_g=jnp.ones((H,), jnp.float32), ln2_b=jnp.zeros((H,), jnp.float32),
        ))
    return params


if __name__ == "__main__":
    cfg = CFG
    key = jax.random.PRNGKey(0)
    k_rb, k_sb, k_rc, k_cc, k_ids = jax.random.split(key, 5)
    H = cfg["hidden"]

    params = dict(
        rationale_bert=_init_bert_params(k_rb, cfg),
        seq_bert=_init_bert_params(k_sb, cfg),
        rationale_w=jax.random.normal(
            k_rc, (H, cfg["num_rationale_labels"]), jnp.float32) * 0.02,
        rationale_b=jnp.zeros((cfg["num_rationale_labels"],), jnp.float32),
        cls_w=jax.random.normal(
            k_cc, (H, cfg["num_text_labels"]), jnp.float32) * 0.02,
        cls_b=jnp.zeros((cfg["num_text_labels"],), jnp.float32),
    )
    packed = pack_params(params)   # packed once, outside the jitted forward

    S, L = 2, 8   # sent_num x sent_max_length
    input_ids = jax.random.randint(k_ids, (S, L), 0, cfg["vocab_size"],
                                   dtype=jnp.int32)
    token_type_ids = jnp.zeros((S, L), jnp.int32)
    attention_mask = jnp.ones((S, L), jnp.int32).at[1, 6:].set(0)  # some PAD tokens

    fwd = jax.jit(functools.partial(two_berts_forward, cfg=cfg))
    logits = fwd(packed, input_ids, token_type_ids, attention_mask)
    jax.block_until_ready(logits)
    assert logits.shape == (1, cfg["num_text_labels"])
    assert bool(jnp.all(jnp.isfinite(logits)))
    print("KERNEL_OK")
</pallas_src>

<mosaic_0001>
module attributes {stable_mosaic.version = 11 : i64} {
  func.func @_fused_model_kernel(%arg0: memref<16x64xbf16, #tpu.memory_space<vmem>>, %arg1: memref<16x1xf32, #tpu.memory_space<vmem>>, %arg2: memref<16x16xf32, #tpu.memory_space<vmem>>, %arg3: memref<2x64x32xbf16, #tpu.memory_space<vmem>>, %arg4: memref<2x16x32xf32, #tpu.memory_space<vmem>>, %arg5: memref<2x2x32xf32, #tpu.memory_space<vmem>>, %arg6: memref<2x2x32xf32, #tpu.memory_space<vmem>>, %arg7: memref<2x2x32x96xbf16, #tpu.memory_space<vmem>>, %arg8: memref<2x2x1x96xf32, #tpu.memory_space<vmem>>, %arg9: memref<2x2x32x32xbf16, #tpu.memory_space<vmem>>, %arg10: memref<2x2x32x64xbf16, #tpu.memory_space<vmem>>, %arg11: memref<2x2x1x64xf32, #tpu.memory_space<vmem>>, %arg12: memref<2x2x64x32xbf16, #tpu.memory_space<vmem>>, %arg13: memref<2x2x6x32xf32, #tpu.memory_space<vmem>>, %arg14: memref<32x2xf32, #tpu.memory_space<vmem>>, %arg15: memref<1x2xf32, #tpu.memory_space<vmem>>, %arg16: memref<32x2xf32, #tpu.memory_space<vmem>>, %arg17: memref<1x2xf32, #tpu.memory_space<vmem>>, %arg18: memref<1x2xf32, #tpu.memory_space<vmem>>) attributes {dimension_semantics = [], scalar_prefetch = 0 : i64, scratch_operands = 0 : i64, tpu.core_type = #tpu.core_type<tc>} {
    %c0 = arith.constant 0 : index
    %c0_0 = arith.constant 0 : index
    %0 = vector.load %arg0[%c0, %c0_0] : memref<16x64xbf16, #tpu.memory_space<vmem>>, vector<16x64xbf16>
    %c0_1 = arith.constant 0 : index
    %c0_2 = arith.constant 0 : index
    %1 = vector.load %arg1[%c0_1, %c0_2] : memref<16x1xf32, #tpu.memory_space<vmem>>, vector<16x1xf32>
    %c0_3 = arith.constant 0 : index
    %c0_4 = arith.constant 0 : index
    %2 = vector.load %arg2[%c0_3, %c0_4] : memref<16x16xf32, #tpu.memory_space<vmem>>, vector<16x16xf32>
    %c0_5 = arith.constant 0 : index
    %c0_6 = arith.constant 0 : index
    %c0_7 = arith.constant 0 : index
    %3 = vector.load %arg3[%c0_5, %c0_6, %c0_7] : memref<2x64x32xbf16, #tpu.memory_space<vmem>>, vector<1x64x32xbf16>
    %4 = vector.shape_cast %3 : vector<1x64x32xbf16> to vector<64x32xbf16>
    %cst = arith.constant dense<0.000000e+00> : vector<16x32xf32>
    %5 = tpu.matmul %0, %4, %cst {dimension_numbers = #tpu.dot_dimension_numbers<[1], [0], [0], [1], [0, 0, 1, 1], [], []>} : vector<16x64xbf16>, vector<64x32xbf16>, vector<16x32xf32> -> vector<16x32xf32>
    %c0_8 = arith.constant 0 : index
    %c0_9 = arith.constant 0 : index
    %c0_10 = arith.constant 0 : index
    %6 = vector.load %arg4[%c0_8, %c0_9, %c0_10] : memref<2x16x32xf32, #tpu.memory_space<vmem>>, vector<1x8x32xf32>
    %7 = vector.shape_cast %6 : vector<1x8x32xf32> to vector<8x32xf32>
    %8 = tpu.concatenate %7, %7 in 0 : vector<8x32xf32>, vector<8x32xf32> -> vector<16x32xf32>
    %c0_11 = arith.constant 0 : index
    %c0_12 = arith.constant 0 : index
    %c0_13 = arith.constant 0 : index
    %9 = vector.load %arg5[%c0_11, %c0_12, %c0_13] : memref<2x2x32xf32, #tpu.memory_space<vmem>>, vector<1x1x32xf32>
    %10 = vector.shape_cast %9 : vector<1x1x32xf32> to vector<1x32xf32>
    %c0_14 = arith.constant 0 : index
    %c1 = arith.constant 1 : index
    %c0_15 = arith.constant 0 : index
    %11 = vector.load %arg5[%c0_14, %c1, %c0_15] : memref<2x2x32xf32, #tpu.memory_space<vmem>>, vector<1x1x32xf32>
    %12 = vector.shape_cast %11 : vector<1x1x32xf32> to vector<1x32xf32>
    %13 = arith.subf %12, %10 : vector<1x32xf32>
    %14 = vector.broadcast %1 : vector<16x1xf32> to vector<16x32xf32>
    %15 = vector.broadcast %13 : vector<1x32xf32> to vector<16x32xf32>
    %16 = arith.mulf %14, %15 : vector<16x32xf32>
    %17 = vector.broadcast %10 : vector<1x32xf32> to vector<16x32xf32>
    %18 = arith.addf %17, %16 : vector<16x32xf32>
    %19 = arith.addf %5, %8 : vector<16x32xf32>
    %20 = arith.addf %19, %18 : vector<16x32xf32>
    %c0_16 = arith.constant 0 : index
    %c0_17 = arith.constant 0 : index
    %c0_18 = arith.constant 0 : index
    %21 = vector.load %arg6[%c0_16, %c0_17, %c0_18] : memref<2x2x32xf32, #tpu.memory_space<vmem>>, vector<1x1x32xf32>
    %22 = vector.shape_cast %21 : vector<1x1x32xf32> to vector<1x32xf32>
    %c0_19 = arith.constant 0 : index
    %c1_20 = arith.constant 1 : index
    %c0_21 = arith.constant 0 : index
    %23 = vector.load %arg6[%c0_19, %c1_20, %c0_21] : memref<2x2x32xf32, #tpu.memory_space<vmem>>, vector<1x1x32xf32>
    %24 = vector.shape_cast %23 : vector<1x1x32xf32> to vector<1x32xf32>
    %cst_22 = arith.constant dense<0.000000e+00> : vector<16xf32>
    %25 = vector.multi_reduction <add>, %20, %cst_22 [1] : vector<16x32xf32> to vector<16xf32>
    %26 = vector.shape_cast %25 : vector<16xf32> to vector<16x1xf32>
    %cst_23 = arith.constant 3.200000e+01 : f32
    %27 = vector.broadcast %cst_23 : f32 to vector<16x1xf32>
    %28 = arith.divf %26, %27 : vector<16x1xf32>
    %29 = vector.broadcast %28 : vector<16x1xf32> to vector<16x32xf32>
    %30 = arith.subf %20, %29 : vector<16x32xf32>
    %31 = arith.mulf %30, %30 : vector<16x32xf32>
    %cst_24 = arith.constant dense<0.000000e+00> : vector<16xf32>
    %32 = vector.multi_reduction <add>, %31, %cst_24 [1] : vector<16x32xf32> to vector<16xf32>
    %33 = vector.shape_cast %32 : vector<16xf32> to vector<16x1xf32>
    %cst_25 = arith.constant 3.200000e+01 : f32
    %34 = vector.broadcast %cst_25 : f32 to vector<16x1xf32>
    %35 = arith.divf %33, %34 : vector<16x1xf32>
    %cst_26 = arith.constant 9.99999996E-13 : f32
    %36 = vector.broadcast %cst_26 : f32 to vector<16x1xf32>
    %37 = arith.addf %35, %36 : vector<16x1xf32>
    %38 = math.rsqrt %37 : vector<16x1xf32>
    %39 = vector.broadcast %38 : vector<16x1xf32> to vector<16x32xf32>
    %40 = arith.mulf %30, %39 : vector<16x32xf32>
    %41 = vector.broadcast %22 : vector<1x32xf32> to vector<16x32xf32>
    %42 = arith.mulf %40, %41 : vector<16x32xf32>
    %43 = vector.broadcast %24 : vector<1x32xf32> to vector<16x32xf32>
    %44 = arith.addf %42, %43 : vector<16x32xf32>
    %c0_27 = arith.constant 0 : index
    %c0_28 = arith.constant 0 : index
    %c0_29 = arith.constant 0 : index
    %c0_30 = arith.constant 0 : index
    %45 = vector.load %arg13[%c0_27, %c0_28, %c0_29, %c0_30] : memref<2x2x6x32xf32, #tpu.memory_space<vmem>>, vector<1x1x6x32xf32>
    %46 = vector.shape_cast %45 : vector<1x1x6x32xf32> to vector<6x32xf32>
    %47 = vector.extract_strided_slice %46 {offsets = [0, 0], sizes = [1, 32], strides = [1, 1]} : vector<6x32xf32> to vector<1x32xf32>
    %48 = vector.extract_strided_slice %46 {offsets = [1, 0], sizes = [1, 32], strides = [1, 1]} : vector<6x32xf32> to vector<1x32xf32>
    %49 = vector.extract_strided_slice %46 {offsets = [2, 0], sizes = [1, 32], strides = [1, 1]} : vector<6x32xf32> to vector<1x32xf32>
    %50 = vector.extract_strided_slice %46 {offsets = [3, 0], sizes = [1, 32], strides = [1, 1]} : vector<6x32xf32> to vector<1x32xf32>
    %51 = vector.extract_strided_slice %46 {offsets = [4, 0], sizes = [1, 32], strides = [1, 1]} : vector<6x32xf32> to vector<1x32xf32>
    %52 = vector.extract_strided_slice %46 {offsets = [5, 0], sizes = [1, 32], strides = [1, 1]} : vector<6x32xf32> to vector<1x32xf32>
    %53 = arith.truncf %44 : vector<16x32xf32> to vector<16x32xbf16>
    %c0_31 = arith.constant 0 : index
    %c0_32 = arith.constant 0 : index
    %c0_33 = arith.constant 0 : index
    %c0_34 = arith.constant 0 : index
    %54 = vector.load %arg7[%c0_31, %c0_32, %c0_33, %c0_34] : memref<2x2x32x96xbf16, #tpu.memory_space<vmem>>, vector<1x1x32x96xbf16>
    %55 = vector.shape_cast %54 : vector<1x1x32x96xbf16> to vector<32x96xbf16>
    %cst_35 = arith.constant dense<0.000000e+00> : vector<16x96xf32>
    %56 = tpu.matmul %53, %55, %cst_35 {dimension_numbers = #tpu.dot_dimension_numbers<[1], [0], [0], [1], [0, 0, 1, 1], [], []>} : vector<16x32xbf16>, vector<32x96xbf16>, vector<16x96xf32> -> vector<16x96xf32>
    %c0_36 = arith.constant 0 : index
    %c0_37 = arith.constant 0 : index
    %c0_38 = arith.constant 0 : index
    %c0_39 = arith.constant 0 : index
    %57 = vector.load %arg8[%c0_36, %c0_37, %c0_38, %c0_39] : memref<2x2x1x96xf32, #tpu.memory_space<vmem>>, vector<1x1x1x96xf32>
    %58 = vector.shape_cast %57 : vector<1x1x1x96xf32> to vector<1x96xf32>
    %59 = vector.broadcast %58 : vector<1x96xf32> to vector<16x96xf32>
    %60 = arith.addf %56, %59 : vector<16x96xf32>
    %61 = vector.extract_strided_slice %60 {offsets = [0, 0], sizes = [16, 16], strides = [1, 1]} : vector<16x96xf32> to vector<16x16xf32>
    %62 = vector.extract_strided_slice %60 {offsets = [0, 32], sizes = [16, 16], strides = [1, 1]} : vector<16x96xf32> to vector<16x16xf32>
    %63 = vector.extract_strided_slice %60 {offsets = [0, 64], sizes = [16, 16], strides = [1, 1]} : vector<16x96xf32> to vector<16x16xf32>
    %64 = arith.truncf %61 : vector<16x16xf32> to vector<16x16xbf16>
    %65 = tpu.transpose %62, [1, 0] : vector<16x16xf32> -> vector<16x16xf32>
    %66 = arith.truncf %65 : vector<16x16xf32> to vector<16x16xbf16>
    %cst_40 = arith.constant dense<0.000000e+00> : vector<16x16xf32>
    %67 = tpu.matmul %64, %66, %cst_40 {dimension_numbers = #tpu.dot_dimension_numbers<[1], [0], [0], [1], [0, 0, 1, 1], [], []>} : vector<16x16xbf16>, vector<16x16xbf16>, vector<16x16xf32> -> vector<16x16xf32>
    %cst_41 = arith.constant 2.500000e-01 : f32
    %68 = vector.broadcast %cst_41 : f32 to vector<16x16xf32>
    %69 = arith.mulf %67, %68 : vector<16x16xf32>
    %70 = arith.addf %69, %2 : vector<16x16xf32>
    %cst_42 = arith.constant dense<0xFF800000> : vector<16xf32>
    %71 = vector.multi_reduction <maximumf>, %70, %cst_42 [1] : vector<16x16xf32> to vector<16xf32>
    %72 = vector.shape_cast %71 : vector<16xf32> to vector<16x1xf32>
    %73 = vector.broadcast %72 : vector<16x1xf32> to vector<16x16xf32>
    %74 = arith.subf %70, %73 : vector<16x16xf32>
    %75 = math.exp %74 : vector<16x16xf32>
    %cst_43 = arith.constant dense<0.000000e+00> : vector<16xf32>
    %76 = vector.multi_reduction <add>, %75, %cst_43 [1] : vector<16x16xf32> to vector<16xf32>
    %77 = vector.shape_cast %76 : vector<16xf32> to vector<16x1xf32>
    %78 = vector.broadcast %77 : vector<16x1xf32> to vector<16x16xf32>
    %79 = arith.divf %75, %78 : vector<16x16xf32>
    %80 = arith.truncf %79 : vector<16x16xf32> to vector<16x16xbf16>
    %81 = arith.truncf %63 : vector<16x16xf32> to vector<16x16xbf16>
    %cst_44 = arith.constant dense<0.000000e+00> : vector<16x16xf32>
    %82 = tpu.matmul %80, %81, %cst_44 {dimension_numbers = #tpu.dot_dimension_numbers<[1], [0], [0], [1], [0, 0, 1, 1], [], []>} : vector<16x16xbf16>, vector<16x16xbf16>, vector<16x16xf32> -> vector<16x16xf32>
    %83 = vector.extract_strided_slice %60 {offsets = [0, 16], sizes = [16, 16], strides = [1, 1]} : vector<16x96xf32> to vector<16x16xf32>
    %84 = vector.extract_strided_slice %60 {offsets = [0, 48], sizes = [16, 16], strides = [1, 1]} : vector<16x96xf32> to vector<16x16xf32>
    %85 = vector.extract_strided_slice %60 {offsets = [0, 80], sizes = [16, 16], strides = [1, 1]} : vector<16x96xf32> to vector<16x16xf32>
    %86 = arith.truncf %83 : vector<16x16xf32> to vector<16x16xbf16>
    %87 = tpu.transpose %84, [1, 0] : vector<16x16xf32> -> vector<16x16xf32>
    %88 = arith.truncf %87 : vector<16x16xf32> to vector<16x16xbf16>
    %cst_45 = arith.constant dense<0.000000e+00> : vector<16x16xf32>
    %89 = tpu.matmul %86, %88, %cst_45 {dimension_numbers = #tpu.dot_dimension_numbers<[1], [0], [0], [1], [0, 0, 1, 1], [], []>} : vector<16x16xbf16>, vector<16x16xbf16>, vector<16x16xf32> -> vector<16x16xf32>
    %cst_46 = arith.constant 2.500000e-01 : f32
    %90 = vector.broadcast %cst_46 : f32 to vector<16x16xf32>
    %91 = arith.mulf %89, %90 : vector<16x16xf32>
    %92 = arith.addf %91, %2 : vector<16x16xf32>
    %cst_47 = arith.constant dense<0xFF800000> : vector<16xf32>
    %93 = vector.multi_reduction <maximumf>, %92, %cst_47 [1] : vector<16x16xf32> to vector<16xf32>
    %94 = vector.shape_cast %93 : vector<16xf32> to vector<16x1xf32>
    %95 = vector.broadcast %94 : vector<16x1xf32> to vector<16x16xf32>
    %96 = arith.subf %92, %95 : vector<16x16xf32>
    %97 = math.exp %96 : vector<16x16xf32>
    %cst_48 = arith.constant dense<0.000000e+00> : vector<16xf32>
    %98 = vector.multi_reduction <add>, %97, %cst_48 [1] : vector<16x16xf32> to vector<16xf32>
    %99 = vector.shape_cast %98 : vector<16xf32> to vector<16x1xf32>
    %100 = vector.broadcast %99 : vector<16x1xf32> to vector<16x16xf32>
    %101 = arith.divf %97, %100 : vector<16x16xf32>
    %102 = arith.truncf %101 : vector<16x16xf32> to vector<16x16xbf16>
    %103 = arith.truncf %85 : vector<16x16xf32> to vector<16x16xbf16>
    %cst_49 = arith.constant dense<0.000000e+00> : vector<16x16xf32>
    %104 = tpu.matmul %102, %103, %cst_49 {dimension_numbers = #tpu.dot_dimension_numbers<[1], [0], [0], [1], [0, 0, 1, 1], [], []>} : vector<16x16xbf16>, vector<16x16xbf16>, vector<16x16xf32> -> vector<16x16xf32>
    %105 = tpu.concatenate %82, %104 in 1 : vector<16x16xf32>, vector<16x16xf32> -> vector<16x32xf32>
    %106 = arith.truncf %105 : vector<16x32xf32> to vector<16x32xbf16>
    %c0_50 = arith.constant 0 : index
    %c0_51 = arith.constant 0 : index
    %c0_52 = arith.constant 0 : index
    %c0_53 = arith.constant 0 : index
    %107 = vector.load %arg9[%c0_50, %c0_51, %c0_52, %c0_53] : memref<2x2x32x32xbf16, #tpu.memory_space<vmem>>, vector<1x1x32x32xbf16>
    %108 = vector.shape_cast %107 : vector<1x1x32x32xbf16> to vector<32x32xbf16>
    %cst_54 = arith.constant dense<0.000000e+00> : vector<16x32xf32>
    %109 = tpu.matmul %106, %108, %cst_54 {dimension_numbers = #tpu.dot_dimension_numbers<[1], [0], [0], [1], [0, 0, 1, 1], [], []>} : vector<16x32xbf16>, vector<32x32xbf16>, vector<16x32xf32> -> vector<16x32xf32>
    %110 = vector.broadcast %47 : vector<1x32xf32> to vector<16x32xf32>
    %111 = arith.addf %109, %110 : vector<16x32xf32>
    %112 = arith.addf %111, %44 : vector<16x32xf32>
    %cst_55 = arith.constant dense<0.000000e+00> : vector<16xf32>
    %113 = vector.multi_reduction <add>, %112, %cst_55 [1] : vector<16x32xf32> to vector<16xf32>
    %114 = vector.shape_cast %113 : vector<16xf32> to vector<16x1xf32>
    %cst_56 = arith.constant 3.200000e+01 : f32
    %115 = vector.broadcast %cst_56 : f32 to vector<16x1xf32>
    %116 = arith.divf %114, %115 : vector<16x1xf32>
    %117 = vector.broadcast %116 : vector<16x1xf32> to vector<16x32xf32>
    %118 = arith.subf %112, %117 : vector<16x32xf32>
    %119 = arith.mulf %118, %118 : vector<16x32xf32>
    %cst_57 = arith.constant dense<0.000000e+00> : vector<16xf32>
    %120 = vector.multi_reduction <add>, %119, %cst_57 [1] : vector<16x32xf32> to vector<16xf32>
    %121 = vector.shape_cast %120 : vector<16xf32> to vector<16x1xf32>
    %cst_58 = arith.constant 3.200000e+01 : f32
    %122 = vector.broadcast %cst_58 : f32 to vector<16x1xf32>
    %123 = arith.divf %121, %122 : vector<16x1xf32>
    %cst_59 = arith.constant 9.99999996E-13 : f32
    %124 = vector.broadcast %cst_59 : f32 to vector<16x1xf32>
    %125 = arith.addf %123, %124 : vector<16x1xf32>
    %126 = math.rsqrt %125 : vector<16x1xf32>
    %127 = vector.broadcast %126 : vector<16x1xf32> to vector<16x32xf32>
    %128 = arith.mulf %118, %127 : vector<16x32xf32>
    %129 = vector.broadcast %48 : vector<1x32xf32> to vector<16x32xf32>
    %130 = arith.mulf %128, %129 : vector<16x32xf32>
    %131 = vector.broadcast %49 : vector<1x32xf32> to vector<16x32xf32>
    %132 = arith.addf %130, %131 : vector<16x32xf32>
    %133 = arith.truncf %132 : vector<16x32xf32> to vector<16x32xbf16>
    %c0_60 = arith.constant 0 : index
    %c0_61 = arith.constant 0 : index
    %c0_62 = arith.constant 0 : index
    %c0_63 = arith.constant 0 : index
    %134 = vector.load %arg10[%c0_60, %c0_61, %c0_62, %c0_63] : memref<2x2x32x64xbf16, #tpu.memory_space<vmem>>, vector<1x1x32x64xbf16>
    %135 = vector.shape_cast %134 : vector<1x1x32x64xbf16> to vector<32x64xbf16>
    %cst_64 = arith.constant dense<0.000000e+00> : vector<16x64xf32>
    %136 = tpu.matmul %133, %135, %cst_64 {dimension_numbers = #tpu.dot_dimension_numbers<[1], [0], [0], [1], [0, 0, 1, 1], [], []>} : vector<16x32xbf16>, vector<32x64xbf16>, vector<16x64xf32> -> vector<16x64xf32>
    %c0_65 = arith.constant 0 : index
    %c0_66 = arith.constant 0 : index
    %c0_67 = arith.constant 0 : index
    %c0_68 = arith.constant 0 : index
    %137 = vector.load %arg11[%c0_65, %c0_66, %c0_67, %c0_68] : memref<2x2x1x64xf32, #tpu.memory_space<vmem>>, vector<1x1x1x64xf32>
    %138 = vector.shape_cast %137 : vector<1x1x1x64xf32> to vector<1x64xf32>
    %139 = vector.broadcast %138 : vector<1x64xf32> to vector<16x64xf32>
    %140 = arith.addf %136, %139 : vector<16x64xf32>
    %cst_69 = arith.constant 5.000000e-01 : f32
    %141 = vector.broadcast %cst_69 : f32 to vector<16x64xf32>
    %142 = arith.mulf %141, %140 : vector<16x64xf32>
    %cst_70 = arith.constant 4.471500e-02 : f32
    %143 = vector.broadcast %cst_70 : f32 to vector<16x64xf32>
    %144 = arith.mulf %143, %140 : vector<16x64xf32>
    %145 = arith.mulf %144, %140 : vector<16x64xf32>
    %146 = arith.mulf %145, %140 : vector<16x64xf32>
    %147 = arith.addf %140, %146 : vector<16x64xf32>
    %cst_71 = arith.constant 0.797884583 : f32
    %148 = vector.broadcast %cst_71 : f32 to vector<16x64xf32>
    %149 = arith.mulf %148, %147 : vector<16x64xf32>
    %150 = math.tanh %149 : vector<16x64xf32>
    %cst_72 = arith.constant 1.000000e+00 : f32
    %151 = vector.broadcast %cst_72 : f32 to vector<16x64xf32>
    %152 = arith.addf %151, %150 : vector<16x64xf32>
    %153 = arith.mulf %142, %152 : vector<16x64xf32>
    %154 = arith.truncf %153 : vector<16x64xf32> to vector<16x64xbf16>
    %c0_73 = arith.constant 0 : index
    %c0_74 = arith.constant 0 : index
    %c0_75 = arith.constant 0 : index
    %c0_76 = arith.constant 0 : index
    %155 = vector.load %arg12[%c0_73, %c0_74, %c0_75, %c0_76] : memref<2x2x64x32xbf16, #tpu.memory_space<vmem>>, vector<1x1x64x32xbf16>
    %156 = vector.shape_cast %155 : vector<1x1x64x32xbf16> to vector<64x32xbf16>
    %cst_77 = arith.constant dense<0.000000e+00> : vector<16x32xf32>
    %157 = tpu.matmul %154, %156, %cst_77 {dimension_numbers = #tpu.dot_dimension_numbers<[1], [0], [0], [1], [0, 0, 1, 1], [], []>} : vector<16x64xbf16>, vector<64x32xbf16>, vector<16x32xf32> -> vector<16x32xf32>
    %158 = vector.broadcast %50 : vector<1x32xf32> to vector<16x32xf32>
    %159 = arith.addf %157, %158 : vector<16x32xf32>
    %160 = arith.addf %159, %132 : vector<16x32xf32>
    %cst_78 = arith.constant dense<0.000000e+00> : vector<16xf32>
    %161 = vector.multi_reduction <add>, %160, %cst_78 [1] : vector<16x32xf32> to vector<16xf32>
    %162 = vector.shape_cast %161 : vector<16xf32> to vector<16x1xf32>
    %cst_79 = arith.constant 3.200000e+01 : f32
    %163 = vector.broadcast %cst_79 : f32 to vector<16x1xf32>
    %164 = arith.divf %162, %163 : vector<16x1xf32>
    %165 = vector.broadcast %164 : vector<16x1xf32> to vector<16x32xf32>
    %166 = arith.subf %160, %165 : vector<16x32xf32>
    %167 = arith.mulf %166, %166 : vector<16x32xf32>
    %cst_80 = arith.constant dense<0.000000e+00> : vector<16xf32>
    %168 = vector.multi_reduction <add>, %167, %cst_80 [1] : vector<16x32xf32> to vector<16xf32>
    %169 = vector.shape_cast %168 : vector<16xf32> to vector<16x1xf32>
    %cst_81 = arith.constant 3.200000e+01 : f32
    %170 = vector.broadcast %cst_81 : f32 to vector<16x1xf32>
    %171 = arith.divf %169, %170 : vector<16x1xf32>
    %cst_82 = arith.constant 9.99999996E-13 : f32
    %172 = vector.broadcast %cst_82 : f32 to vector<16x1xf32>
    %173 = arith.addf %171, %172 : vector<16x1xf32>
    %174 = math.rsqrt %173 : vector<16x1xf32>
    %175 = vector.broadcast %174 : vector<16x1xf32> to vector<16x32xf32>
    %176 = arith.mulf %166, %175 : vector<16x32xf32>
    %177 = vector.broadcast %51 : vector<1x32xf32> to vector<16x32xf32>
    %178 = arith.mulf %176, %177 : vector<16x32xf32>
    %179 = vector.broadcast %52 : vector<1x32xf32> to vector<16x32xf32>
    %180 = arith.addf %178, %179 : vector<16x32xf32>
    %c0_83 = arith.constant 0 : index
    %c1_84 = arith.constant 1 : index
    %c0_85 = arith.constant 0 : index
    %c0_86 = arith.constant 0 : index
    %181 = vector.load %arg13[%c0_83, %c1_84, %c0_85, %c0_86] : memref<2x2x6x32xf32, #tpu.memory_space<vmem>>, vector<1x1x6x32xf32>
    %182 = vector.shape_cast %181 : vector<1x1x6x32xf32> to vector<6x32xf32>
    %183 = vector.extract_strided_slice %182 {offsets = [0, 0], sizes = [1, 32], strides = [1, 1]} : vector<6x32xf32> to vector<1x32xf32>
    %184 = vector.extract_strided_slice %182 {offsets = [1, 0], sizes = [1, 32], strides = [1, 1]} : vector<6x32xf32> to vector<1x32xf32>
    %185 = vector.extract_strided_slice %182 {offsets = [2, 0], sizes = [1, 32], strides = [1, 1]} : vector<6x32xf32> to vector<1x32xf32>
    %186 = vector.extract_strided_slice %182 {offsets = [3, 0], sizes = [1, 32], strides = [1, 1]} : vector<6x32xf32> to vector<1x32xf32>
    %187 = vector.extract_strided_slice %182 {offsets = [4, 0], sizes = [1, 32], strides = [1, 1]} : vector<6x32xf32> to vector<1x32xf32>
    %188 = vector.extract_strided_slice %182 {offsets = [5, 0], sizes = [1, 32], strides = [1, 1]} : vector<6x32xf32> to vector<1x32xf32>
    %189 = arith.truncf %180 : vector<16x32xf32> to vector<16x32xbf16>
    %c0_87 = arith.constant 0 : index
    %c1_88 = arith.constant 1 : index
    %c0_89 = arith.constant 0 : index
    %c0_90 = arith.constant 0 : index
    %190 = vector.load %arg7[%c0_87, %c1_88, %c0_89, %c0_90] : memref<2x2x32x96xbf16, #tpu.memory_space<vmem>>, vector<1x1x32x96xbf16>
    %191 = vector.shape_cast %190 : vector<1x1x32x96xbf16> to vector<32x96xbf16>
    %cst_91 = arith.constant dense<0.000000e+00> : vector<16x96xf32>
    %192 = tpu.matmul %189, %191, %cst_91 {dimension_numbers = #tpu.dot_dimension_numbers<[1], [0], [0], [1], [0, 0, 1, 1], [], []>} : vector<16x32xbf16>, vector<32x96xbf16>, vector<16x96xf32> -> vector<16x96xf32>
    %c0_92 = arith.constant 0 : index
    %c1_93 = arith.constant 1 : index
    %c0_94 = arith.constant 0 : index
    %c0_95 = arith.constant 0 : index
    %193 = vector.load %arg8[%c0_92, %c1_93, %c0_94, %c0_95] : memref<2x2x1x96xf32, #tpu.memory_space<vmem>>, vector<1x1x1x96xf32>
    %194 = vector.shape_cast %193 : vector<1x1x1x96xf32> to vector<1x96xf32>
    %195 = vector.broadcast %194 : vector<1x96xf32> to vector<16x96xf32>
    %196 = arith.addf %192, %195 : vector<16x96xf32>
    %197 = vector.extract_strided_slice %196 {offsets = [0, 0], sizes = [16, 16], strides = [1, 1]} : vector<16x96xf32> to vector<16x16xf32>
    %198 = vector.extract_strided_slice %196 {offsets = [0, 32], sizes = [16, 16], strides = [1, 1]} : vector<16x96xf32> to vector<16x16xf32>
    %199 = vector.extract_strided_slice %196 {offsets = [0, 64], sizes = [16, 16], strides = [1, 1]} : vector<16x96xf32> to vector<16x16xf32>
    %200 = arith.truncf %197 : vector<16x16xf32> to vector<16x16xbf16>
    %201 = tpu.transpose %198, [1, 0] : vector<16x16xf32> -> vector<16x16xf32>
    %202 = arith.truncf %201 : vector<16x16xf32> to vector<16x16xbf16>
    %cst_96 = arith.constant dense<0.000000e+00> : vector<16x16xf32>
    %203 = tpu.matmul %200, %202, %cst_96 {dimension_numbers = #tpu.dot_dimension_numbers<[1], [0], [0], [1], [0, 0, 1, 1], [], []>} : vector<16x16xbf16>, vector<16x16xbf16>, vector<16x16xf32> -> vector<16x16xf32>
    %cst_97 = arith.constant 2.500000e-01 : f32
    %204 = vector.broadcast %cst_97 : f32 to vector<16x16xf32>
    %205 = arith.mulf %203, %204 : vector<16x16xf32>
    %206 = arith.addf %205, %2 : vector<16x16xf32>
    %cst_98 = arith.constant dense<0xFF800000> : vector<16xf32>
    %207 = vector.multi_reduction <maximumf>, %206, %cst_98 [1] : vector<16x16xf32> to vector<16xf32>
    %208 = vector.shape_cast %207 : vector<16xf32> to vector<16x1xf32>
    %209 = vector.broadcast %208 : vector<16x1xf32> to vector<16x16xf32>
    %210 = arith.subf %206, %209 : vector<16x16xf32>
    %211 = math.exp %210 : vector<16x16xf32>
    %cst_99 = arith.constant dense<0.000000e+00> : vector<16xf32>
    %212 = vector.multi_reduction <add>, %211, %cst_99 [1] : vector<16x16xf32> to vector<16xf32>
    %213 = vector.shape_cast %212 : vector<16xf32> to vector<16x1xf32>
    %214 = vector.broadcast %213 : vector<16x1xf32> to vector<16x16xf32>
    %215 = arith.divf %211, %214 : vector<16x16xf32>
    %216 = arith.truncf %215 : vector<16x16xf32> to vector<16x16xbf16>
    %217 = arith.truncf %199 : vector<16x16xf32> to vector<16x16xbf16>
    %cst_100 = arith.constant dense<0.000000e+00> : vector<16x16xf32>
    %218 = tpu.matmul %216, %217, %cst_100 {dimension_numbers = #tpu.dot_dimension_numbers<[1], [0], [0], [1], [0, 0, 1, 1], [], []>} : vector<16x16xbf16>, vector<16x16xbf16>, vector<16x16xf32> -> vector<16x16xf32>
    %219 = vector.extract_strided_slice %196 {offsets = [0, 16], sizes = [16, 16], strides = [1, 1]} : vector<16x96xf32> to vector<16x16xf32>
    %220 = vector.extract_strided_slice %196 {offsets = [0, 48], sizes = [16, 16], strides = [1, 1]} : vector<16x96xf32> to vector<16x16xf32>
    %221 = vector.extract_strided_slice %196 {offsets = [0, 80], sizes = [16, 16], strides = [1, 1]} : vector<16x96xf32> to vector<16x16xf32>
    %222 = arith.truncf %219 : vector<16x16xf32> to vector<16x16xbf16>
    %223 = tpu.transpose %220, [1, 0] : vector<16x16xf32> -> vector<16x16xf32>
    %224 = arith.truncf %223 : vector<16x16xf32> to vector<16x16xbf16>
    %cst_101 = arith.constant dense<0.000000e+00> : vector<16x16xf32>
    %225 = tpu.matmul %222, %224, %cst_101 {dimension_numbers = #tpu.dot_dimension_numbers<[1], [0], [0], [1], [0, 0, 1, 1], [], []>} : vector<16x16xbf16>, vector<16x16xbf16>, vector<16x16xf32> -> vector<16x16xf32>
    %cst_102 = arith.constant 2.500000e-01 : f32
    %226 = vector.broadcast %cst_102 : f32 to vector<16x16xf32>
    %227 = arith.mulf %225, %226 : vector<16x16xf32>
    %228 = arith.addf %227, %2 : vector<16x16xf32>
    %cst_103 = arith.constant dense<0xFF800000> : vector<16xf32>
    %229 = vector.multi_reduction <maximumf>, %228, %cst_103 [1] : vector<16x16xf32> to vector<16xf32>
    %230 = vector.shape_cast %229 : vector<16xf32> to vector<16x1xf32>
    %231 = vector.broadcast %230 : vector<16x1xf32> to vector<16x16xf32>
    %232 = arith.subf %228, %231 : vector<16x16xf32>
    %233 = math.exp %232 : vector<16x16xf32>
    %cst_104 = arith.constant dense<0.000000e+00> : vector<16xf32>
    %234 = vector.multi_reduction <add>, %233, %cst_104 [1] : vector<16x16xf32> to vector<16xf32>
    %235 = vector.shape_cast %234 : vector<16xf32> to vector<16x1xf32>
    %236 = vector.broadcast %235 : vector<16x1xf32> to vector<16x16xf32>
    %237 = arith.divf %233, %236 : vector<16x16xf32>
    %238 = arith.truncf %237 : vector<16x16xf32> to vector<16x16xbf16>
    %239 = arith.truncf %221 : vector<16x16xf32> to vector<16x16xbf16>
    %cst_105 = arith.constant dense<0.000000e+00> : vector<16x16xf32>
    %240 = tpu.matmul %238, %239, %cst_105 {dimension_numbers = #tpu.dot_dimension_numbers<[1], [0], [0], [1], [0, 0, 1, 1], [], []>} : vector<16x16xbf16>, vector<16x16xbf16>, vector<16x16xf32> -> vector<16x16xf32>
    %241 = tpu.concatenate %218, %240 in 1 : vector<16x16xf32>, vector<16x16xf32> -> vector<16x32xf32>
    %242 = arith.truncf %241 : vector<16x32xf32> to vector<16x32xbf16>
    %c0_106 = arith.constant 0 : index
    %c1_107 = arith.constant 1 : index
    %c0_108 = arith.constant 0 : index
    %c0_109 = arith.constant 0 : index
    %243 = vector.load %arg9[%c0_106, %c1_107, %c0_108, %c0_109] : memref<2x2x32x32xbf16, #tpu.memory_space<vmem>>, vector<1x1x32x32xbf16>
    %244 = vector.shape_cast %243 : vector<1x1x32x32xbf16> to vector<32x32xbf16>
    %cst_110 = arith.constant dense<0.000000e+00> : vector<16x32xf32>
    %245 = tpu.matmul %242, %244, %cst_110 {dimension_numbers = #tpu.dot_dimension_numbers<[1], [0], [0], [1], [0, 0, 1, 1], [], []>} : vector<16x32xbf16>, vector<32x32xbf16>, vector<16x32xf32> -> vector<16x32xf32>
    %246 = vector.broadcast %183 : vector<1x32xf32> to vector<16x32xf32>
    %247 = arith.addf %245, %246 : vector<16x32xf32>
    %248 = arith.addf %247, %180 : vector<16x32xf32>
    %cst_111 = arith.constant dense<0.000000e+00> : vector<16xf32>
    %249 = vector.multi_reduction <add>, %248, %cst_111 [1] : vector<16x32xf32> to vector<16xf32>
    %250 = vector.shape_cast %249 : vector<16xf32> to vector<16x1xf32>
    %cst_112 = arith.constant 3.200000e+01 : f32
    %251 = vector.broadcast %cst_112 : f32 to vector<16x1xf32>
    %252 = arith.divf %250, %251 : vector<16x1xf32>
    %253 = vector.broadcast %252 : vector<16x1xf32> to vector<16x32xf32>
    %254 = arith.subf %248, %253 : vector<16x32xf32>
    %255 = arith.mulf %254, %254 : vector<16x32xf32>
    %cst_113 = arith.constant dense<0.000000e+00> : vector<16xf32>
    %256 = vector.multi_reduction <add>, %255, %cst_113 [1] : vector<16x32xf32> to vector<16xf32>
    %257 = vector.shape_cast %256 : vector<16xf32> to vector<16x1xf32>
    %cst_114 = arith.constant 3.200000e+01 : f32
    %258 = vector.broadcast %cst_114 : f32 to vector<16x1xf32>
    %259 = arith.divf %257, %258 : vector<16x1xf32>
    %cst_115 = arith.constant 9.99999996E-13 : f32
    %260 = vector.broadcast %cst_115 : f32 to vector<16x1xf32>
    %261 = arith.addf %259, %260 : vector<16x1xf32>
    %262 = math.rsqrt %261 : vector<16x1xf32>
    %263 = vector.broadcast %262 : vector<16x1xf32> to vector<16x32xf32>
    %264 = arith.mulf %254, %263 : vector<16x32xf32>
    %265 = vector.broadcast %184 : vector<1x32xf32> to vector<16x32xf32>
    %266 = arith.mulf %264, %265 : vector<16x32xf32>
    %267 = vector.broadcast %185 : vector<1x32xf32> to vector<16x32xf32>
    %268 = arith.addf %266, %267 : vector<16x32xf32>
    %269 = arith.truncf %268 : vector<16x32xf32> to vector<16x32xbf16>
    %c0_116 = arith.constant 0 : index
    %c1_117 = arith.constant 1 : index
    %c0_118 = arith.constant 0 : index
    %c0_119 = arith.constant 0 : index
    %270 = vector.load %arg10[%c0_116, %c1_117, %c0_118, %c0_119] : memref<2x2x32x64xbf16, #tpu.memory_space<vmem>>, vector<1x1x32x64xbf16>
    %271 = vector.shape_cast %270 : vector<1x1x32x64xbf16> to vector<32x64xbf16>
    %cst_120 = arith.constant dense<0.000000e+00> : vector<16x64xf32>
    %272 = tpu.matmul %269, %271, %cst_120 {dimension_numbers = #tpu.dot_dimension_numbers<[1], [0], [0], [1], [0, 0, 1, 1], [], []>} : vector<16x32xbf16>, vector<32x64xbf16>, vector<16x64xf32> -> vector<16x64xf32>
    %c0_121 = arith.constant 0 : index
    %c1_122 = arith.constant 1 : index
    %c0_123 = arith.constant 0 : index
    %c0_124 = arith.constant 0 : index
    %273 = vector.load %arg11[%c0_121, %c1_122, %c0_123, %c0_124] : memref<2x2x1x64xf32, #tpu.memory_space<vmem>>, vector<1x1x1x64xf32>
    %274 = vector.shape_cast %273 : vector<1x1x1x64xf32> to vector<1x64xf32>
    %275 = vector.broadcast %274 : vector<1x64xf32> to vector<16x64xf32>
    %276 = arith.addf %272, %275 : vector<16x64xf32>
    %cst_125 = arith.constant 5.000000e-01 : f32
    %277 = vector.broadcast %cst_125 : f32 to vector<16x64xf32>
    %278 = arith.mulf %277, %276 : vector<16x64xf32>
    %cst_126 = arith.constant 4.471500e-02 : f32
    %279 = vector.broadcast %cst_126 : f32 to vector<16x64xf32>
    %280 = arith.mulf %279, %276 : vector<16x64xf32>
    %281 = arith.mulf %280, %276 : vector<16x64xf32>
    %282 = arith.mulf %281, %276 : vector<16x64xf32>
    %283 = arith.addf %276, %282 : vector<16x64xf32>
    %cst_127 = arith.constant 0.797884583 : f32
    %284 = vector.broadcast %cst_127 : f32 to vector<16x64xf32>
    %285 = arith.mulf %284, %283 : vector<16x64xf32>
    %286 = math.tanh %285 : vector<16x64xf32>
    %cst_128 = arith.constant 1.000000e+00 : f32
    %287 = vector.broadcast %cst_128 : f32 to vector<16x64xf32>
    %288 = arith.addf %287, %286 : vector<16x64xf32>
    %289 = arith.mulf %278, %288 : vector<16x64xf32>
    %290 = arith.truncf %289 : vector<16x64xf32> to vector<16x64xbf16>
    %c0_129 = arith.constant 0 : index
    %c1_130 = arith.constant 1 : index
    %c0_131 = arith.constant 0 : index
    %c0_132 = arith.constant 0 : index
    %291 = vector.load %arg12[%c0_129, %c1_130, %c0_131, %c0_132] : memref<2x2x64x32xbf16, #tpu.memory_space<vmem>>, vector<1x1x64x32xbf16>
    %292 = vector.shape_cast %291 : vector<1x1x64x32xbf16> to vector<64x32xbf16>
    %cst_133 = arith.constant dense<0.000000e+00> : vector<16x32xf32>
    %293 = tpu.matmul %290, %292, %cst_133 {dimension_numbers = #tpu.dot_dimension_numbers<[1], [0], [0], [1], [0, 0, 1, 1], [], []>} : vector<16x64xbf16>, vector<64x32xbf16>, vector<16x32xf32> -> vector<16x32xf32>
    %294 = vector.broadcast %186 : vector<1x32xf32> to vector<16x32xf32>
    %295 = arith.addf %293, %294 : vector<16x32xf32>
    %296 = arith.addf %295, %268 : vector<16x32xf32>
    %cst_134 = arith.constant dense<0.000000e+00> : vector<16xf32>
    %297 = vector.multi_reduction <add>, %296, %cst_134 [1] : vector<16x32xf32> to vector<16xf32>
    %298 = vector.shape_cast %297 : vector<16xf32> to vector<16x1xf32>
    %cst_135 = arith.constant 3.200000e+01 : f32
    %299 = vector.broadcast %cst_135 : f32 to vector<16x1xf32>
    %300 = arith.divf %298, %299 : vector<16x1xf32>
    %301 = vector.broadcast %300 : vector<16x1xf32> to vector<16x32xf32>
    %302 = arith.subf %296, %301 : vector<16x32xf32>
    %303 = arith.mulf %302, %302 : vector<16x32xf32>
    %cst_136 = arith.constant dense<0.000000e+00> : vector<16xf32>
    %304 = vector.multi_reduction <add>, %303, %cst_136 [1] : vector<16x32xf32> to vector<16xf32>
    %305 = vector.shape_cast %304 : vector<16xf32> to vector<16x1xf32>
    %cst_137 = arith.constant 3.200000e+01 : f32
    %306 = vector.broadcast %cst_137 : f32 to vector<16x1xf32>
    %307 = arith.divf %305, %306 : vector<16x1xf32>
    %cst_138 = arith.constant 9.99999996E-13 : f32
    %308 = vector.broadcast %cst_138 : f32 to vector<16x1xf32>
    %309 = arith.addf %307, %308 : vector<16x1xf32>
    %310 = math.rsqrt %309 : vector<16x1xf32>
    %311 = vector.broadcast %310 : vector<16x1xf32> to vector<16x32xf32>
    %312 = arith.mulf %302, %311 : vector<16x32xf32>
    %313 = vector.broadcast %187 : vector<1x32xf32> to vector<16x32xf32>
    %314 = arith.mulf %312, %313 : vector<16x32xf32>
    %315 = vector.broadcast %188 : vector<1x32xf32> to vector<16x32xf32>
    %316 = arith.addf %314, %315 : vector<16x32xf32>
    %c1_139 = arith.constant 1 : index
    %c0_140 = arith.constant 0 : index
    %c0_141 = arith.constant 0 : index
    %317 = vector.load %arg3[%c1_139, %c0_140, %c0_141] : memref<2x64x32xbf16, #tpu.memory_space<vmem>>, vector<1x64x32xbf16>
    %318 = vector.shape_cast %317 : vector<1x64x32xbf16> to vector<64x32xbf16>
    %cst_142 = arith.constant dense<0.000000e+00> : vector<16x32xf32>
    %319 = tpu.matmul %0, %318, %cst_142 {dimension_numbers = #tpu.dot_dimension_numbers<[1], [0], [0], [1], [0, 0, 1, 1], [], []>} : vector<16x64xbf16>, vector<64x32xbf16>, vector<16x32xf32> -> vector<16x32xf32>
    %c1_143 = arith.constant 1 : index
    %c0_144 = arith.constant 0 : index
    %c0_145 = arith.constant 0 : index
    %320 = vector.load %arg4[%c1_143, %c0_144, %c0_145] : memref<2x16x32xf32, #tpu.memory_space<vmem>>, vector<1x8x32xf32>
    %321 = vector.shape_cast %320 : vector<1x8x32xf32> to vector<8x32xf32>
    %322 = tpu.concatenate %321, %321 in 0 : vector<8x32xf32>, vector<8x32xf32> -> vector<16x32xf32>
    %c1_146 = arith.constant 1 : index
    %c0_147 = arith.constant 0 : index
    %c0_148 = arith.constant 0 : index
    %323 = vector.load %arg5[%c1_146, %c0_147, %c0_148] : memref<2x2x32xf32, #tpu.memory_space<vmem>>, vector<1x1x32xf32>
    %324 = vector.shape_cast %323 : vector<1x1x32xf32> to vector<1x32xf32>
    %c1_149 = arith.constant 1 : index
    %c1_150 = arith.constant 1 : index
    %c0_151 = arith.constant 0 : index
    %325 = vector.load %arg5[%c1_149, %c1_150, %c0_151] : memref<2x2x32xf32, #tpu.memory_space<vmem>>, vector<1x1x32xf32>
    %326 = vector.shape_cast %325 : vector<1x1x32xf32> to vector<1x32xf32>
    %327 = arith.subf %326, %324 : vector<1x32xf32>
    %328 = vector.broadcast %1 : vector<16x1xf32> to vector<16x32xf32>
    %329 = vector.broadcast %327 : vector<1x32xf32> to vector<16x32xf32>
    %330 = arith.mulf %328, %329 : vector<16x32xf32>
    %331 = vector.broadcast %324 : vector<1x32xf32> to vector<16x32xf32>
    %332 = arith.addf %331, %330 : vector<16x32xf32>
    %333 = arith.addf %319, %322 : vector<16x32xf32>
    %334 = arith.addf %333, %332 : vector<16x32xf32>
    %c1_152 = arith.constant 1 : index
    %c0_153 = arith.constant 0 : index
    %c0_154 = arith.constant 0 : index
    %335 = vector.load %arg6[%c1_152, %c0_153, %c0_154] : memref<2x2x32xf32, #tpu.memory_space<vmem>>, vector<1x1x32xf32>
    %336 = vector.shape_cast %335 : vector<1x1x32xf32> to vector<1x32xf32>
    %c1_155 = arith.constant 1 : index
    %c1_156 = arith.constant 1 : index
    %c0_157 = arith.constant 0 : index
    %337 = vector.load %arg6[%c1_155, %c1_156, %c0_157] : memref<2x2x32xf32, #tpu.memory_space<vmem>>, vector<1x1x32xf32>
    %338 = vector.shape_cast %337 : vector<1x1x32xf32> to vector<1x32xf32>
    %cst_158 = arith.constant dense<0.000000e+00> : vector<16xf32>
    %339 = vector.multi_reduction <add>, %334, %cst_158 [1] : vector<16x32xf32> to vector<16xf32>
    %340 = vector.shape_cast %339 : vector<16xf32> to vector<16x1xf32>
    %cst_159 = arith.constant 3.200000e+01 : f32
    %341 = vector.broadcast %cst_159 : f32 to vector<16x1xf32>
    %342 = arith.divf %340, %341 : vector<16x1xf32>
    %343 = vector.broadcast %342 : vector<16x1xf32> to vector<16x32xf32>
    %344 = arith.subf %334, %343 : vector<16x32xf32>
    %345 = arith.mulf %344, %344 : vector<16x32xf32>
    %cst_160 = arith.constant dense<0.000000e+00> : vector<16xf32>
    %346 = vector.multi_reduction <add>, %345, %cst_160 [1] : vector<16x32xf32> to vector<16xf32>
    %347 = vector.shape_cast %346 : vector<16xf32> to vector<16x1xf32>
    %cst_161 = arith.constant 3.200000e+01 : f32
    %348 = vector.broadcast %cst_161 : f32 to vector<16x1xf32>
    %349 = arith.divf %347, %348 : vector<16x1xf32>
    %cst_162 = arith.constant 9.99999996E-13 : f32
    %350 = vector.broadcast %cst_162 : f32 to vector<16x1xf32>
    %351 = arith.addf %349, %350 : vector<16x1xf32>
    %352 = math.rsqrt %351 : vector<16x1xf32>
    %353 = vector.broadcast %352 : vector<16x1xf32> to vector<16x32xf32>
    %354 = arith.mulf %344, %353 : vector<16x32xf32>
    %355 = vector.broadcast %336 : vector<1x32xf32> to vector<16x32xf32>
    %356 = arith.mulf %354, %355 : vector<16x32xf32>
    %357 = vector.broadcast %338 : vector<1x32xf32> to vector<16x32xf32>
    %358 = arith.addf %356, %357 : vector<16x32xf32>
    %c1_163 = arith.constant 1 : index
    %c0_164 = arith.constant 0 : index
    %c0_165 = arith.constant 0 : index
    %c0_166 = arith.constant 0 : index
    %359 = vector.load %arg13[%c1_163, %c0_164, %c0_165, %c0_166] : memref<2x2x6x32xf32, #tpu.memory_space<vmem>>, vector<1x1x6x32xf32>
    %360 = vector.shape_cast %359 : vector<1x1x6x32xf32> to vector<6x32xf32>
    %361 = vector.extract_strided_slice %360 {offsets = [0, 0], sizes = [1, 32], strides = [1, 1]} : vector<6x32xf32> to vector<1x32xf32>
    %362 = vector.extract_strided_slice %360 {offsets = [1, 0], sizes = [1, 32], strides = [1, 1]} : vector<6x32xf32> to vector<1x32xf32>
    %363 = vector.extract_strided_slice %360 {offsets = [2, 0], sizes = [1, 32], strides = [1, 1]} : vector<6x32xf32> to vector<1x32xf32>
    %364 = vector.extract_strided_slice %360 {offsets = [3, 0], sizes = [1, 32], strides = [1, 1]} : vector<6x32xf32> to vector<1x32xf32>
    %365 = vector.extract_strided_slice %360 {offsets = [4, 0], sizes = [1, 32], strides = [1, 1]} : vector<6x32xf32> to vector<1x32xf32>
    %366 = vector.extract_strided_slice %360 {offsets = [5, 0], sizes = [1, 32], strides = [1, 1]} : vector<6x32xf32> to vector<1x32xf32>
    %367 = arith.truncf %358 : vector<16x32xf32> to vector<16x32xbf16>
    %c1_167 = arith.constant 1 : index
    %c0_168 = arith.constant 0 : index
    %c0_169 = arith.constant 0 : index
    %c0_170 = arith.constant 0 : index
    %368 = vector.load %arg7[%c1_167, %c0_168, %c0_169, %c0_170] : memref<2x2x32x96xbf16, #tpu.memory_space<vmem>>, vector<1x1x32x96xbf16>
    %369 = vector.shape_cast %368 : vector<1x1x32x96xbf16> to vector<32x96xbf16>
    %cst_171 = arith.constant dense<0.000000e+00> : vector<16x96xf32>
    %370 = tpu.matmul %367, %369, %cst_171 {dimension_numbers = #tpu.dot_dimension_numbers<[1], [0], [0], [1], [0, 0, 1, 1], [], []>} : vector<16x32xbf16>, vector<32x96xbf16>, vector<16x96xf32> -> vector<16x96xf32>
    %c1_172 = arith.constant 1 : index
    %c0_173 = arith.constant 0 : index
    %c0_174 = arith.constant 0 : index
    %c0_175 = arith.constant 0 : index
    %371 = vector.load %arg8[%c1_172, %c0_173, %c0_174, %c0_175] : memref<2x2x1x96xf32, #tpu.memory_space<vmem>>, vector<1x1x1x96xf32>
    %372 = vector.shape_cast %371 : vector<1x1x1x96xf32> to vector<1x96xf32>
    %373 = vector.broadcast %372 : vector<1x96xf32> to vector<16x96xf32>
    %374 = arith.addf %370, %373 : vector<16x96xf32>
    %375 = vector.extract_strided_slice %374 {offsets = [0, 0], sizes = [16, 16], strides = [1, 1]} : vector<16x96xf32> to vector<16x16xf32>
    %376 = vector.extract_strided_slice %374 {offsets = [0, 32], sizes = [16, 16], strides = [1, 1]} : vector<16x96xf32> to vector<16x16xf32>
    %377 = vector.extract_strided_slice %374 {offsets = [0, 64], sizes = [16, 16], strides = [1, 1]} : vector<16x96xf32> to vector<16x16xf32>
    %378 = arith.truncf %375 : vector<16x16xf32> to vector<16x16xbf16>
    %379 = tpu.transpose %376, [1, 0] : vector<16x16xf32> -> vector<16x16xf32>
    %380 = arith.truncf %379 : vector<16x16xf32> to vector<16x16xbf16>
    %cst_176 = arith.constant dense<0.000000e+00> : vector<16x16xf32>
    %381 = tpu.matmul %378, %380, %cst_176 {dimension_numbers = #tpu.dot_dimension_numbers<[1], [0], [0], [1], [0, 0, 1, 1], [], []>} : vector<16x16xbf16>, vector<16x16xbf16>, vector<16x16xf32> -> vector<16x16xf32>
    %cst_177 = arith.constant 2.500000e-01 : f32
    %382 = vector.broadcast %cst_177 : f32 to vector<16x16xf32>
    %383 = arith.mulf %381, %382 : vector<16x16xf32>
    %384 = arith.addf %383, %2 : vector<16x16xf32>
    %cst_178 = arith.constant dense<0xFF800000> : vector<16xf32>
    %385 = vector.multi_reduction <maximumf>, %384, %cst_178 [1] : vector<16x16xf32> to vector<16xf32>
    %386 = vector.shape_cast %385 : vector<16xf32> to vector<16x1xf32>
    %387 = vector.broadcast %386 : vector<16x1xf32> to vector<16x16xf32>
    %388 = arith.subf %384, %387 : vector<16x16xf32>
    %389 = math.exp %388 : vector<16x16xf32>
    %cst_179 = arith.constant dense<0.000000e+00> : vector<16xf32>
    %390 = vector.multi_reduction <add>, %389, %cst_179 [1] : vector<16x16xf32> to vector<16xf32>
    %391 = vector.shape_cast %390 : vector<16xf32> to vector<16x1xf32>
    %392 = vector.broadcast %391 : vector<16x1xf32> to vector<16x16xf32>
    %393 = arith.divf %389, %392 : vector<16x16xf32>
    %394 = arith.truncf %393 : vector<16x16xf32> to vector<16x16xbf16>
    %395 = arith.truncf %377 : vector<16x16xf32> to vector<16x16xbf16>
    %cst_180 = arith.constant dense<0.000000e+00> : vector<16x16xf32>
    %396 = tpu.matmul %394, %395, %cst_180 {dimension_numbers = #tpu.dot_dimension_numbers<[1], [0], [0], [1], [0, 0, 1, 1], [], []>} : vector<16x16xbf16>, vector<16x16xbf16>, vector<16x16xf32> -> vector<16x16xf32>
    %397 = vector.extract_strided_slice %374 {offsets = [0, 16], sizes = [16, 16], strides = [1, 1]} : vector<16x96xf32> to vector<16x16xf32>
    %398 = vector.extract_strided_slice %374 {offsets = [0, 48], sizes = [16, 16], strides = [1, 1]} : vector<16x96xf32> to vector<16x16xf32>
    %399 = vector.extract_strided_slice %374 {offsets = [0, 80], sizes = [16, 16], strides = [1, 1]} : vector<16x96xf32> to vector<16x16xf32>
    %400 = arith.truncf %397 : vector<16x16xf32> to vector<16x16xbf16>
    %401 = tpu.transpose %398, [1, 0] : vector<16x16xf32> -> vector<16x16xf32>
    %402 = arith.truncf %401 : vector<16x16xf32> to vector<16x16xbf16>
    %cst_181 = arith.constant dense<0.000000e+00> : vector<16x16xf32>
    %403 = tpu.matmul %400, %402, %cst_181 {dimension_numbers = #tpu.dot_dimension_numbers<[1], [0], [0], [1], [0, 0, 1, 1], [], []>} : vector<16x16xbf16>, vector<16x16xbf16>, vector<16x16xf32> -> vector<16x16xf32>
    %cst_182 = arith.constant 2.500000e-01 : f32
    %404 = vector.broadcast %cst_182 : f32 to vector<16x16xf32>
    %405 = arith.mulf %403, %404 : vector<16x16xf32>
    %406 = arith.addf %405, %2 : vector<16x16xf32>
    %cst_183 = arith.constant dense<0xFF800000> : vector<16xf32>
    %407 = vector.multi_reduction <maximumf>, %406, %cst_183 [1] : vector<16x16xf32> to vector<16xf32>
    %408 = vector.shape_cast %407 : vector<16xf32> to vector<16x1xf32>
    %409 = vector.broadcast %408 : vector<16x1xf32> to vector<16x16xf32>
    %410 = arith.subf %406, %409 : vector<16x16xf32>
    %411 = math.exp %410 : vector<16x16xf32>
    %cst_184 = arith.constant dense<0.000000e+00> : vector<16xf32>
    %412 = vector.multi_reduction <add>, %411, %cst_184 [1] : vector<16x16xf32> to vector<16xf32>
    %413 = vector.shape_cast %412 : vector<16xf32> to vector<16x1xf32>
    %414 = vector.broadcast %413 : vector<16x1xf32> to vector<16x16xf32>
    %415 = arith.divf %411, %414 : vector<16x16xf32>
    %416 = arith.truncf %415 : vector<16x16xf32> to vector<16x16xbf16>
    %417 = arith.truncf %399 : vector<16x16xf32> to vector<16x16xbf16>
    %cst_185 = arith.constant dense<0.000000e+00> : vector<16x16xf32>
    %418 = tpu.matmul %416, %417, %cst_185 {dimension_numbers = #tpu.dot_dimension_numbers<[1], [0], [0], [1], [0, 0, 1, 1], [], []>} : vector<16x16xbf16>, vector<16x16xbf16>, vector<16x16xf32> -> vector<16x16xf32>
    %419 = tpu.concatenate %396, %418 in 1 : vector<16x16xf32>, vector<16x16xf32> -> vector<16x32xf32>
    %420 = arith.truncf %419 : vector<16x32xf32> to vector<16x32xbf16>
    %c1_186 = arith.constant 1 : index
    %c0_187 = arith.constant 0 : index
    %c0_188 = arith.constant 0 : index
    %c0_189 = arith.constant 0 : index
    %421 = vector.load %arg9[%c1_186, %c0_187, %c0_188, %c0_189] : memref<2x2x32x32xbf16, #tpu.memory_space<vmem>>, vector<1x1x32x32xbf16>
    %422 = vector.shape_cast %421 : vector<1x1x32x32xbf16> to vector<32x32xbf16>
    %cst_190 = arith.constant dense<0.000000e+00> : vector<16x32xf32>
    %423 = tpu.matmul %420, %422, %cst_190 {dimension_numbers = #tpu.dot_dimension_numbers<[1], [0], [0], [1], [0, 0, 1, 1], [], []>} : vector<16x32xbf16>, vector<32x32xbf16>, vector<16x32xf32> -> vector<16x32xf32>
    %424 = vector.broadcast %361 : vector<1x32xf32> to vector<16x32xf32>
    %425 = arith.addf %423, %424 : vector<16x32xf32>
    %426 = arith.addf %425, %358 : vector<16x32xf32>
    %cst_191 = arith.constant dense<0.000000e+00> : vector<16xf32>
    %427 = vector.multi_reduction <add>, %426, %cst_191 [1] : vector<16x32xf32> to vector<16xf32>
    %428 = vector.shape_cast %427 : vector<16xf32> to vector<16x1xf32>
    %cst_192 = arith.constant 3.200000e+01 : f32
    %429 = vector.broadcast %cst_192 : f32 to vector<16x1xf32>
    %430 = arith.divf %428, %429 : vector<16x1xf32>
    %431 = vector.broadcast %430 : vector<16x1xf32> to vector<16x32xf32>
    %432 = arith.subf %426, %431 : vector<16x32xf32>
    %433 = arith.mulf %432, %432 : vector<16x32xf32>
    %cst_193 = arith.constant dense<0.000000e+00> : vector<16xf32>
    %434 = vector.multi_reduction <add>, %433, %cst_193 [1] : vector<16x32xf32> to vector<16xf32>
    %435 = vector.shape_cast %434 : vector<16xf32> to vector<16x1xf32>
    %cst_194 = arith.constant 3.200000e+01 : f32
    %436 = vector.broadcast %cst_194 : f32 to vector<16x1xf32>
    %437 = arith.divf %435, %436 : vector<16x1xf32>
    %cst_195 = arith.constant 9.99999996E-13 : f32
    %438 = vector.broadcast %cst_195 : f32 to vector<16x1xf32>
    %439 = arith.addf %437, %438 : vector<16x1xf32>
    %440 = math.rsqrt %439 : vector<16x1xf32>
    %441 = vector.broadcast %440 : vector<16x1xf32> to vector<16x32xf32>
    %442 = arith.mulf %432, %441 : vector<16x32xf32>
    %443 = vector.broadcast %362 : vector<1x32xf32> to vector<16x32xf32>
    %444 = arith.mulf %442, %443 : vector<16x32xf32>
    %445 = vector.broadcast %363 : vector<1x32xf32> to vector<16x32xf32>
    %446 = arith.addf %444, %445 : vector<16x32xf32>
    %447 = arith.truncf %446 : vector<16x32xf32> to vector<16x32xbf16>
    %c1_196 = arith.constant 1 : index
    %c0_197 = arith.constant 0 : index
    %c0_198 = arith.constant 0 : index
    %c0_199 = arith.constant 0 : index
    %448 = vector.load %arg10[%c1_196, %c0_197, %c0_198, %c0_199] : memref<2x2x32x64xbf16, #tpu.memory_space<vmem>>, vector<1x1x32x64xbf16>
    %449 = vector.shape_cast %448 : vector<1x1x32x64xbf16> to vector<32x64xbf16>
    %cst_200 = arith.constant dense<0.000000e+00> : vector<16x64xf32>
    %450 = tpu.matmul %447, %449, %cst_200 {dimension_numbers = #tpu.dot_dimension_numbers<[1], [0], [0], [1], [0, 0, 1, 1], [], []>} : vector<16x32xbf16>, vector<32x64xbf16>, vector<16x64xf32> -> vector<16x64xf32>
    %c1_201 = arith.constant 1 : index
    %c0_202 = arith.constant 0 : index
    %c0_203 = arith.constant 0 : index
    %c0_204 = arith.constant 0 : index
    %451 = vector.load %arg11[%c1_201, %c0_202, %c0_203, %c0_204] : memref<2x2x1x64xf32, #tpu.memory_space<vmem>>, vector<1x1x1x64xf32>
    %452 = vector.shape_cast %451 : vector<1x1x1x64xf32> to vector<1x64xf32>
    %453 = vector.broadcast %452 : vector<1x64xf32> to vector<16x64xf32>
    %454 = arith.addf %450, %453 : vector<16x64xf32>
    %cst_205 = arith.constant 5.000000e-01 : f32
    %455 = vector.broadcast %cst_205 : f32 to vector<16x64xf32>
    %456 = arith.mulf %455, %454 : vector<16x64xf32>
    %cst_206 = arith.constant 4.471500e-02 : f32
    %457 = vector.broadcast %cst_206 : f32 to vector<16x64xf32>
    %458 = arith.mulf %457, %454 : vector<16x64xf32>
    %459 = arith.mulf %458, %454 : vector<16x64xf32>
    %460 = arith.mulf %459, %454 : vector<16x64xf32>
    %461 = arith.addf %454, %460 : vector<16x64xf32>
    %cst_207 = arith.constant 0.797884583 : f32
    %462 = vector.broadcast %cst_207 : f32 to vector<16x64xf32>
    %463 = arith.mulf %462, %461 : vector<16x64xf32>
    %464 = math.tanh %463 : vector<16x64xf32>
    %cst_208 = arith.constant 1.000000e+00 : f32
    %465 = vector.broadcast %cst_208 : f32 to vector<16x64xf32>
    %466 = arith.addf %465, %464 : vector<16x64xf32>
    %467 = arith.mulf %456, %466 : vector<16x64xf32>
    %468 = arith.truncf %467 : vector<16x64xf32> to vector<16x64xbf16>
    %c1_209 = arith.constant 1 : index
    %c0_210 = arith.constant 0 : index
    %c0_211 = arith.constant 0 : index
    %c0_212 = arith.constant 0 : index
    %469 = vector.load %arg12[%c1_209, %c0_210, %c0_211, %c0_212] : memref<2x2x64x32xbf16, #tpu.memory_space<vmem>>, vector<1x1x64x32xbf16>
    %470 = vector.shape_cast %469 : vector<1x1x64x32xbf16> to vector<64x32xbf16>
    %cst_213 = arith.constant dense<0.000000e+00> : vector<16x32xf32>
    %471 = tpu.matmul %468, %470, %cst_213 {dimension_numbers = #tpu.dot_dimension_numbers<[1], [0], [0], [1], [0, 0, 1, 1], [], []>} : vector<16x64xbf16>, vector<64x32xbf16>, vector<16x32xf32> -> vector<16x32xf32>
    %472 = vector.broadcast %364 : vector<1x32xf32> to vector<16x32xf32>
    %473 = arith.addf %471, %472 : vector<16x32xf32>
    %474 = arith.addf %473, %446 : vector<16x32xf32>
    %cst_214 = arith.constant dense<0.000000e+00> : vector<16xf32>
    %475 = vector.multi_reduction <add>, %474, %cst_214 [1] : vector<16x32xf32> to vector<16xf32>
    %476 = vector.shape_cast %475 : vector<16xf32> to vector<16x1xf32>
    %cst_215 = arith.constant 3.200000e+01 : f32
    %477 = vector.broadcast %cst_215 : f32 to vector<16x1xf32>
    %478 = arith.divf %476, %477 : vector<16x1xf32>
    %479 = vector.broadcast %478 : vector<16x1xf32> to vector<16x32xf32>
    %480 = arith.subf %474, %479 : vector<16x32xf32>
    %481 = arith.mulf %480, %480 : vector<16x32xf32>
    %cst_216 = arith.constant dense<0.000000e+00> : vector<16xf32>
    %482 = vector.multi_reduction <add>, %481, %cst_216 [1] : vector<16x32xf32> to vector<16xf32>
    %483 = vector.shape_cast %482 : vector<16xf32> to vector<16x1xf32>
    %cst_217 = arith.constant 3.200000e+01 : f32
    %484 = vector.broadcast %cst_217 : f32 to vector<16x1xf32>
    %485 = arith.divf %483, %484 : vector<16x1xf32>
    %cst_218 = arith.constant 9.99999996E-13 : f32
    %486 = vector.broadcast %cst_218 : f32 to vector<16x1xf32>
    %487 = arith.addf %485, %486 : vector<16x1xf32>
    %488 = math.rsqrt %487 : vector<16x1xf32>
    %489 = vector.broadcast %488 : vector<16x1xf32> to vector<16x32xf32>
    %490 = arith.mulf %480, %489 : vector<16x32xf32>
    %491 = vector.broadcast %365 : vector<1x32xf32> to vector<16x32xf32>
    %492 = arith.mulf %490, %491 : vector<16x32xf32>
    %493 = vector.broadcast %366 : vector<1x32xf32> to vector<16x32xf32>
    %494 = arith.addf %492, %493 : vector<16x32xf32>
    %c1_219 = arith.constant 1 : index
    %c1_220 = arith.constant 1 : index
    %c0_221 = arith.constant 0 : index
    %c0_222 = arith.constant 0 : index
    %495 = vector.load %arg13[%c1_219, %c1_220, %c0_221, %c0_222] : memref<2x2x6x32xf32, #tpu.memory_space<vmem>>, vector<1x1x6x32xf32>
    %496 = vector.shape_cast %495 : vector<1x1x6x32xf32> to vector<6x32xf32>
    %497 = vector.extract_strided_slice %496 {offsets = [0, 0], sizes = [1, 32], strides = [1, 1]} : vector<6x32xf32> to vector<1x32xf32>
    %498 = vector.extract_strided_slice %496 {offsets = [1, 0], sizes = [1, 32], strides = [1, 1]} : vector<6x32xf32> to vector<1x32xf32>
    %499 = vector.extract_strided_slice %496 {offsets = [2, 0], sizes = [1, 32], strides = [1, 1]} : vector<6x32xf32> to vector<1x32xf32>
    %500 = vector.extract_strided_slice %496 {offsets = [3, 0], sizes = [1, 32], strides = [1, 1]} : vector<6x32xf32> to vector<1x32xf32>
    %501 = vector.extract_strided_slice %496 {offsets = [4, 0], sizes = [1, 32], strides = [1, 1]} : vector<6x32xf32> to vector<1x32xf32>
    %502 = vector.extract_strided_slice %496 {offsets = [5, 0], sizes = [1, 32], strides = [1, 1]} : vector<6x32xf32> to vector<1x32xf32>
    %503 = arith.truncf %494 : vector<16x32xf32> to vector<16x32xbf16>
    %c1_223 = arith.constant 1 : index
    %c1_224 = arith.constant 1 : index
    %c0_225 = arith.constant 0 : index
    %c0_226 = arith.constant 0 : index
    %504 = vector.load %arg7[%c1_223, %c1_224, %c0_225, %c0_226] : memref<2x2x32x96xbf16, #tpu.memory_space<vmem>>, vector<1x1x32x96xbf16>
    %505 = vector.shape_cast %504 : vector<1x1x32x96xbf16> to vector<32x96xbf16>
    %cst_227 = arith.constant dense<0.000000e+00> : vector<16x96xf32>
    %506 = tpu.matmul %503, %505, %cst_227 {dimension_numbers = #tpu.dot_dimension_numbers<[1], [0], [0], [1], [0, 0, 1, 1], [], []>} : vector<16x32xbf16>, vector<32x96xbf16>, vector<16x96xf32> -> vector<16x96xf32>
    %c1_228 = arith.constant 1 : index
    %c1_229 = arith.constant 1 : index
    %c0_230 = arith.constant 0 : index
    %c0_231 = arith.constant 0 : index
    %507 = vector.load %arg8[%c1_228, %c1_229, %c0_230, %c0_231] : memref<2x2x1x96xf32, #tpu.memory_space<vmem>>, vector<1x1x1x96xf32>
    %508 = vector.shape_cast %507 : vector<1x1x1x96xf32> to vector<1x96xf32>
    %509 = vector.broadcast %508 : vector<1x96xf32> to vector<16x96xf32>
    %510 = arith.addf %506, %509 : vector<16x96xf32>
    %511 = vector.extract_strided_slice %510 {offsets = [0, 0], sizes = [16, 16], strides = [1, 1]} : vector<16x96xf32> to vector<16x16xf32>
    %512 = vector.extract_strided_slice %510 {offsets = [0, 32], sizes = [16, 16], strides = [1, 1]} : vector<16x96xf32> to vector<16x16xf32>
    %513 = vector.extract_strided_slice %510 {offsets = [0, 64], sizes = [16, 16], strides = [1, 1]} : vector<16x96xf32> to vector<16x16xf32>
    %514 = arith.truncf %511 : vector<16x16xf32> to vector<16x16xbf16>
    %515 = tpu.transpose %512, [1, 0] : vector<16x16xf32> -> vector<16x16xf32>
    %516 = arith.truncf %515 : vector<16x16xf32> to vector<16x16xbf16>
    %cst_232 = arith.constant dense<0.000000e+00> : vector<16x16xf32>
    %517 = tpu.matmul %514, %516, %cst_232 {dimension_numbers = #tpu.dot_dimension_numbers<[1], [0], [0], [1], [0, 0, 1, 1], [], []>} : vector<16x16xbf16>, vector<16x16xbf16>, vector<16x16xf32> -> vector<16x16xf32>
    %cst_233 = arith.constant 2.500000e-01 : f32
    %518 = vector.broadcast %cst_233 : f32 to vector<16x16xf32>
    %519 = arith.mulf %517, %518 : vector<16x16xf32>
    %520 = arith.addf %519, %2 : vector<16x16xf32>
    %cst_234 = arith.constant dense<0xFF800000> : vector<16xf32>
    %521 = vector.multi_reduction <maximumf>, %520, %cst_234 [1] : vector<16x16xf32> to vector<16xf32>
    %522 = vector.shape_cast %521 : vector<16xf32> to vector<16x1xf32>
    %523 = vector.broadcast %522 : vector<16x1xf32> to vector<16x16xf32>
    %524 = arith.subf %520, %523 : vector<16x16xf32>
    %525 = math.exp %524 : vector<16x16xf32>
    %cst_235 = arith.constant dense<0.000000e+00> : vector<16xf32>
    %526 = vector.multi_reduction <add>, %525, %cst_235 [1] : vector<16x16xf32> to vector<16xf32>
    %527 = vector.shape_cast %526 : vector<16xf32> to vector<16x1xf32>
    %528 = vector.broadcast %527 : vector<16x1xf32> to vector<16x16xf32>
    %529 = arith.divf %525, %528 : vector<16x16xf32>
    %530 = arith.truncf %529 : vector<16x16xf32> to vector<16x16xbf16>
    %531 = arith.truncf %513 : vector<16x16xf32> to vector<16x16xbf16>
    %cst_236 = arith.constant dense<0.000000e+00> : vector<16x16xf32>
    %532 = tpu.matmul %530, %531, %cst_236 {dimension_numbers = #tpu.dot_dimension_numbers<[1], [0], [0], [1], [0, 0, 1, 1], [], []>} : vector<16x16xbf16>, vector<16x16xbf16>, vector<16x16xf32> -> vector<16x16xf32>
    %533 = vector.extract_strided_slice %510 {offsets = [0, 16], sizes = [16, 16], strides = [1, 1]} : vector<16x96xf32> to vector<16x16xf32>
    %534 = vector.extract_strided_slice %510 {offsets = [0, 48], sizes = [16, 16], strides = [1, 1]} : vector<16x96xf32> to vector<16x16xf32>
    %535 = vector.extract_strided_slice %510 {offsets = [0, 80], sizes = [16, 16], strides = [1, 1]} : vector<16x96xf32> to vector<16x16xf32>
    %536 = arith.truncf %533 : vector<16x16xf32> to vector<16x16xbf16>
    %537 = tpu.transpose %534, [1, 0] : vector<16x16xf32> -> vector<16x16xf32>
    %538 = arith.truncf %537 : vector<16x16xf32> to vector<16x16xbf16>
    %cst_237 = arith.constant dense<0.000000e+00> : vector<16x16xf32>
    %539 = tpu.matmul %536, %538, %cst_237 {dimension_numbers = #tpu.dot_dimension_numbers<[1], [0], [0], [1], [0, 0, 1, 1], [], []>} : vector<16x16xbf16>, vector<16x16xbf16>, vector<16x16xf32> -> vector<16x16xf32>
    %cst_238 = arith.constant 2.500000e-01 : f32
    %540 = vector.broadcast %cst_238 : f32 to vector<16x16xf32>
    %541 = arith.mulf %539, %540 : vector<16x16xf32>
    %542 = arith.addf %541, %2 : vector<16x16xf32>
    %cst_239 = arith.constant dense<0xFF800000> : vector<16xf32>
    %543 = vector.multi_reduction <maximumf>, %542, %cst_239 [1] : vector<16x16xf32> to vector<16xf32>
    %544 = vector.shape_cast %543 : vector<16xf32> to vector<16x1xf32>
    %545 = vector.broadcast %544 : vector<16x1xf32> to vector<16x16xf32>
    %546 = arith.subf %542, %545 : vector<16x16xf32>
    %547 = math.exp %546 : vector<16x16xf32>
    %cst_240 = arith.constant dense<0.000000e+00> : vector<16xf32>
    %548 = vector.multi_reduction <add>, %547, %cst_240 [1] : vector<16x16xf32> to vector<16xf32>
    %549 = vector.shape_cast %548 : vector<16xf32> to vector<16x1xf32>
    %550 = vector.broadcast %549 : vector<16x1xf32> to vector<16x16xf32>
    %551 = arith.divf %547, %550 : vector<16x16xf32>
    %552 = arith.truncf %551 : vector<16x16xf32> to vector<16x16xbf16>
    %553 = arith.truncf %535 : vector<16x16xf32> to vector<16x16xbf16>
    %cst_241 = arith.constant dense<0.000000e+00> : vector<16x16xf32>
    %554 = tpu.matmul %552, %553, %cst_241 {dimension_numbers = #tpu.dot_dimension_numbers<[1], [0], [0], [1], [0, 0, 1, 1], [], []>} : vector<16x16xbf16>, vector<16x16xbf16>, vector<16x16xf32> -> vector<16x16xf32>
    %555 = tpu.concatenate %532, %554 in 1 : vector<16x16xf32>, vector<16x16xf32> -> vector<16x32xf32>
    %556 = arith.truncf %555 : vector<16x32xf32> to vector<16x32xbf16>
    %c1_242 = arith.constant 1 : index
    %c1_243 = arith.constant 1 : index
    %c0_244 = arith.constant 0 : index
    %c0_245 = arith.constant 0 : index
    %557 = vector.load %arg9[%c1_242, %c1_243, %c0_244, %c0_245] : memref<2x2x32x32xbf16, #tpu.memory_space<vmem>>, vector<1x1x32x32xbf16>
    %558 = vector.shape_cast %557 : vector<1x1x32x32xbf16> to vector<32x32xbf16>
    %cst_246 = arith.constant dense<0.000000e+00> : vector<16x32xf32>
    %559 = tpu.matmul %556, %558, %cst_246 {dimension_numbers = #tpu.dot_dimension_numbers<[1], [0], [0], [1], [0, 0, 1, 1], [], []>} : vector<16x32xbf16>, vector<32x32xbf16>, vector<16x32xf32> -> vector<16x32xf32>
    %560 = vector.broadcast %497 : vector<1x32xf32> to vector<16x32xf32>
    %561 = arith.addf %559, %560 : vector<16x32xf32>
    %562 = arith.addf %561, %494 : vector<16x32xf32>
    %cst_247 = arith.constant dense<0.000000e+00> : vector<16xf32>
    %563 = vector.multi_reduction <add>, %562, %cst_247 [1] : vector<16x32xf32> to vector<16xf32>
    %564 = vector.shape_cast %563 : vector<16xf32> to vector<16x1xf32>
    %cst_248 = arith.constant 3.200000e+01 : f32
    %565 = vector.broadcast %cst_248 : f32 to vector<16x1xf32>
    %566 = arith.divf %564, %565 : vector<16x1xf32>
    %567 = vector.broadcast %566 : vector<16x1xf32> to vector<16x32xf32>
    %568 = arith.subf %562, %567 : vector<16x32xf32>
    %569 = arith.mulf %568, %568 : vector<16x32xf32>
    %cst_249 = arith.constant dense<0.000000e+00> : vector<16xf32>
    %570 = vector.multi_reduction <add>, %569, %cst_249 [1] : vector<16x32xf32> to vector<16xf32>
    %571 = vector.shape_cast %570 : vector<16xf32> to vector<16x1xf32>
    %cst_250 = arith.constant 3.200000e+01 : f32
    %572 = vector.broadcast %cst_250 : f32 to vector<16x1xf32>
    %573 = arith.divf %571, %572 : vector<16x1xf32>
    %cst_251 = arith.constant 9.99999996E-13 : f32
    %574 = vector.broadcast %cst_251 : f32 to vector<16x1xf32>
    %575 = arith.addf %573, %574 : vector<16x1xf32>
    %576 = math.rsqrt %575 : vector<16x1xf32>
    %577 = vector.broadcast %576 : vector<16x1xf32> to vector<16x32xf32>
    %578 = arith.mulf %568, %577 : vector<16x32xf32>
    %579 = vector.broadcast %498 : vector<1x32xf32> to vector<16x32xf32>
    %580 = arith.mulf %578, %579 : vector<16x32xf32>
    %581 = vector.broadcast %499 : vector<1x32xf32> to vector<16x32xf32>
    %582 = arith.addf %580, %581 : vector<16x32xf32>
    %583 = arith.truncf %582 : vector<16x32xf32> to vector<16x32xbf16>
    %c1_252 = arith.constant 1 : index
    %c1_253 = arith.constant 1 : index
    %c0_254 = arith.constant 0 : index
    %c0_255 = arith.constant 0 : index
    %584 = vector.load %arg10[%c1_252, %c1_253, %c0_254, %c0_255] : memref<2x2x32x64xbf16, #tpu.memory_space<vmem>>, vector<1x1x32x64xbf16>
    %585 = vector.shape_cast %584 : vector<1x1x32x64xbf16> to vector<32x64xbf16>
    %cst_256 = arith.constant dense<0.000000e+00> : vector<16x64xf32>
    %586 = tpu.matmul %583, %585, %cst_256 {dimension_numbers = #tpu.dot_dimension_numbers<[1], [0], [0], [1], [0, 0, 1, 1], [], []>} : vector<16x32xbf16>, vector<32x64xbf16>, vector<16x64xf32> -> vector<16x64xf32>
    %c1_257 = arith.constant 1 : index
    %c1_258 = arith.constant 1 : index
    %c0_259 = arith.constant 0 : index
    %c0_260 = arith.constant 0 : index
    %587 = vector.load %arg11[%c1_257, %c1_258, %c0_259, %c0_260] : memref<2x2x1x64xf32, #tpu.memory_space<vmem>>, vector<1x1x1x64xf32>
    %588 = vector.shape_cast %587 : vector<1x1x1x64xf32> to vector<1x64xf32>
    %589 = vector.broadcast %588 : vector<1x64xf32> to vector<16x64xf32>
    %590 = arith.addf %586, %589 : vector<16x64xf32>
    %cst_261 = arith.constant 5.000000e-01 : f32
    %591 = vector.broadcast %cst_261 : f32 to vector<16x64xf32>
    %592 = arith.mulf %591, %590 : vector<16x64xf32>
    %cst_262 = arith.constant 4.471500e-02 : f32
    %593 = vector.broadcast %cst_262 : f32 to vector<16x64xf32>
    %594 = arith.mulf %593, %590 : vector<16x64xf32>
    %595 = arith.mulf %594, %590 : vector<16x64xf32>
    %596 = arith.mulf %595, %590 : vector<16x64xf32>
    %597 = arith.addf %590, %596 : vector<16x64xf32>
    %cst_263 = arith.constant 0.797884583 : f32
    %598 = vector.broadcast %cst_263 : f32 to vector<16x64xf32>
    %599 = arith.mulf %598, %597 : vector<16x64xf32>
    %600 = math.tanh %599 : vector<16x64xf32>
    %cst_264 = arith.constant 1.000000e+00 : f32
    %601 = vector.broadcast %cst_264 : f32 to vector<16x64xf32>
    %602 = arith.addf %601, %600 : vector<16x64xf32>
    %603 = arith.mulf %592, %602 : vector<16x64xf32>
    %604 = arith.truncf %603 : vector<16x64xf32> to vector<16x64xbf16>
    %c1_265 = arith.constant 1 : index
    %c1_266 = arith.constant 1 : index
    %c0_267 = arith.constant 0 : index
    %c0_268 = arith.constant 0 : index
    %605 = vector.load %arg12[%c1_265, %c1_266, %c0_267, %c0_268] : memref<2x2x64x32xbf16, #tpu.memory_space<vmem>>, vector<1x1x64x32xbf16>
    %606 = vector.shape_cast %605 : vector<1x1x64x32xbf16> to vector<64x32xbf16>
    %cst_269 = arith.constant dense<0.000000e+00> : vector<16x32xf32>
    %607 = tpu.matmul %604, %606, %cst_269 {dimension_numbers = #tpu.dot_dimension_numbers<[1], [0], [0], [1], [0, 0, 1, 1], [], []>} : vector<16x64xbf16>, vector<64x32xbf16>, vector<16x32xf32> -> vector<16x32xf32>
    %608 = vector.broadcast %500 : vector<1x32xf32> to vector<16x32xf32>
    %609 = arith.addf %607, %608 : vector<16x32xf32>
    %610 = arith.addf %609, %582 : vector<16x32xf32>
    %cst_270 = arith.constant dense<0.000000e+00> : vector<16xf32>
    %611 = vector.multi_reduction <add>, %610, %cst_270 [1] : vector<16x32xf32> to vector<16xf32>
    %612 = vector.shape_cast %611 : vector<16xf32> to vector<16x1xf32>
    %cst_271 = arith.constant 3.200000e+01 : f32
    %613 = vector.broadcast %cst_271 : f32 to vector<16x1xf32>
    %614 = arith.divf %612, %613 : vector<16x1xf32>
    %615 = vector.broadcast %614 : vector<16x1xf32> to vector<16x32xf32>
    %616 = arith.subf %610, %615 : vector<16x32xf32>
    %617 = arith.mulf %616, %616 : vector<16x32xf32>
    %cst_272 = arith.constant dense<0.000000e+00> : vector<16xf32>
    %618 = vector.multi_reduction <add>, %617, %cst_272 [1] : vector<16x32xf32> to vector<16xf32>
    %619 = vector.shape_cast %618 : vector<16xf32> to vector<16x1xf32>
    %cst_273 = arith.constant 3.200000e+01 : f32
    %620 = vector.broadcast %cst_273 : f32 to vector<16x1xf32>
    %621 = arith.divf %619, %620 : vector<16x1xf32>
    %cst_274 = arith.constant 9.99999996E-13 : f32
    %622 = vector.broadcast %cst_274 : f32 to vector<16x1xf32>
    %623 = arith.addf %621, %622 : vector<16x1xf32>
    %624 = math.rsqrt %623 : vector<16x1xf32>
    %625 = vector.broadcast %624 : vector<16x1xf32> to vector<16x32xf32>
    %626 = arith.mulf %616, %625 : vector<16x32xf32>
    %627 = vector.broadcast %501 : vector<1x32xf32> to vector<16x32xf32>
    %628 = arith.mulf %626, %627 : vector<16x32xf32>
    %629 = vector.broadcast %502 : vector<1x32xf32> to vector<16x32xf32>
    %630 = arith.addf %628, %629 : vector<16x32xf32>
    %c0_275 = arith.constant 0 : index
    %c0_276 = arith.constant 0 : index
    %631 = vector.load %arg14[%c0_275, %c0_276] : memref<32x2xf32, #tpu.memory_space<vmem>>, vector<32x2xf32>
    %cst_277 = arith.constant dense<0.000000e+00> : vector<16x2xf32>
    %632 = tpu.matmul %316, %631, %cst_277 {dimension_numbers = #tpu.dot_dimension_numbers<[1], [0], [0], [1], [0, 0, 1, 1], [], []>} : vector<16x32xf32>, vector<32x2xf32>, vector<16x2xf32> -> vector<16x2xf32>
    %c0_278 = arith.constant 0 : index
    %c0_279 = arith.constant 0 : index
    %633 = vector.load %arg15[%c0_278, %c0_279] : memref<1x2xf32, #tpu.memory_space<vmem>>, vector<1x2xf32>
    %634 = vector.broadcast %633 : vector<1x2xf32> to vector<16x2xf32>
    %635 = arith.addf %632, %634 : vector<16x2xf32>
    %636 = vector.extract_strided_slice %635 {offsets = [0, 1], sizes = [16, 1], strides = [1, 1]} : vector<16x2xf32> to vector<16x1xf32>
    %637 = vector.extract_strided_slice %635 {offsets = [0, 0], sizes = [16, 1], strides = [1, 1]} : vector<16x2xf32> to vector<16x1xf32>
    %638 = arith.subf %636, %637 : vector<16x1xf32>
    %cst_280 = arith.constant -3.000000e+01 : f32
    %cst_281 = arith.constant 3.000000e+01 : f32
    %639 = vector.broadcast %cst_280 : f32 to vector<16x1xf32>
    %640 = arith.maximumf %639, %638 : vector<16x1xf32>
    %641 = vector.broadcast %cst_281 : f32 to vector<16x1xf32>
    %642 = arith.minimumf %641, %640 : vector<16x1xf32>
    %cst_282 = arith.constant 0.000000e+00 : f32
    %643 = vector.broadcast %cst_282 : f32 to vector<16x1xf32>
    %644 = arith.subf %643, %642 : vector<16x1xf32>
    %645 = math.exp %644 : vector<16x1xf32>
    %cst_283 = arith.constant 1.000000e+00 : f32
    %646 = vector.broadcast %cst_283 : f32 to vector<16x1xf32>
    %647 = arith.addf %646, %645 : vector<16x1xf32>
    %cst_284 = arith.constant 1.000000e+00 : f32
    %648 = vector.broadcast %cst_284 : f32 to vector<16x1xf32>
    %649 = arith.divf %648, %647 : vector<16x1xf32>
    %650 = vector.extract_strided_slice %649 {offsets = [0, 0], sizes = [8, 1], strides = [1, 1]} : vector<16x1xf32> to vector<8x1xf32>
    %cst_285 = arith.constant dense<0.000000e+00> : vector<1xf32>
    %651 = vector.multi_reduction <add>, %650, %cst_285 [0] : vector<8x1xf32> to vector<1xf32>
    %652 = vector.shape_cast %651 : vector<1xf32> to vector<1x1xf32>
    %653 = vector.extract_strided_slice %630 {offsets = [0, 0], sizes = [1, 32], strides = [1, 1]} : vector<16x32xf32> to vector<1x32xf32>
    %654 = vector.broadcast %652 : vector<1x1xf32> to vector<1x32xf32>
    %655 = arith.mulf %654, %653 : vector<1x32xf32>
    %656 = vector.extract_strided_slice %649 {offsets = [8, 0], sizes = [8, 1], strides = [1, 1]} : vector<16x1xf32> to vector<8x1xf32>
    %cst_286 = arith.constant dense<0.000000e+00> : vector<1xf32>
    %657 = vector.multi_reduction <add>, %656, %cst_286 [0] : vector<8x1xf32> to vector<1xf32>
    %658 = vector.shape_cast %657 : vector<1xf32> to vector<1x1xf32>
    %659 = vector.extract_strided_slice %630 {offsets = [8, 0], sizes = [1, 32], strides = [1, 1]} : vector<16x32xf32> to vector<1x32xf32>
    %660 = vector.broadcast %658 : vector<1x1xf32> to vector<1x32xf32>
    %661 = arith.mulf %660, %659 : vector<1x32xf32>
    %662 = arith.addf %655, %661 : vector<1x32xf32>
    %cst_287 = arith.constant dense<0.000000e+00> : vector<1xf32>
    %663 = vector.multi_reduction <add>, %649, %cst_287 [0] : vector<16x1xf32> to vector<1xf32>
    %664 = vector.shape_cast %663 : vector<1xf32> to vector<1x1xf32>
    %665 = vector.broadcast %664 : vector<1x1xf32> to vector<1x32xf32>
    %666 = arith.divf %662, %665 : vector<1x32xf32>
    %c0_288 = arith.constant 0 : index
    %c0_289 = arith.constant 0 : index
    %667 = vector.load %arg16[%c0_288, %c0_289] : memref<32x2xf32, #tpu.memory_space<vmem>>, vector<32x2xf32>
    %cst_290 = arith.constant dense<0.000000e+00> : vector<1x2xf32>
    %668 = tpu.matmul %666, %667, %cst_290 {dimension_numbers = #tpu.dot_dimension_numbers<[1], [0], [0], [1], [0, 0, 1, 1], [], []>} : vector<1x32xf32>, vector<32x2xf32>, vector<1x2xf32> -> vector<1x2xf32>
    %c0_291 = arith.constant 0 : index
    %c0_292 = arith.constant 0 : index
    %669 = vector.load %arg17[%c0_291, %c0_292] : memref<1x2xf32, #tpu.memory_space<vmem>>, vector<1x2xf32>
    %670 = arith.addf %668, %669 : vector<1x2xf32>
    %c0_293 = arith.constant 0 : index
    %c0_294 = arith.constant 0 : index
    %671 = vector.load %arg18[%c0_293, %c0_294] : memref<1x2xf32, #tpu.memory_space<vmem>>, vector<1x2xf32>
    tpu.vector_store %arg18[%c0_293, %c0_294], %670 {strides = array<i32>} : memref<1x2xf32, #tpu.memory_space<vmem>>, vector<1x2xf32>,
    return
  }
}

</mosaic_0001>

<bundles_post_ra>
// kernel: eq.1
= control target key start
LH: loop header
LB: loop body
LE: loop exit
PB: predicated region body
PF: predicated region fallthrough
CT: control target
= control target key end

     0   :  { %vm8_vm0 = vcmask 64512   ;;  %vm14_vm1 = vcmask 130112   ;;  %s42_s0 = inlined_call_operand.vmem [shape: s32[2,8], index: 0, kind: input, shape index: {}]   ;;  %s43_s1 = inlined_call_operand.vmem [shape: s32[16], index: 1, kind: output, shape index: {}]  }
   0x1   :  { %v5_v0 = vld [vmem:[%s42_s0] sm:$0x3]  ;;  %s25_s0 = smov 8  }
   0x2   :  { %6 = vst [vmem:[#allocation1] sm:$0x3] %v5_v0 }
   0x9   :  { %v11_v1 = vld [vmem:[#allocation1 + $0x1] sm:$0x1]   ;;  %v7_v2 = vld [vmem:[#allocation1] sm:$0x1]  }
   0xa   :  { %12 = vrot.lane.b32.xlu0 %v11_v1, %s25_s0  ;;  %9 = vst.msk [vmem:[#allocation0] sm:$0x1] %vm8_vm0, %v7_v2  }
  0x7c   :  { %v13_v3 = vpop.permute.xlu0 %12  }
  0x7d   :  { %15 = vst.msk [vmem:[#allocation0] sm:$0x1] %vm14_vm1, %v13_v3  }
  0x84   :  { %v20_v4 = vld [vmem:[#allocation0] sm:$0x1] }
  0x85   :  { %23 = vst [vmem:[%s43_s1] sm:$0x1] %v20_v4 }

// kernel: two_berts_forward.1
= control target key start
LH: loop header
LB: loop body
LE: loop exit
PB: predicated region body
PF: predicated region fallthrough
CT: control target
= control target key end

     0   :  { %s5148_s0 = inlined_call_operand.vmem [shape: bf16[16,64], index: 0, kind: input, shape index: {}]   ;;  %s5149_s1 = inlined_call_operand.vmem [shape: f32[16,1], index: 1, kind: input, shape index: {}]   ;;  %s5150_s2 = inlined_call_operand.vmem [shape: f32[16,16], index: 2, kind: input, shape index: {}]   ;;  %s5151_s3 = inlined_call_operand.vmem [shape: bf16[2,64,32], index: 3, kind: input, shape index: {}]   ;;  %s5152_s4 = inlined_call_operand.vmem [shape: f32[2,16,32], index: 4, kind: input, shape index: {}]   ;;  %s5153_s5 = inlined_call_operand.vmem [shape: f32[2,2,32], index: 5, kind: input, shape index: {}]   ;;  %s5154_s6 = inlined_call_operand.vmem [shape: f32[2,2,32], index: 6, kind: input, shape index: {}]   ;;  %s5155_s7 = inlined_call_operand.vmem [shape: bf16[2,2,32,96], index: 7, kind: input, shape index: {}]   ;;  %s5156_s8 = inlined_call_operand.vmem [shape: f32[2,2,1,96], index: 8, kind: input, shape index: {}]   ;;  %s5157_s9 = inlined_call_operand.vmem [shape: bf16[2,2,32,32], index: 9, kind: input, shape index: {}]   ;;  %s5158_s10 = inlined_call_operand.vmem [shape: bf16[2,2,32,64], index: 10, kind: input, shape index: {}]   ;;  %s5159_s11 = inlined_call_operand.vmem [shape: f32[2,2,1,64], index: 11, kind: input, shape index: {}]   ;;  %s5160_s12 = inlined_call_operand.vmem [shape: bf16[2,2,64,32], index: 12, kind: input, shape index: {}]   ;;  %s5161_s13 = inlined_call_operand.vmem [shape: f32[2,2,6,32], index: 13, kind: input, shape index: {}]   ;;  %s5162_s14 = inlined_call_operand.vmem [shape: f32[32,2], index: 14, kind: input, shape index: {}]   ;;  %s5163_s15 = inlined_call_operand.vmem [shape: f32[1,2], index: 15, kind: input, shape index: {}]   ;;  %s5164_s16 = inlined_call_operand.vmem [shape: f32[32,2], index: 16, kind: input, shape index: {}]   ;;  %s5165_s17 = inlined_call_operand.vmem [shape: f32[1,2], index: 17, kind: input, shape index: {}]   ;;  %s5166_s18 = inlined_call_operand.hbm [shape: f32[1,2], index: 18, kind: output, shape index: {}]  }
   0x1   :  { %5172 = sst [smem:[#allocation5_spill]] %s5148_s0 }
   0x2   :  { %5173 = sst [smem:[#allocation6_spill]] %s5149_s1 }
   0x3   :  { %5174 = sst [smem:[#allocation7_spill]] %s5150_s2 }
   0x4   :  { %v4087_v0 = vld [vmem:[%s5151_s3 + $0x18] sm:$0xff]   ;;  %v4292_v1 = vmov 0.0   ;;  %v4088_v2 = vld [vmem:[%s5151_s3 + $0x10] sm:$0xff]   ;;  %vm4293_vm0 = vmmov 0   ;;  %v4294_v3 = vmov 0   ;;  %s5175_s1 = sld [smem:[#allocation6_spill]] }
   0x5   :  { %3766 = vmatprep.subr.bf16.mxu0 %v4292_v1  ;;  %3778 = vmatprep.subr.bf16.mxu1 %v4292_v1  ;;  %v4089_v5 = vld [vmem:[%s5151_s3 + $0x8] sm:$0xff]   ;;  %vm130_vm1 = vcmask 523264   ;;  %v4090_v7 = vld [vmem:[%s5151_s3] sm:$0xff]   ;;  %s5176_s27 = sld [smem:[#allocation5_spill]] }
   0x6   :  { %3767 = vmatpush3.bf16.msra.mxu0 %v4087_v0  ;;  %3774 = vmatprep.mubr.msk.bf16.mxu0 %vm4293_vm0, %v4292_v1 }
   0x7   :  { %3768 = vmatprep.subr.bf16.mxu0 %v4292_v1  ;;  %3782 = vmatprep.mubr.msk.bf16.mxu1 %vm4293_vm0, %v4292_v1 }
   0x8   :  { %4064 = vset.pattern.permute.xlu0 %v4294_v3 }
   0xa   :  { %v63_v4 = vld [vmem:[%s5175_s1] sm:$0xff]  ;;  %3769 = vmatpush3.bf16.msra.mxu0 %v4088_v2  ;;  %v64_v6 = vld [vmem:[%s5175_s1 + $0x8] sm:$0xff] }
   0xb   :  { %81 = vperm.xlu0 %4064, %v63_v4   ;;  %3770 = vmatprep.subr.bf16.mxu0 %v4292_v1  ;;  %v4091_v8 = vld [vmem:[%s5176_s27] sm:$0xff]  }
   0xe   :  { %3771 = vmatpush3.bf16.msra.mxu0 %v4089_v5 }
   0xf   :  { %86 = vperm.xlu0 %4064, %v64_v6   ;;  %3772 = vmatprep.subr.bf16.mxu0 %v4292_v1 }
  0x12   :  { %3773 = vmatpush3.bf16.msra.mxu0 %v4090_v7 }
  0x13   :  { %3792 = vmatprep.subr.bf16.mxu0 %v4292_v1 }
  0x15   :  { %3775 = vmatmul.mubr.msk.bf16.vlgmr.msra.gmra.mxu0 %vm130_vm1, %v4091_v8 }
  0x16   :  { %3794 = vmatprep.mubr.msk.bf16.mxu0 %vm4293_vm0, %v4292_v1 }
  0x17   :  { %23 = vsyncpa [#allocation3], 0  ;;  %v89_v9 = vlaneseq  ;;  %v76_v11 = vld [vmem:[%s5153_s5] sm:$0x1]  ;;  %v77_v12 = vld [vmem:[%s5153_s5 + $0x1] sm:$0x1] }
  0x18   :  { %v78_v13 = vsub.f32 %v77_v12, %v76_v11  ;;  %v75_v20 = vld [vmem:[%s5152_s4] sm:$0xff]  ;;  %vm179_vm2 = vcmask 261120   ;;  %v4092_v44 = vld [vmem:[%s5155_s7 + $0x8] sm:$0xff]   ;;  %s4295_s30 = smov 96   ;;  %s4296_s0 = smov 112   ;;  %vm330_vm3 = vcmask 130048  }
  0x19   :  { %v4433_v10 = vshrl.u32 %v89_v9, 7  ;;  %3779 = vmatpush3.bf16.msra.mxu1 %v4092_v44  ;;  %v4093_v45 = vld [vmem:[%s5155_s7] sm:$0xff]   ;;  %s4297_s19 = smov 80   ;;  %s5177_s21 = sld [smem:[#allocation7_spill]]  ;;  %vm3338_vm4 = vcmask 15368   ;;  %vm3458_vm5 = vcmask 8192  }
  0x1a   :  { %3780 = vmatprep.subr.bf16.mxu1 %v4292_v1  ;;  %v3480_v54 = vld [vmem:[%s5154_s6] ss:$0 sm:$0xff]  ;;  %v3481_v58 = vld [vmem:[%s5154_s6 + $0x1] ss:$0 sm:$0xff]  ;;  %s4298_s23 = smov 48   ;;  %s4299_s24 = smov 64  }
  0x1b   :  { %v4442_v14 = vsub.s32 0, %v4433_v10  ;;  %v3482_v63 = vld [vmem:[%s5156_s8] ss:$0 sm:$0xff]  ;;  %s5170_s1 = smov 16   ;;  %s5178_s2 = smov 16  }
  0x1c   :  { %s4303_s28 = smov [#allocation2]  }
  0x1d   :  { %v92_v15 = vrot.slane %v78_v13, %v4442_v14  ;;  %v98_v18 = vrot.slane %v76_v11, %v4442_v14  ;;  %3781 = vmatpush3.bf16.msra.mxu1 %v4093_v45  ;;  %s3466_s29 = sshll.u32 %s4303_s28, 4  ;;  %s3467_s29 = int_to_ptr.vmem [resolvable:$true] %s3466_s29 }
  0x1e   :  { %3786 = vmatprep.subr.bf16.mxu1 %v4292_v1  ;;  %s4274_s20 = scalar_lea.vmem %s3467_s29, 32  ;;  %p4275_p1 = scmp.lt.s32.totalorder %s3467_s29, %s3467_s29 }
  0x86   :  { %v4445_v16 = vpop.permute.xlu0 %81 }
  0x87   :  { %v93_v17 = vmul.f32 %v92_v15, %v4445_v16 }
  0x89   :  { %v99_v21 = vadd.f32 %v98_v18, %v93_v17 }
  0x8a   :  { %v4449_v19 = vpop.permute.xlu0 %86 }
  0x8b   :  { %v94_v23 = vmul.f32 %v92_v15, %v4449_v19 }
  0x8d   :  { %v100_v30 = vadd.f32 %v98_v18, %v94_v23 }
  0xd5   :  { %v168_v22 = vpop.f32.mrf.mxu0 }
  0xd6   :  { %v169_v24 = vadd.f32 %v168_v22, %v75_v20 }
  0xd7   :  { %v3776_v25 = vpop.f32.mrf.mxu0 }
  0xd8   :  { %v175_v26 = vadd.f32 %v169_v24, %v99_v21  ;;  %v4505_v24 = vld [vmem:[%s5177_s21] sm:$0xff] }
  0xd9   :  { %v171_v27 = vpop.f32.mrf.mxu0 }
  0xda   :  { %v172_v28 = vadd.f32 %v171_v27, %v75_v20  ;;  %v180_v29 = vsel %vm179_vm2, %v175_v26, 0.0 }
  0xdb   :  { %181 = vadd.xlane.f32.xlu1 %v180_v29  ;;  %v3777_v31 = vpop.f32.mrf.mxu0  ;;  %v4511_v29 = vld [vmem:[%s5177_s21 + $0x8] sm:$0xff] }
  0xdc   :  { %v176_v32 = vadd.f32 %v172_v28, %v100_v30 }
  0xde   :  { %v183_v33 = vsel %vm179_vm2, %v176_v32, 0.0 }
  0xdf   :  { %184 = vadd.xlane.f32.xlu1 %v183_v33 }
 0x164   :  { %v182_v34 = vpop.xlane.xlu1 %181 }
 0x165   :  { %v187_v35 = vmul.f32 0.03125, %v182_v34 }
 0x167   :  { %v189_v36 = vsub.f32 %v175_v26, %v187_v35 }
 0x168   :  { %v185_v37 = vpop.xlane.xlu1 %184 }
 0x169   :  { %v188_v38 = vmul.f32 0.03125, %v185_v37  ;;  %v191_v39 = vmul.f32 %v189_v36, %v189_v36 }
 0x16b   :  { %v190_v40 = vsub.f32 %v176_v32, %v188_v38  ;;  %v193_v41 = vsel %vm179_vm2, %v191_v39, 0.0 }
 0x16c   :  { %194 = vadd.xlane.f32.xlu0 %v193_v41 }
 0x16d   :  { %v192_v42 = vmul.f32 %v190_v40, %v190_v40 }
 0x16f   :  { %v196_v43 = vsel %vm179_vm2, %v192_v42, 0.0 }
 0x170   :  { %197 = vadd.xlane.f32.xlu1 %v196_v43 }
 0x1f5   :  { %v195_v46 = vpop.xlane.xlu0 %194 }
 0x1f6   :  { %v199_v47 = vmul.f32 0.03125, %v195_v46 }
 0x1f8   :  { %v201_v48 = vadd.f32 1e-12, %v199_v47 }
 0x1f9   :  { %v198_v49 = vpop.xlane.xlu1 %197 }
 0x1fa   :  { %4136 = vrsqrt.f32 %v201_v48  ;;  %v200_v50 = vmul.f32 0.03125, %v198_v49 }
 0x1fc   :  { %v202_v51 = vadd.f32 1e-12, %v200_v50 }
 0x1fe   :  { %4138 = vrsqrt.f32 %v202_v51 }
 0x207   :  { %v4137_v52 = vpop.eup %4136 }
 0x208   :  { %v205_v53 = vmul.f32 %v4137_v52, %v189_v36 }
 0x20a   :  { %v211_v57 = vmul.f32 %v3480_v54, %v205_v53 }
 0x20b   :  { %v4139_v55 = vpop.eup %4138 }
 0x20c   :  { %v206_v56 = vmul.f32 %v4139_v55, %v190_v40  ;;  %v4473_v60 = vadd.f32 %v3481_v58, %v211_v57 }
 0x20e   :  { %v212_v59 = vmul.f32 %v3480_v54, %v206_v56 }
 0x210   :  { %v4475_v61 = vadd.f32 %v3481_v58, %v212_v59 }
 0x212   :  { %v220_v62 = vpack.c.bf16 %v4475_v61, %v4473_v60 }
 0x214   :  { %3783 = vmatmul.mubr.msk.bf16.vlgmr.msra.gmra.mxu1 %vm179_vm2, %v220_v62 }
 0x215   :  { %3788 = vmatprep.mubr.msk.bf16.mxu1 %vm4293_vm0, %v4292_v1 }
 0x2d4   :  { %v281_v0 = vpop.f32.mrf.mxu1 }
 0x2d5   :  { %v282_v2 = vadd.f32 %v3482_v63, %v281_v0 }
 0x2d6   :  { %v3784_v3 = vpop.f32.mrf.mxu1 }
 0x2d7   :  { %291 = vrot.lane.b32.xlu1 %v282_v2, %s4295_s30 }
 0x2d8   :  { %v284_v4 = vpop.f32.mrf.mxu1 }
 0x2d9   :  { %v285_v5 = vadd.f32 %v3482_v63, %v284_v4 }
 0x2da   :  { %v3785_v6 = vpop.f32.mrf.mxu1 }
 0x2db   :  { %v4486_v7 = vpack.c.bf16 %v285_v5, %v282_v2  ;;  %293 = vrot.lane.b32.xlu1 %v285_v5, %s4295_s30 }
 0x2dd   :  { %489 = vrot.lane.b32.xlu0 %v4486_v7, %s4296_s0 }
 0x2df   :  { %450 = vrot.lane.b32.xlu1 %v282_v2, %s4297_s19 }
 0x2e3   :  { %452 = vrot.lane.b32.xlu1 %v285_v5, %s4297_s19 }
 0x349   :  { %v292_v8 = vpop.permute.xlu1 %291 }
 0x34a   :  { %297 = vxpose.xlu1.b32.start [1/2] (short) (narrow) %v292_v8, 16 }
 0x34d   :  { %v294_v9 = vpop.permute.xlu1 %293 }
 0x34e   :  { %298 = vxpose.xlu1.b32.end [2/2] (short) (narrow) %v294_v9, 16 }
 0x34f   :  { %v490_v15 = vpop.permute.xlu0 %489 }
 0x351   :  { %v451_v11 = vpop.permute.xlu1 %450 }
 0x352   :  { %456 = vxpose.xlu0.b32.start [1/2] (short) (narrow) %v451_v11, 16 }
 0x355   :  { %v453_v12 = vpop.permute.xlu1 %452 }
 0x356   :  { %457 = vxpose.xlu0.b32.end [2/2] (short) (narrow) %v453_v12, 16 }
 0x3c6   :  { %v313_v13 = vpop.trf.xlu1 }
 0x3ca   :  { %v314_v17 = vpop.trf.xlu1 }
 0x3cb   :  { %v329_v18 = vpack.c.bf16 %v314_v17, %v313_v13 }
 0x3cd   :  { %3787 = vmatpush3.bf16.msra.mxu1 %v329_v18 }
 0x3ce   :  { %v472_v20 = vpop.trf.xlu0  ;;  %3798 = vmatprep.subr.bf16.mxu1 %v4292_v1 }
 0x3d0   :  { %3789 = vmatmul.mubr.msk.bf16.vlgmr.msra.gmra.mxu1 %vm330_vm3, %v4486_v7 }
 0x3d1   :  { %3800 = vmatprep.mubr.msk.bf16.mxu1 %vm4293_vm0, %v4292_v1 }
 0x3d2   :  { %v473_v21 = vpop.trf.xlu0 }
 0x3d3   :  { %v488_v22 = vpack.c.bf16 %v473_v21, %v472_v20 }
 0x3d5   :  { %3799 = vmatpush3.bf16.msra.mxu1 %v488_v22 }
 0x3d6   :  { %3810 = vmatprep.subr.bf16.mxu1 %v4292_v1 }
 0x3d8   :  { %3801 = vmatmul.mubr.msk.bf16.vlgmr.msra.gmra.mxu1 %vm330_vm3, %v490_v15 }
 0x3d9   :  { %3814 = vmatprep.mubr.msk.bf16.mxu1 %vm4293_vm0, %v4292_v1 }
 0x490   :  { %v368_v23 = vpop.f32.mrf.mxu1 }
 0x491   :  { %v375_v25 = vmul.f32 0.25, %v368_v23 }
 0x492   :  { %v3790_v26 = vpop.f32.mrf.mxu1 }
 0x493   :  { %v377_v27 = vadd.f32 %v375_v25, %v4505_v24  ;;  %v4094_v25 = vld [vmem:[%s5157_s9 + $0x8] sm:$0xff]  }
 0x494   :  { %v371_v28 = vpop.f32.mrf.mxu1  ;;  %3811 = vmatpush3.bf16.msra.mxu1 %v4094_v25 }
 0x495   :  { %v376_v30 = vmul.f32 0.25, %v371_v28  ;;  %v379_v31 = vsel %vm330_vm3, %v377_v27, -inf  ;;  %3812 = vmatprep.subr.bf16.mxu1 %v4292_v1  ;;  %v4095_v28 = vld [vmem:[%s5157_s9] sm:$0xff]  }
 0x496   :  { %380 = vmax.xlane.f32.xlu1 %v379_v31  ;;  %v3791_v32 = vpop.f32.mrf.mxu1 }
 0x497   :  { %v378_v33 = vadd.f32 %v376_v30, %v4511_v29 }
 0x498   :  { %v528_v34 = vpop.f32.mrf.mxu1  ;;  %3813 = vmatpush3.bf16.msra.mxu1 %v4095_v28  ;;  %v4098_v28 = vld [vmem:[%s5160_s12 + $0x18] sm:$0xff]  }
 0x499   :  { %v535_v35 = vmul.f32 0.25, %v528_v34  ;;  %v382_v36 = vsel %vm330_vm3, %v378_v33, -inf  ;;  %3826 = vmatprep.subr.bf16.mxu1 %v4292_v1 }
 0x49a   :  { %383 = vmax.xlane.f32.xlu0 %v382_v36  ;;  %v3802_v37 = vpop.f32.mrf.mxu1 }
 0x49b   :  { %v537_v38 = vadd.f32 %v535_v35, %v4505_v24 }
 0x49c   :  { %v531_v39 = vpop.f32.mrf.mxu1 }
 0x49d   :  { %v536_v40 = vmul.f32 0.25, %v531_v39  ;;  %v539_v41 = vsel %vm330_vm3, %v537_v38, -inf }
 0x49e   :  { %540 = vmax.xlane.f32.xlu1 %v539_v41  ;;  %v3803_v42 = vpop.f32.mrf.mxu1 }
 0x49f   :  { %v538_v43 = vadd.f32 %v536_v40, %v4511_v29 }
 0x4a1   :  { %v542_v44 = vsel %vm330_vm3, %v538_v43, -inf }
 0x4a2   :  { %543 = vmax.xlane.f32.xlu1 %v542_v44 }
 0x51f   :  { %v381_v45 = vpop.xlane.xlu1 %380 }
 0x520   :  { %v385_v46 = vsub.f32 %v377_v27, %v381_v45 }
 0x522   :  { %v387_v47 = vmul.f32 1.442695, %v385_v46 }
 0x523   :  { %v384_v48 = vpop.xlane.xlu0 %383 }
 0x524   :  { %4140 = vpow2.f32 %v387_v47  ;;  %v386_v49 = vsub.f32 %v378_v33, %v384_v48 }
 0x526   :  { %v389_v50 = vmul.f32 1.442695, %v386_v49 }
 0x527   :  { %v541_v51 = vpop.xlane.xlu1 %540 }
 0x528   :  { %4142 = vpow2.f32 %v389_v50  ;;  %v545_v52 = vsub.f32 %v537_v38, %v541_v51 }
 0x52a   :  { %v547_v53 = vmul.f32 1.442695, %v545_v52 }
 0x52b   :  { %v544_v54 = vpop.xlane.xlu1 %543 }
 0x52c   :  { %4144 = vpow2.f32 %v547_v53  ;;  %v546_v55 = vsub.f32 %v538_v43, %v544_v54  ;;  %v4553_v43 = vld [vmem:[%s5161_s13] sm:$0x3f] }
 0x52d   :  { %v627_v44 = vrot.slane %v4553_v43, %v4442_v14 }
 0x52e   :  { %v549_v56 = vmul.f32 1.442695, %v546_v55 }
 0x530   :  { %4146 = vpow2.f32 %v549_v56 }
 0x531   :  { %v4141_v57 = vpop.eup %4140 }
 0x532   :  { %v391_v58 = vsel %vm330_vm3, %v4141_v57, 0.0 }
 0x533   :  { %392 = vadd.xlane.f32.xlu1 %v391_v58 }
 0x535   :  { %v4143_v59 = vpop.eup %4142 }
 0x536   :  { %v394_v62 = vsel %vm330_vm3, %v4143_v59, 0.0 }
 0x537   :  { %395 = vadd.xlane.f32.xlu1 %v394_v62 }
 0x539   :  { %v4145_v63 = vpop.eup %4144 }
 0x53a   :  { %v551_v0 = vsel %vm330_vm3, %v4145_v63, 0.0 }
 0x53b   :  { %552 = vadd.xlane.f32.xlu0 %v551_v0 }
 0x53d   :  { %v4147_v2 = vpop.eup %4146 }
 0x53e   :  { %v554_v3 = vsel %vm330_vm3, %v4147_v2, 0.0 }
 0x53f   :  { %555 = vadd.xlane.f32.xlu1 %v554_v3  ;;  %v4097_v3 = vld [vmem:[%s5158_s10] sm:$0xff]  }
 0x550   :  { %562 = vrot.lane.b32.xlu1 %v4486_v7, %s4298_s23 }
 0x551   :  { %403 = vrot.lane.b32.xlu0 %v4486_v7, %s4299_s24 }
 0x5bc   :  { %v393_v4 = vpop.xlane.xlu1 %392 }
 0x5bd   :  { %4148 = vrcp.f32 %v393_v4 }
 0x5c0   :  { %v396_v5 = vpop.xlane.xlu1 %395 }
 0x5c1   :  { %4150 = vrcp.f32 %v396_v5 }
 0x5c4   :  { %v553_v6 = vpop.xlane.xlu0 %552 }
 0x5c5   :  { %4152 = vrcp.f32 %v553_v6 }
 0x5c8   :  { %v404_v8 = vpop.permute.xlu0 %403  ;;  %v556_v9 = vpop.xlane.xlu1 %555 }
 0x5c9   :  { %4154 = vrcp.f32 %v556_v9  ;;  %3793 = vmatpush3.bf16.msra.mxu0 %v404_v8 }
 0x5ca   :  { %3804 = vmatprep.subr.bf16.mxu0 %v4292_v1  ;;  %v4149_v11 = vpop.eup %4148 }
 0x5cb   :  { %v398_v13 = vmul.f32 %v4149_v11, %v4141_v57 }
 0x5cc   :  { %v563_v18 = vpop.permute.xlu1 %562 }
 0x5ce   :  { %v4151_v12 = vpop.eup %4150 }
 0x5cf   :  { %v400_v15 = vmul.f32 %v4151_v12, %v4143_v59  ;;  %v4572_v12 = vsub.s32 1, %v4433_v10 }
 0x5d1   :  { %v401_v17 = vpack.c.bf16 %v400_v15, %v398_v13 }
 0x5d2   :  { %v4153_v7 = vpop.eup %4152 }
 0x5d3   :  { %3795 = vmatmul.mubr.msk.bf16.vlgmr.msra.gmra.mxu0 %vm330_vm3, %v401_v17  ;;  %v558_v21 = vmul.f32 %v4153_v7, %v4145_v63  ;;  %v715_v17 = vrot.slane %v4553_v43, %v4572_v12 }
 0x5d4   :  { %3805 = vmatpush3.bf16.msra.mxu0 %v563_v18  ;;  %3806 = vmatprep.mubr.msk.bf16.mxu0 %vm4293_vm0, %v4292_v1  ;;  %v4577_v18 = vsub.s32 2, %v4433_v10 }
 0x5d5   :  { %3818 = vmatprep.subr.bf16.mxu0 %v4292_v1 }
 0x5d6   :  { %v4155_v20 = vpop.eup %4154 }
 0x5d7   :  { %v560_v22 = vmul.f32 %v4155_v20, %v4147_v2 }
 0x5d9   :  { %v561_v23 = vpack.c.bf16 %v560_v22, %v558_v21  ;;  %v721_v22 = vrot.slane %v4553_v43, %v4577_v18 }
 0x5db   :  { %3807 = vmatmul.mubr.msk.bf16.vlgmr.msra.gmra.mxu0 %vm330_vm3, %v561_v23 }
 0x5dc   :  { %3822 = vmatprep.mubr.msk.bf16.mxu0 %vm4293_vm0, %v4292_v1 }
 0x693   :  { %v443_v26 = vpop.f32.mrf.mxu0 }
 0x695   :  { %v3796_v27 = vpop.f32.mrf.mxu0 }
 0x697   :  { %v446_v30 = vpop.f32.mrf.mxu0 }
 0x699   :  { %v3797_v31 = vpop.f32.mrf.mxu0 }
 0x69a   :  { %v4100_v31 = vld [vmem:[%s5160_s12 + $0x8] sm:$0xff]  }
 0x69b   :  { %v602_v32 = vpop.f32.mrf.mxu0 }
 0x69d   :  { %v3808_v33 = vpop.f32.mrf.mxu0 }
 0x69e   :  { %v3493_v33 = vld [vmem:[%s5159_s11] ss:$0 sm:$0xff] }
 0x69f   :  { %v605_v34 = vpop.f32.mrf.mxu0 }
 0x6a0   :  { %v4065_v35 = vpack.i.bf16 %v605_v34, %v602_v32  ;;  %v4101_v32 = vld [vmem:[%s5160_s12] sm:$0xff]  }
 0x6a1   :  { %v3809_v36 = vpop.f32.mrf.mxu0 }
 0x6a2   :  { %4066 = vrot.lane.b32.xlu1 %v4065_v35, %s5170_s1 }
 0x714   :  { %v4067_v37 = vpop.permute.xlu1 %4066 }
 0x715   :  { %v4069_v38 = vunpack.i.h.bf16 %v4067_v37  ;;  %v4068_v39 = vunpack.i.l.bf16 %v4067_v37 }
 0x717   :  { %v618_v40 = vsel %vm330_vm3, %v446_v30, %v4069_v38  ;;  %v617_v41 = vsel %vm330_vm3, %v443_v26, %v4068_v39  ;;  %v4099_v30 = vld [vmem:[%s5160_s12 + $0x10] sm:$0xff]  }
 0x718   :  { %v619_v42 = vpack.c.bf16 %v618_v40, %v617_v41 }
 0x71a   :  { %3815 = vmatmul.mubr.msk.bf16.vlgmr.msra.gmra.mxu1 %vm179_vm2, %v619_v42 }
 0x71b   :  { %3834 = vmatprep.mubr.msk.bf16.mxu1 %vm4293_vm0, %v4292_v1  ;;  %3827 = vmatpush3.bf16.msra.mxu1 %v4098_v28 }
 0x71c   :  { %3828 = vmatprep.subr.bf16.mxu1 %v4292_v1 }
 0x71f   :  { %3829 = vmatpush3.bf16.msra.mxu1 %v4099_v30 }
 0x720   :  { %3830 = vmatprep.subr.bf16.mxu1 %v4292_v1 }
 0x723   :  { %3831 = vmatpush3.bf16.msra.mxu1 %v4100_v31 }
 0x724   :  { %3832 = vmatprep.subr.bf16.mxu1 %v4292_v1 }
 0x727   :  { %3833 = vmatpush3.bf16.msra.mxu1 %v4101_v32 }
 0x728   :  { %3852 = vmatprep.subr.bf16.mxu1 %v4292_v1 }
 0x7da   :  { %v677_v45 = vpop.f32.mrf.mxu1 }
 0x7db   :  { %v678_v46 = vadd.f32 %v677_v45, %v627_v44 }
 0x7dc   :  { %v3816_v47 = vpop.f32.mrf.mxu1 }
 0x7dd   :  { %v684_v48 = vadd.f32 %v678_v46, %v4473_v60 }
 0x7de   :  { %v680_v49 = vpop.f32.mrf.mxu1 }
 0x7df   :  { %v681_v50 = vadd.f32 %v680_v49, %v627_v44  ;;  %v686_v51 = vsel %vm179_vm2, %v684_v48, 0.0 }
 0x7e0   :  { %687 = vadd.xlane.f32.xlu0 %v686_v51  ;;  %v3817_v52 = vpop.f32.mrf.mxu1 }
 0x7e1   :  { %v685_v53 = vadd.f32 %v681_v50, %v4475_v61  ;;  %v4096_v61 = vld [vmem:[%s5158_s10 + $0x8] sm:$0xff]  }
 0x7e2   :  { %3819 = vmatpush3.bf16.msra.mxu0 %v4096_v61 }
 0x7e3   :  { %v689_v54 = vsel %vm179_vm2, %v685_v53, 0.0  ;;  %3820 = vmatprep.subr.bf16.mxu0 %v4292_v1 }
 0x7e4   :  { %690 = vadd.xlane.f32.xlu1 %v689_v54 }
 0x7e6   :  { %3821 = vmatpush3.bf16.msra.mxu0 %v4097_v3 }
 0x7e7   :  { %3838 = vmatprep.subr.bf16.mxu0 %v4292_v1 }
 0x869   :  { %v688_v55 = vpop.xlane.xlu0 %687 }
 0x86a   :  { %v692_v56 = vmul.f32 0.03125, %v688_v55 }
 0x86c   :  { %v694_v57 = vsub.f32 %v684_v48, %v692_v56 }
 0x86d   :  { %v691_v58 = vpop.xlane.xlu1 %690 }
 0x86e   :  { %v693_v59 = vmul.f32 0.03125, %v691_v58  ;;  %v696_v62 = vmul.f32 %v694_v57, %v694_v57 }
 0x870   :  { %v695_v63 = vsub.f32 %v685_v53, %v693_v59  ;;  %v698_v60 = vsel %vm179_vm2, %v696_v62, 0.0  ;;  %v4607_v62 = vsub.s32 3, %v4433_v10 }
 0x871   :  { %699 = vadd.xlane.f32.xlu0 %v698_v60 }
 0x872   :  { %v697_v0 = vmul.f32 %v695_v63, %v695_v63 }
 0x874   :  { %v701_v2 = vsel %vm179_vm2, %v697_v0, 0.0 }
 0x875   :  { %702 = vadd.xlane.f32.xlu0 %v701_v2 }
 0x8fa   :  { %v700_v4 = vpop.xlane.xlu0 %699 }
 0x8fb   :  { %v704_v5 = vmul.f32 0.03125, %v700_v4 }
 0x8fd   :  { %v706_v6 = vadd.f32 1e-12, %v704_v5 }
 0x8fe   :  { %v703_v8 = vpop.xlane.xlu0 %702 }
 0x8ff   :  { %4156 = vrsqrt.f32 %v706_v6  ;;  %v705_v9 = vmul.f32 0.03125, %v703_v8 }
 0x901   :  { %v707_v11 = vadd.f32 1e-12, %v705_v9 }
 0x903   :  { %4158 = vrsqrt.f32 %v707_v11 }
 0x90c   :  { %v4157_v13 = vpop.eup %4156 }
 0x90d   :  { %v710_v15 = vmul.f32 %v4157_v13, %v694_v57 }
 0x90f   :  { %v716_v21 = vmul.f32 %v715_v17, %v710_v15 }
 0x910   :  { %v4159_v7 = vpop.eup %4158 }
 0x911   :  { %v711_v20 = vmul.f32 %v4159_v7, %v695_v63  ;;  %v722_v25 = vadd.f32 %v721_v22, %v716_v21  ;;  %v822_v63 = vrot.slane %v4553_v43, %v4607_v62 }
 0x913   :  { %v717_v23 = vmul.f32 %v715_v17, %v711_v20 }
 0x915   :  { %v723_v26 = vadd.f32 %v721_v22, %v717_v23 }
 0x917   :  { %v724_v27 = vpack.c.bf16 %v723_v26, %v722_v25 }
 0x919   :  { %3823 = vmatmul.mubr.msk.bf16.vlgmr.msra.gmra.mxu0 %vm179_vm2, %v724_v27  ;;  %v4103_v27 = vld [vmem:[%s5155_s7 + $0x10] sm:$0xff]  }
 0x91a   :  { %3842 = vmatprep.mubr.msk.bf16.mxu0 %vm4293_vm0, %v4292_v1 }
 0x9d9   :  { %v785_v34 = vpop.f32.mrf.mxu0 }
 0x9da   :  { %v786_v35 = vadd.f32 %v3493_v33, %v785_v34 }
 0x9db   :  { %v3824_v36 = vpop.f32.mrf.mxu0 }
 0x9dc   :  { %v794_v37 = vmul.f32 0.044715, %v786_v35  ;;  %v792_v54 = vmul.f32 0.5, %v786_v35 }
 0x9dd   :  { %v788_v38 = vpop.f32.mrf.mxu0 }
 0x9de   :  { %v796_v39 = vmul.f32 %v794_v37, %v786_v35  ;;  %v789_v40 = vadd.f32 %v3493_v33, %v788_v38 }
 0x9df   :  { %v3825_v41 = vpop.f32.mrf.mxu0 }
 0x9e0   :  { %v798_v42 = vmul.f32 %v796_v39, %v786_v35  ;;  %v795_v44 = vmul.f32 0.044715, %v789_v40  ;;  %v793_v55 = vmul.f32 0.5, %v789_v40  ;;  %v4629_v39 = vsub.s32 5, %v4433_v10 }
 0x9e2   :  { %v800_v45 = vadd.f32 %v798_v42, %v786_v35  ;;  %v797_v46 = vmul.f32 %v795_v44, %v789_v40  ;;  %v4624_v35 = vsub.s32 4, %v4433_v10  ;;  %v928_v44 = vrot.slane %v4553_v43, %v4629_v39  ;;  %v3508_v10 = vld [vmem:[%s5156_s8 + $0x1] ss:$0 sm:$0xff] }
 0x9e4   :  { %v802_v47 = vmul.f32 0.7978846, %v800_v45  ;;  %v799_v48 = vmul.f32 %v797_v46, %v789_v40  ;;  %v922_v38 = vrot.slane %v4553_v43, %v4624_v35 }
 0x9e6   :  { %4160 = vtanh.f32 %v802_v47  ;;  %v801_v49 = vadd.f32 %v799_v48, %v789_v40 }
 0x9e8   :  { %v803_v50 = vmul.f32 0.7978846, %v801_v49 }
 0x9ea   :  { %4162 = vtanh.f32 %v803_v50 }
 0x9f3   :  { %v4161_v51 = vpop.eup %4160 }
 0x9f4   :  { %v806_v52 = vadd.f32 1.0, %v4161_v51 }
 0x9f6   :  { %v808_v57 = vmul.f32 %v806_v52, %v792_v54 }
 0x9f7   :  { %v4163_v53 = vpop.eup %4162 }
 0x9f8   :  { %v807_v56 = vadd.f32 1.0, %v4163_v53 }
 0x9fa   :  { %v809_v58 = vmul.f32 %v807_v56, %v793_v55 }
 0x9fc   :  { %v810_v59 = vpack.c.bf16 %v809_v58, %v808_v57 }
 0x9fe   :  { %3835 = vmatmul.mubr.msk.bf16.vlgmr.msra.gmra.mxu1 %vm130_vm1, %v810_v59 }
 0x9ff   :  { %3854 = vmatprep.mubr.msk.bf16.mxu1 %vm4293_vm0, %v4292_v1 }
 0xabe   :  { %v884_v60 = vpop.f32.mrf.mxu1 }
 0xabf   :  { %v885_v0 = vadd.f32 %v884_v60, %v822_v63 }
 0xac0   :  { %v3836_v2 = vpop.f32.mrf.mxu1 }
 0xac1   :  { %v891_v61 = vadd.f32 %v885_v0, %v722_v25 }
 0xac2   :  { %v887_v3 = vpop.f32.mrf.mxu1 }
 0xac3   :  { %v888_v4 = vadd.f32 %v887_v3, %v822_v63  ;;  %v893_v5 = vsel %vm179_vm2, %v891_v61, 0.0 }
 0xac4   :  { %894 = vadd.xlane.f32.xlu1 %v893_v5  ;;  %v3837_v6 = vpop.f32.mrf.mxu1 }
 0xac5   :  { %v892_v8 = vadd.f32 %v888_v4, %v723_v26  ;;  %v4102_v26 = vld [vmem:[%s5155_s7 + $0x18] sm:$0xff]  }
 0xac6   :  { %3839 = vmatpush3.bf16.msra.mxu0 %v4102_v26 }
 0xac7   :  { %v896_v9 = vsel %vm179_vm2, %v892_v8, 0.0  ;;  %3840 = vmatprep.subr.bf16.mxu0 %v4292_v1 }
 0xac8   :  { %897 = vadd.xlane.f32.xlu0 %v896_v9 }
 0xaca   :  { %3841 = vmatpush3.bf16.msra.mxu0 %v4103_v27 }
 0xacb   :  { %3846 = vmatprep.subr.bf16.mxu0 %v4292_v1 }
 0xb4d   :  { %v895_v11 = vpop.xlane.xlu1 %894 }
 0xb4e   :  { %v899_v13 = vmul.f32 0.03125, %v895_v11 }
 0xb50   :  { %v901_v15 = vsub.f32 %v891_v61, %v899_v13 }
 0xb51   :  { %v898_v17 = vpop.xlane.xlu0 %897 }
 0xb52   :  { %v900_v7 = vmul.f32 0.03125, %v898_v17  ;;  %v903_v20 = vmul.f32 %v901_v15, %v901_v15 }
 0xb54   :  { %v902_v21 = vsub.f32 %v892_v8, %v900_v7  ;;  %v905_v22 = vsel %vm179_vm2, %v903_v20, 0.0 }
 0xb55   :  { %906 = vadd.xlane.f32.xlu1 %v905_v22 }
 0xb56   :  { %v904_v23 = vmul.f32 %v902_v21, %v902_v21 }
 0xb58   :  { %v908_v25 = vsel %vm179_vm2, %v904_v23, 0.0 }
 0xb59   :  { %909 = vadd.xlane.f32.xlu0 %v908_v25 }
 0xbde   :  { %v907_v28 = vpop.xlane.xlu1 %906 }
 0xbdf   :  { %v911_v30 = vmul.f32 0.03125, %v907_v28 }
 0xbe1   :  { %v913_v31 = vadd.f32 1e-12, %v911_v30 }
 0xbe2   :  { %v910_v32 = vpop.xlane.xlu0 %909 }
 0xbe3   :  { %4164 = vrsqrt.f32 %v913_v31  ;;  %v912_v33 = vmul.f32 0.03125, %v910_v32 }
 0xbe5   :  { %v914_v34 = vadd.f32 1e-12, %v912_v33 }
 0xbe7   :  { %4166 = vrsqrt.f32 %v914_v34 }
 0xbf0   :  { %v4165_v36 = vpop.eup %4164 }
 0xbf1   :  { %v917_v37 = vmul.f32 %v4165_v36, %v901_v15 }
 0xbf3   :  { %v923_v42 = vmul.f32 %v922_v38, %v917_v37 }
 0xbf4   :  { %v4167_v40 = vpop.eup %4166 }
 0xbf5   :  { %v918_v41 = vmul.f32 %v4167_v40, %v902_v21  ;;  %v4633_v46 = vadd.f32 %v928_v44, %v923_v42 }
 0xbf7   :  { %v924_v45 = vmul.f32 %v922_v38, %v918_v41 }
 0xbf9   :  { %v4635_v47 = vadd.f32 %v928_v44, %v924_v45 }
 0xbfb   :  { %v933_v48 = vpack.c.bf16 %v4635_v47, %v4633_v46 }
 0xbfd   :  { %3843 = vmatmul.mubr.msk.bf16.vlgmr.msra.gmra.mxu0 %vm179_vm2, %v933_v48 }
 0xbfe   :  { %3848 = vmatprep.mubr.msk.bf16.mxu0 %vm4293_vm0, %v4292_v1 }
 0xcbd   :  { %v996_v49 = vpop.f32.mrf.mxu0 }
 0xcbe   :  { %v997_v50 = vadd.f32 %v3508_v10, %v996_v49 }
 0xcbf   :  { %v3844_v43 = vpop.f32.mrf.mxu0 }
 0xcc0   :  { %1006 = vrot.lane.b32.xlu1 %v997_v50, %s4295_s30 }
 0xcc1   :  { %v999_v51 = vpop.f32.mrf.mxu0 }
 0xcc2   :  { %v1000_v52 = vadd.f32 %v3508_v10, %v999_v51 }
 0xcc3   :  { %v3845_v53 = vpop.f32.mrf.mxu0 }
 0xcc4   :  { %1164 = vrot.lane.b32.xlu1 %v997_v50, %s4297_s19  ;;  %1008 = vrot.lane.b32.xlu0 %v1000_v52, %s4295_s30  ;;  %v4648_v54 = vpack.c.bf16 %v1000_v52, %v997_v50 }
 0xcc8   :  { %1166 = vrot.lane.b32.xlu1 %v1000_v52, %s4297_s19  ;;  %1203 = vrot.lane.b32.xlu0 %v4648_v54, %s4296_s0 }
 0xd32   :  { %v1007_v55 = vpop.permute.xlu1 %1006 }
 0xd33   :  { %1012 = vxpose.xlu1.b32.start [1/2] (short) (narrow) %v1007_v55, 16 }
 0xd36   :  { %v1165_v56 = vpop.permute.xlu1 %1164  ;;  %v1009_v57 = vpop.permute.xlu0 %1008 }
 0xd37   :  { %1013 = vxpose.xlu1.b32.end [2/2] (short) (narrow) %v1009_v57, 16  ;;  %1170 = vxpose.xlu0.b32.start [1/2] (short) (narrow) %v1165_v56, 16 }
 0xd3a   :  { %v1167_v58 = vpop.permute.xlu1 %1166  ;;  %v1204_v59 = vpop.permute.xlu0 %1203 }
 0xd3b   :  { %1171 = vxpose.xlu0.b32.end [2/2] (short) (narrow) %v1167_v58, 16 }
 0xdaf   :  { %v1028_v63 = vpop.trf.xlu1 }
 0xdb3   :  { %v1029_v60 = vpop.trf.xlu1  ;;  %v1186_v0 = vpop.trf.xlu0 }
 0xdb4   :  { %v1044_v2 = vpack.c.bf16 %v1029_v60, %v1028_v63 }
 0xdb6   :  { %3847 = vmatpush3.bf16.msra.mxu0 %v1044_v2 }
 0xdb7   :  { %v1187_v61 = vpop.trf.xlu0  ;;  %3858 = vmatprep.subr.bf16.mxu0 %v4292_v1 }
 0xdb8   :  { %v1202_v3 = vpack.c.bf16 %v1187_v61, %v1186_v0 }
 0xdb9   :  { %3849 = vmatmul.mubr.msk.bf16.vlgmr.msra.gmra.mxu0 %vm330_vm3, %v4648_v54 }
 0xdba   :  { %3859 = vmatpush3.bf16.msra.mxu0 %v1202_v3  ;;  %3860 = vmatprep.mubr.msk.bf16.mxu0 %vm4293_vm0, %v4292_v1 }
 0xdbb   :  { %3870 = vmatprep.subr.bf16.mxu0 %v4292_v1 }
 0xdc1   :  { %3861 = vmatmul.mubr.msk.bf16.vlgmr.msra.gmra.mxu0 %vm330_vm3, %v1204_v59 }
 0xdc2   :  { %3874 = vmatprep.mubr.msk.bf16.mxu0 %vm4293_vm0, %v4292_v1 }
 0xe79   :  { %v1082_v4 = vpop.f32.mrf.mxu0 }
 0xe7a   :  { %v1089_v5 = vmul.f32 0.25, %v1082_v4 }
 0xe7b   :  { %v3850_v6 = vpop.f32.mrf.mxu0 }
 0xe7c   :  { %v1091_v8 = vadd.f32 %v1089_v5, %v4505_v24 }
 0xe7d   :  { %v1085_v9 = vpop.f32.mrf.mxu0 }
 0xe7e   :  { %v1090_v11 = vmul.f32 0.25, %v1085_v9  ;;  %v1093_v13 = vsel %vm330_vm3, %v1091_v8, -inf }
 0xe7f   :  { %1094 = vmax.xlane.f32.xlu0 %v1093_v13  ;;  %v3851_v15 = vpop.f32.mrf.mxu0  ;;  %v4105_v13 = vld [vmem:[%s5157_s9 + $0x10] sm:$0xff]  }
 0xe80   :  { %v1092_v17 = vadd.f32 %v1090_v11, %v4511_v29 }
 0xe81   :  { %v1242_v7 = vpop.f32.mrf.mxu0 }
 0xe82   :  { %v1249_v20 = vmul.f32 0.25, %v1242_v7  ;;  %v1096_v21 = vsel %vm330_vm3, %v1092_v17, -inf }
 0xe83   :  { %1097 = vmax.xlane.f32.xlu1 %v1096_v21  ;;  %v3862_v22 = vpop.f32.mrf.mxu0 }
 0xe84   :  { %v1251_v23 = vadd.f32 %v1249_v20, %v4505_v24 }
 0xe85   :  { %v1245_v25 = vpop.f32.mrf.mxu0 }
 0xe86   :  { %v1250_v26 = vmul.f32 0.25, %v1245_v25  ;;  %v1253_v27 = vsel %vm330_vm3, %v1251_v23, -inf }
 0xe87   :  { %1254 = vmax.xlane.f32.xlu0 %v1253_v27  ;;  %v3863_v28 = vpop.f32.mrf.mxu0 }
 0xe88   :  { %v1252_v30 = vadd.f32 %v1250_v26, %v4511_v29 }
 0xe8a   :  { %v1256_v31 = vsel %vm330_vm3, %v1252_v30, -inf }
 0xe8b   :  { %1257 = vmax.xlane.f32.xlu1 %v1256_v31 }
 0xf08   :  { %v1095_v32 = vpop.xlane.xlu0 %1094 }
 0xf09   :  { %v1099_v33 = vsub.f32 %v1091_v8, %v1095_v32  ;;  %v4104_v8 = vld [vmem:[%s5157_s9 + $0x18] sm:$0xff]   ;;  %v4703_v32 = vld [vmem:[%s5161_s13 + $0x8] sm:$0x3f] }
 0xf0a   :  { %3871 = vmatpush3.bf16.msra.mxu0 %v4104_v8 }
 0xf0b   :  { %v1101_v34 = vmul.f32 1.442695, %v1099_v33  ;;  %3872 = vmatprep.subr.bf16.mxu0 %v4292_v1  ;;  %v1342_v33 = vrot.slane %v4703_v32, %v4442_v14 }
 0xf0c   :  { %v1098_v36 = vpop.xlane.xlu1 %1097 }
 0xf0d   :  { %4168 = vpow2.f32 %v1101_v34  ;;  %v1100_v37 = vsub.f32 %v1092_v17, %v1098_v36 }
 0xf0e   :  { %3873 = vmatpush3.bf16.msra.mxu0 %v4105_v13 }
 0xf0f   :  { %v1103_v38 = vmul.f32 1.442695, %v1100_v37  ;;  %3886 = vmatprep.subr.bf16.mxu0 %v4292_v1 }
 0xf10   :  { %v1255_v40 = vpop.xlane.xlu0 %1254 }
 0xf11   :  { %4170 = vpow2.f32 %v1103_v38  ;;  %v1259_v24 = vsub.f32 %v1251_v23, %v1255_v40 }
 0xf13   :  { %v1261_v41 = vmul.f32 1.442695, %v1259_v24 }
 0xf14   :  { %v1258_v42 = vpop.xlane.xlu1 %1257 }
 0xf15   :  { %4172 = vpow2.f32 %v1261_v41  ;;  %v1260_v44 = vsub.f32 %v1252_v30, %v1258_v42 }
 0xf17   :  { %v1263_v45 = vmul.f32 1.442695, %v1260_v44 }
 0xf19   :  { %4174 = vpow2.f32 %v1263_v45 }
 0xf1a   :  { %v4169_v29 = vpop.eup %4168 }
 0xf1b   :  { %v1105_v48 = vsel %vm330_vm3, %v4169_v29, 0.0 }
 0xf1c   :  { %1106 = vadd.xlane.f32.xlu0 %v1105_v48 }
 0xf1e   :  { %v4171_v10 = vpop.eup %4170 }
 0xf1f   :  { %v1108_v49 = vsel %vm330_vm3, %v4171_v10, 0.0 }
 0xf20   :  { %1109 = vadd.xlane.f32.xlu1 %v1108_v49 }
 0xf22   :  { %v4173_v50 = vpop.eup %4172 }
 0xf23   :  { %v1265_v43 = vsel %vm330_vm3, %v4173_v50, 0.0 }
 0xf24   :  { %1266 = vadd.xlane.f32.xlu0 %v1265_v43 }
 0xf26   :  { %v4175_v51 = vpop.eup %4174 }
 0xf27   :  { %v1268_v52 = vsel %vm330_vm3, %v4175_v51, 0.0 }
 0xf28   :  { %1269 = vadd.xlane.f32.xlu1 %v1268_v52 }
 0xf39   :  { %1276 = vrot.lane.b32.xlu1 %v4648_v54, %s4298_s23 }
 0xf3a   :  { %1117 = vrot.lane.b32.xlu0 %v4648_v54, %s4299_s24 }
 0xfa5   :  { %v1107_v53 = vpop.xlane.xlu0 %1106 }
 0xfa6   :  { %4176 = vrcp.f32 %v1107_v53 }
 0xfa9   :  { %v1110_v55 = vpop.xlane.xlu1 %1109 }
 0xfaa   :  { %4178 = vrcp.f32 %v1110_v55  ;;  %v4107_v55 = vld [vmem:[%s5158_s10 + $0x10] sm:$0xff]  }
 0xfad   :  { %v1267_v56 = vpop.xlane.xlu0 %1266 }
 0xfae   :  { %4180 = vrcp.f32 %v1267_v56 }
 0xfb1   :  { %v1118_v57 = vpop.permute.xlu0 %1117  ;;  %v1270_v58 = vpop.xlane.xlu1 %1269 }
 0xfb2   :  { %4182 = vrcp.f32 %v1270_v58  ;;  %3853 = vmatpush3.bf16.msra.mxu1 %v1118_v57 }
 0xfb3   :  { %3864 = vmatprep.subr.bf16.mxu1 %v4292_v1  ;;  %v4177_v59 = vpop.eup %4176 }
 0xfb4   :  { %v1112_v60 = vmul.f32 %v4177_v59, %v4169_v29 }
 0xfb5   :  { %v1277_v61 = vpop.permute.xlu1 %1276 }
 0xfb7   :  { %v4179_v63 = vpop.eup %4178 }
 0xfb8   :  { %v1114_v0 = vmul.f32 %v4179_v63, %v4171_v10 }
 0xfba   :  { %v1115_v2 = vpack.c.bf16 %v1114_v0, %v1112_v60 }
 0xfbb   :  { %v4181_v54 = vpop.eup %4180 }
 0xfbc   :  { %3855 = vmatmul.mubr.msk.bf16.vlgmr.msra.gmra.mxu1 %vm330_vm3, %v1115_v2  ;;  %v1272_v4 = vmul.f32 %v4181_v54, %v4173_v50 }
 0xfbd   :  { %3865 = vmatpush3.bf16.msra.mxu1 %v1277_v61  ;;  %3866 = vmatprep.mubr.msk.bf16.mxu1 %vm4293_vm0, %v4292_v1  ;;  %v1430_v61 = vrot.slane %v4703_v32, %v4572_v12 }
 0xfbe   :  { %3878 = vmatprep.subr.bf16.mxu1 %v4292_v1 }
 0xfbf   :  { %v4183_v3 = vpop.eup %4182 }
 0xfc0   :  { %v1274_v5 = vmul.f32 %v4183_v3, %v4175_v51 }
 0xfc2   :  { %v1275_v6 = vpack.c.bf16 %v1274_v5, %v1272_v4  ;;  %v1436_v5 = vrot.slane %v4703_v32, %v4577_v18 }
 0xfc4   :  { %3867 = vmatmul.mubr.msk.bf16.vlgmr.msra.gmra.mxu1 %vm330_vm3, %v1275_v6 }
 0xfc5   :  { %3882 = vmatprep.mubr.msk.bf16.mxu1 %vm4293_vm0, %v4292_v1 }
0x107c   :  { %v1157_v9 = vpop.f32.mrf.mxu1 }
0x107e   :  { %v3856_v11 = vpop.f32.mrf.mxu1 }
0x107f   :  { %v4108_v11 = vld [vmem:[%s5151_s3 + $0x38] sm:$0xff]  }
0x1080   :  { %v1160_v15 = vpop.f32.mrf.mxu1 }
0x1082   :  { %v3857_v17 = vpop.f32.mrf.mxu1 }
0x1083   :  { %v4110_v17 = vld [vmem:[%s5151_s3 + $0x28] sm:$0xff]  }
0x1084   :  { %v1316_v7 = vpop.f32.mrf.mxu1 }
0x1086   :  { %v3868_v20 = vpop.f32.mrf.mxu1 }
0x1087   :  { %v4266_v20 = vld [vmem:[%s5176_s27] sm:$0xff]  }
0x1088   :  { %v1319_v21 = vpop.f32.mrf.mxu1 }
0x1089   :  { %v4070_v22 = vpack.i.bf16 %v1319_v21, %v1316_v7  ;;  %v4111_v7 = vld [vmem:[%s5151_s3 + $0x20] sm:$0xff]   ;;  %v4112_v21 = vld [vmem:[%s5160_s12 + $0x38] sm:$0xff]  }
0x108a   :  { %v3869_v23 = vpop.f32.mrf.mxu1 }
0x108b   :  { %4071 = vrot.lane.b32.xlu1 %v4070_v22, %s5178_s2  ;;  %v4113_v22 = vld [vmem:[%s5160_s12 + $0x30] sm:$0xff]   ;;  %v4114_v23 = vld [vmem:[%s5160_s12 + $0x28] sm:$0xff]  }
0x10fd   :  { %v4072_v25 = vpop.permute.xlu1 %4071 }
0x10fe   :  { %v4074_v26 = vunpack.i.h.bf16 %v4072_v25  ;;  %v4073_v27 = vunpack.i.l.bf16 %v4072_v25  ;;  %v4115_v25 = vld [vmem:[%s5160_s12 + $0x20] sm:$0xff]  }
0x1100   :  { %v1332_v28 = vsel %vm330_vm3, %v1160_v15, %v4074_v26  ;;  %v1331_v30 = vsel %vm330_vm3, %v1157_v9, %v4073_v27  ;;  %v4109_v15 = vld [vmem:[%s5151_s3 + $0x30] sm:$0xff]   ;;  %v3528_v26 = vld [vmem:[%s5159_s11 + $0x1] ss:$0 sm:$0xff]  ;;  %s4270_s3 = scalar_lea.vmem %s3467_s29, 16 }
0x1101   :  { %v1333_v31 = vpack.c.bf16 %v1332_v28, %v1331_v30  ;;  %v3554_v30 = vld [vmem:[%s5153_s5 + $0x2] sm:$0x1]  ;;  %p4271_p0 = scmp.ne.s32.totalorder %s3467_s29, %s4270_s3  ;;  %p4276_p2 = scmp.lt.s32.totalorder %s4274_s20, %s4270_s3 }
0x1103   :  { %3875 = vmatmul.mubr.msk.bf16.vlgmr.msra.gmra.mxu0 %vm179_vm2, %v1333_v31  ;;  %v3555_v31 = vld [vmem:[%s5153_s5 + $0x3] sm:$0x1]  ;;  %p4277_p3 = por %p4276_p2, %p4275_p1 }
0x1104   :  { %3894 = vmatprep.mubr.msk.bf16.mxu0 %vm4293_vm0, %v4292_v1  ;;  %3887 = vmatpush3.bf16.msra.mxu0 %v4112_v21 }
0x1105   :  { %3888 = vmatprep.subr.bf16.mxu0 %v4292_v1  ;;  %p4278_p4 = pnand %p4277_p3, %p4271_p0 }
0x1108   :  { %3889 = vmatpush3.bf16.msra.mxu0 %v4113_v22 }
0x1109   :  { %3890 = vmatprep.subr.bf16.mxu0 %v4292_v1 }
0x110c   :  { %3891 = vmatpush3.bf16.msra.mxu0 %v4114_v23 }
0x110d   :  { %3892 = vmatprep.subr.bf16.mxu0 %v4292_v1 }
0x1110   :  { %3893 = vmatpush3.bf16.msra.mxu0 %v4115_v25 }
0x1111   :  { %3910 = vmatprep.subr.bf16.mxu0 %v4292_v1 }
0x11c3   :  { %v1392_v34 = vpop.f32.mrf.mxu0 }
0x11c4   :  { %v1393_v36 = vadd.f32 %v1392_v34, %v1342_v33 }
0x11c5   :  { %v3876_v37 = vpop.f32.mrf.mxu0 }
0x11c6   :  { %v1399_v38 = vadd.f32 %v1393_v36, %v4633_v46  ;;  %v1663_v37 = vsub.f32 %v3555_v31, %v3554_v30 }
0x11c7   :  { %v1395_v40 = vpop.f32.mrf.mxu0 }
0x11c8   :  { %v1396_v24 = vadd.f32 %v1395_v40, %v1342_v33  ;;  %v1401_v41 = vsel %vm179_vm2, %v1399_v38, 0.0 }
0x11c9   :  { %1402 = vadd.xlane.f32.xlu0 %v1401_v41  ;;  %v3877_v42 = vpop.f32.mrf.mxu0 }
0x11ca   :  { %v1400_v44 = vadd.f32 %v1396_v24, %v4635_v47  ;;  %v4106_v47 = vld [vmem:[%s5158_s10 + $0x18] sm:$0xff]  }
0x11cb   :  { %3879 = vmatpush3.bf16.msra.mxu1 %v4106_v47 }
0x11cc   :  { %v1404_v45 = vsel %vm179_vm2, %v1400_v44, 0.0  ;;  %3880 = vmatprep.subr.bf16.mxu1 %v4292_v1 }
0x11cd   :  { %1405 = vadd.xlane.f32.xlu1 %v1404_v45 }
0x11cf   :  { %3881 = vmatpush3.bf16.msra.mxu1 %v4107_v55 }
0x11d0   :  { %3898 = vmatprep.subr.bf16.mxu1 %v4292_v1 }
0x1252   :  { %v1403_v29 = vpop.xlane.xlu0 %1402 }
0x1253   :  { %v1407_v48 = vmul.f32 0.03125, %v1403_v29 }
0x1255   :  { %v1409_v10 = vsub.f32 %v1399_v38, %v1407_v48 }
0x1256   :  { %v1406_v49 = vpop.xlane.xlu1 %1405 }
0x1257   :  { %v1408_v50 = vmul.f32 0.03125, %v1406_v49  ;;  %v1411_v43 = vmul.f32 %v1409_v10, %v1409_v10 }
0x1259   :  { %v1410_v51 = vsub.f32 %v1400_v44, %v1408_v50  ;;  %v1413_v46 = vsel %vm179_vm2, %v1411_v43, 0.0  ;;  %v1667_v44 = vrot.slane %v1663_v37, %v4442_v14  ;;  %v1673_v43 = vrot.slane %v3554_v30, %v4442_v14  ;;  %v4117_v30 = vld [vmem:[%s5155_s7 + $0x20] sm:$0xff]  }
0x125a   :  { %1414 = vadd.xlane.f32.xlu0 %v1413_v46 }
0x125b   :  { %v1412_v52 = vmul.f32 %v1410_v51, %v1410_v51  ;;  %v1668_v49 = vmul.f32 %v1667_v44, %v4445_v16 }
0x125d   :  { %v1416_v53 = vsel %vm179_vm2, %v1412_v52, 0.0  ;;  %v1674_v55 = vadd.f32 %v1673_v43, %v1668_v49 }
0x125e   :  { %1417 = vadd.xlane.f32.xlu0 %v1416_v53  ;;  %v1669_v53 = vmul.f32 %v1667_v44, %v4449_v19 }
0x12e3   :  { %v1415_v56 = vpop.xlane.xlu0 %1414 }
0x12e4   :  { %v1419_v57 = vmul.f32 0.03125, %v1415_v56 }
0x12e6   :  { %v1421_v58 = vadd.f32 1e-12, %v1419_v57 }
0x12e7   :  { %v1418_v59 = vpop.xlane.xlu0 %1417 }
0x12e8   :  { %4184 = vrsqrt.f32 %v1421_v58  ;;  %v1420_v63 = vmul.f32 0.03125, %v1418_v59 }
0x12ea   :  { %v1422_v60 = vadd.f32 1e-12, %v1420_v63  ;;  %v1675_v63 = vadd.f32 %v1673_v43, %v1669_v53  ;;  %v3564_v43 = vld [vmem:[%s5154_s6 + $0x3] ss:$0 sm:$0xff] }
0x12ec   :  { %4186 = vrsqrt.f32 %v1422_v60 }
0x12f5   :  { %v4185_v0 = vpop.eup %4184 }
0x12f6   :  { %v1425_v2 = vmul.f32 %v4185_v0, %v1409_v10 }
0x12f8   :  { %v1431_v4 = vmul.f32 %v1430_v61, %v1425_v2 }
0x12f9   :  { %v4187_v54 = vpop.eup %4186 }
0x12fa   :  { %v1426_v3 = vmul.f32 %v4187_v54, %v1410_v51  ;;  %v4725_v8 = vadd.f32 %v1436_v5, %v1431_v4  ;;  %v3553_v51 = vld [vmem:[%s5152_s4 + $0x10] sm:$0xff] }
0x12fc   :  { %v1432_v6 = vmul.f32 %v1430_v61, %v1426_v3 }
0x12fe   :  { %v4727_v9 = vadd.f32 %v1436_v5, %v1432_v6 }
0x1300   :  { %v1439_v13 = vpack.c.bf16 %v4727_v9, %v4725_v8 }
0x1302   :  { %3883 = vmatmul.mubr.msk.bf16.vlgmr.msra.gmra.mxu1 %vm179_vm2, %v1439_v13 }
0x1303   :  { %3899 = vmatpush3.bf16.msra.mxu1 %v4108_v11  ;;  %3906 = vmatprep.mubr.msk.bf16.mxu1 %vm4293_vm0, %v4292_v1 }
0x1304   :  { %3900 = vmatprep.subr.bf16.mxu1 %v4292_v1 }
0x1307   :  { %3901 = vmatpush3.bf16.msra.mxu1 %v4109_v15 }
0x1308   :  { %3902 = vmatprep.subr.bf16.mxu1 %v4292_v1 }
0x130b   :  { %3903 = vmatpush3.bf16.msra.mxu1 %v4110_v17 }
0x130c   :  { %3904 = vmatprep.subr.bf16.mxu1 %v4292_v1 }
0x130f   :  { %3905 = vmatpush3.bf16.msra.mxu1 %v4111_v7 }
0x1310   :  { %3918 = vmatprep.subr.bf16.mxu1 %v4292_v1 }
0x1312   :  { %3907 = vmatmul.mubr.msk.bf16.vlgmr.msra.gmra.mxu1 %vm130_vm1, %v4266_v20 }
0x1313   :  { %3920 = vmatprep.mubr.msk.bf16.mxu1 %vm4293_vm0, %v4292_v1 }
0x13c2   :  { %v1502_v27 = vpop.f32.mrf.mxu1 }
0x13c3   :  { %v1503_v28 = vadd.f32 %v3528_v26, %v1502_v27 }
0x13c4   :  { %v3884_v33 = vpop.f32.mrf.mxu1 }
0x13c5   :  { %v1511_v34 = vmul.f32 0.044715, %v1503_v28  ;;  %v1509_v19 = vmul.f32 0.5, %v1503_v28 }
0x13c6   :  { %v1505_v36 = vpop.f32.mrf.mxu1 }
0x13c7   :  { %v1513_v38 = vmul.f32 %v1511_v34, %v1503_v28  ;;  %v1506_v40 = vadd.f32 %v3528_v26, %v1505_v36  ;;  %v4807_v34 = vrot.slane %v4703_v32, %v4607_v62  ;;  %v3563_v32 = vld [vmem:[%s5154_s6 + $0x2] ss:$0 sm:$0xff] }
0x13c8   :  { %v3885_v24 = vpop.f32.mrf.mxu1 }
0x13c9   :  { %v1515_v41 = vmul.f32 %v1513_v38, %v1503_v28  ;;  %v1512_v42 = vmul.f32 0.044715, %v1506_v40  ;;  %v1510_v4 = vmul.f32 0.5, %v1506_v40 }
0x13cb   :  { %v1517_v45 = vadd.f32 %v1515_v41, %v1503_v28  ;;  %v1514_v29 = vmul.f32 %v1512_v42, %v1506_v40  ;;  %v4116_v28 = vld [vmem:[%s5155_s7 + $0x28] sm:$0xff]  }
0x13cd   :  { %v1519_v48 = vmul.f32 0.7978846, %v1517_v45  ;;  %v1516_v10 = vmul.f32 %v1514_v29, %v1506_v40 }
0x13cf   :  { %4188 = vtanh.f32 %v1519_v48  ;;  %v1518_v50 = vadd.f32 %v1516_v10, %v1506_v40 }
0x13d1   :  { %v1520_v46 = vmul.f32 0.7978846, %v1518_v50 }
0x13d2   :  { %v1734_v52 = vpop.f32.mrf.mxu1 }
0x13d3   :  { %4190 = vtanh.f32 %v1520_v46  ;;  %v1735_v47 = vadd.f32 %v3553_v51, %v1734_v52 }
0x13d4   :  { %v3908_v56 = vpop.f32.mrf.mxu1 }
0x13d5   :  { %v1741_v57 = vadd.f32 %v1735_v47, %v1674_v55  ;;  %v3571_v47 = vld [vmem:[%s5156_s8 + $0x2] ss:$0 sm:$0xff] }
0x13d6   :  { %v1737_v58 = vpop.f32.mrf.mxu1 }
0x13d7   :  { %v1738_v59 = vadd.f32 %v3553_v51, %v1737_v58  ;;  %v1746_v16 = vsel %vm179_vm2, %v1741_v57, 0.0 }
0x13d8   :  { %1747 = vadd.xlane.f32.xlu1 %v1746_v16  ;;  %v3909_v60 = vpop.f32.mrf.mxu1 }
0x13d9   :  { %v1742_v0 = vadd.f32 %v1738_v59, %v1675_v63 }
0x13db   :  { %v1749_v2 = vsel %vm179_vm2, %v1742_v0, 0.0 }
0x13dc   :  { %v4189_v61 = vpop.eup %4188  ;;  %1750 = vadd.xlane.f32.xlu0 %v1749_v2 }
0x13dd   :  { %v1523_v54 = vadd.f32 1.0, %v4189_v61 }
0x13df   :  { %v1525_v6 = vmul.f32 %v1523_v54, %v1509_v19 }
0x13e0   :  { %v4191_v3 = vpop.eup %4190 }
0x13e1   :  { %v1524_v5 = vadd.f32 1.0, %v4191_v3 }
0x13e3   :  { %v1526_v11 = vmul.f32 %v1524_v5, %v1510_v4 }
0x13e5   :  { %v1527_v13 = vpack.c.bf16 %v1526_v11, %v1525_v6 }
0x13e7   :  { %3895 = vmatmul.mubr.msk.bf16.vlgmr.msra.gmra.mxu0 %vm130_vm1, %v1527_v13 }
0x13e8   :  { %3914 = vmatprep.mubr.msk.bf16.mxu0 %vm4293_vm0, %v4292_v1  ;;  %3911 = vmatpush3.bf16.msra.mxu0 %v4116_v28 }
0x13e9   :  { %3912 = vmatprep.subr.bf16.mxu0 %v4292_v1 }
0x13ec   :  { %3913 = vmatpush3.bf16.msra.mxu0 %v4117_v30 }
0x13ed   :  { %3924 = vmatprep.subr.bf16.mxu0 %v4292_v1 }
0x1461   :  { %v1748_v15 = vpop.xlane.xlu1 %1747 }
0x1462   :  { %v1752_v17 = vmul.f32 0.03125, %v1748_v15 }
0x1464   :  { %v1754_v7 = vsub.f32 %v1741_v57, %v1752_v17 }
0x1465   :  { %v1751_v20 = vpop.xlane.xlu0 %1750 }
0x1466   :  { %v1753_v21 = vmul.f32 0.03125, %v1751_v20  ;;  %v1756_v22 = vmul.f32 %v1754_v7, %v1754_v7 }
0x1468   :  { %v1755_v23 = vsub.f32 %v1742_v0, %v1753_v21  ;;  %v1758_v25 = vsel %vm179_vm2, %v1756_v22, 0.0 }
0x1469   :  { %1759 = vadd.xlane.f32.xlu1 %v1758_v25 }
0x146a   :  { %v1757_v26 = vmul.f32 %v1755_v23, %v1755_v23 }
0x146c   :  { %v1761_v27 = vsel %vm179_vm2, %v1757_v26, 0.0  ;;  %v4857_v26 = vld [vmem:[%s5177_s21 + $0x8] sm:$0xff] }
0x146d   :  { %1762 = vadd.xlane.f32.xlu0 %v1761_v27 }
0x14a7   :  { %v4803_v31 = vpop.f32.mrf.mxu0 }
0x14a9   :  { %v3896_v33 = vpop.f32.mrf.mxu0 }
0x14ab   :  { %v1605_v36 = vpop.f32.mrf.mxu0 }
0x14ac   :  { %v4810_v37 = vadd.f32 %v1605_v36, %v4807_v34 }
0x14ad   :  { %v3897_v38 = vpop.f32.mrf.mxu0 }
0x14f2   :  { %v1760_v40 = vpop.xlane.xlu1 %1759 }
0x14f3   :  { %v1764_v24 = vmul.f32 0.03125, %v1760_v40 }
0x14f5   :  { %v1766_v41 = vadd.f32 1e-12, %v1764_v24 }
0x14f6   :  { %v1763_v42 = vpop.xlane.xlu0 %1762 }
0x14f7   :  { %4192 = vrsqrt.f32 %v1766_v41  ;;  %v1765_v44 = vmul.f32 0.03125, %v1763_v42 }
0x14f9   :  { %v1767_v45 = vadd.f32 1e-12, %v1765_v44 }
0x14fb   :  { %4194 = vrsqrt.f32 %v1767_v45 }
0x1504   :  { %v4193_v29 = vpop.eup %4192 }
0x1505   :  { %v1770_v48 = vmul.f32 %v4193_v29, %v1754_v7  ;;  %v4850_v7 = vld [vmem:[%s5177_s21] sm:$0xff] }
0x1507   :  { %v1776_v50 = vmul.f32 %v3563_v32, %v1770_v48 }
0x1508   :  { %v4195_v10 = vpop.eup %4194 }
0x1509   :  { %v1771_v49 = vmul.f32 %v4195_v10, %v1755_v23  ;;  %v4818_v46 = vadd.f32 %v3564_v43, %v1776_v50 }
0x150b   :  { %v1777_v51 = vmul.f32 %v3563_v32, %v1771_v49 }
0x150d   :  { %v4820_v52 = vadd.f32 %v3564_v43, %v1777_v51 }
0x150f   :  { %v1786_v53 = vpack.c.bf16 %v4820_v52, %v4818_v46 }
0x1511   :  { %3915 = vmatmul.mubr.msk.bf16.vlgmr.msra.gmra.mxu0 %vm179_vm2, %v1786_v53 }
0x1512   :  { %3926 = vmatprep.mubr.msk.bf16.mxu0 %vm4293_vm0, %v4292_v1 }
0x15d1   :  { %v1849_v55 = vpop.f32.mrf.mxu0 }
0x15d2   :  { %v1850_v56 = vadd.f32 %v3571_v47, %v1849_v55 }
0x15d3   :  { %v3916_v57 = vpop.f32.mrf.mxu0 }
0x15d4   :  { %1859 = vrot.lane.b32.xlu1 %v1850_v56, %s4295_s30 }
0x15d5   :  { %v1852_v58 = vpop.f32.mrf.mxu0 }
0x15d6   :  { %v1853_v59 = vadd.f32 %v3571_v47, %v1852_v58 }
0x15d7   :  { %v3917_v16 = vpop.f32.mrf.mxu0 }
0x15d8   :  { %2017 = vrot.lane.b32.xlu1 %v1850_v56, %s4297_s19  ;;  %1861 = vrot.lane.b32.xlu0 %v1853_v59, %s4295_s30  ;;  %v4833_v63 = vpack.c.bf16 %v1853_v59, %v1850_v56 }
0x15dc   :  { %2019 = vrot.lane.b32.xlu1 %v1853_v59, %s4297_s19  ;;  %2056 = vrot.lane.b32.xlu0 %v4833_v63, %s4296_s0 }
0x1646   :  { %v1860_v60 = vpop.permute.xlu1 %1859 }
0x1647   :  { %1865 = vxpose.xlu1.b32.start [1/2] (short) (narrow) %v1860_v60, 16 }
0x164a   :  { %v2018_v0 = vpop.permute.xlu1 %2017  ;;  %v1862_v2 = vpop.permute.xlu0 %1861 }
0x164b   :  { %1866 = vxpose.xlu1.b32.end [2/2] (short) (narrow) %v1862_v2, 16  ;;  %2023 = vxpose.xlu0.b32.start [1/2] (short) (narrow) %v2018_v0, 16 }
0x164e   :  { %v2020_v61 = vpop.permute.xlu1 %2019  ;;  %v2057_v54 = vpop.permute.xlu0 %2056 }
0x164f   :  { %2024 = vxpose.xlu0.b32.end [2/2] (short) (narrow) %v2020_v61, 16 }
0x16c3   :  { %v1881_v3 = vpop.trf.xlu1 }
0x16c7   :  { %v1882_v19 = vpop.trf.xlu1  ;;  %v2039_v4 = vpop.trf.xlu0 }
0x16c8   :  { %v1897_v5 = vpack.c.bf16 %v1882_v19, %v1881_v3 }
0x16ca   :  { %3919 = vmatpush3.bf16.msra.mxu1 %v1897_v5 }
0x16cb   :  { %v2040_v6 = vpop.trf.xlu0  ;;  %3930 = vmatprep.subr.bf16.mxu1 %v4292_v1 }
0x16cc   :  { %v2055_v11 = vpack.c.bf16 %v2040_v6, %v2039_v4 }
0x16cd   :  { %3921 = vmatmul.mubr.msk.bf16.vlgmr.msra.gmra.mxu1 %vm330_vm3, %v4833_v63 }
0x16ce   :  { %3931 = vmatpush3.bf16.msra.mxu1 %v2055_v11  ;;  %3932 = vmatprep.mubr.msk.bf16.mxu1 %vm4293_vm0, %v4292_v1 }
0x16cf   :  { %3942 = vmatprep.subr.bf16.mxu1 %v4292_v1 }
0x16d5   :  { %3933 = vmatmul.mubr.msk.bf16.vlgmr.msra.gmra.mxu1 %vm330_vm3, %v2057_v54 }
0x16d6   :  { %3946 = vmatprep.mubr.msk.bf16.mxu1 %vm4293_vm0, %v4292_v1 }
0x178d   :  { %v1935_v13 = vpop.f32.mrf.mxu1 }
0x178e   :  { %v1942_v15 = vmul.f32 0.25, %v1935_v13 }
0x178f   :  { %v3922_v17 = vpop.f32.mrf.mxu1 }
0x1790   :  { %v1944_v20 = vadd.f32 %v4850_v7, %v1942_v15 }
0x1791   :  { %v1938_v21 = vpop.f32.mrf.mxu1 }
0x1792   :  { %v1943_v22 = vmul.f32 0.25, %v1938_v21  ;;  %v1946_v23 = vsel %vm330_vm3, %v1944_v20, -inf }
0x1793   :  { %1947 = vmax.xlane.f32.xlu0 %v1946_v23  ;;  %v3923_v25 = vpop.f32.mrf.mxu1 }
0x1794   :  { %v1945_v27 = vadd.f32 %v4857_v26, %v1943_v22 }
0x1795   :  { %v2095_v28 = vpop.f32.mrf.mxu1 }
0x1796   :  { %v2102_v30 = vmul.f32 0.25, %v2095_v28  ;;  %v1949_v33 = vsel %vm330_vm3, %v1945_v27, -inf }
0x1797   :  { %1950 = vmax.xlane.f32.xlu1 %v1949_v33  ;;  %v3934_v36 = vpop.f32.mrf.mxu1  ;;  %v4119_v33 = vld [vmem:[%s5157_s9 + $0x20] sm:$0xff]  }
0x1798   :  { %v2104_v38 = vadd.f32 %v4850_v7, %v2102_v30 }
0x1799   :  { %v2098_v40 = vpop.f32.mrf.mxu1 }
0x179a   :  { %v2103_v24 = vmul.f32 0.25, %v2098_v40  ;;  %v2106_v41 = vsel %vm330_vm3, %v2104_v38, -inf }
0x179b   :  { %2107 = vmax.xlane.f32.xlu0 %v2106_v41  ;;  %v3935_v42 = vpop.f32.mrf.mxu1 }
0x179c   :  { %v2105_v44 = vadd.f32 %v4857_v26, %v2103_v24 }
0x179e   :  { %v2109_v45 = vsel %vm330_vm3, %v2105_v44, -inf }
0x179f   :  { %2110 = vmax.xlane.f32.xlu1 %v2109_v45 }
0x181c   :  { %v1948_v29 = vpop.xlane.xlu0 %1947 }
0x181d   :  { %v1952_v48 = vsub.f32 %v1944_v20, %v1948_v29 }
0x181f   :  { %v1954_v32 = vmul.f32 1.442695, %v1952_v48 }
0x1820   :  { %v1951_v10 = vpop.xlane.xlu1 %1950 }
0x1821   :  { %4196 = vpow2.f32 %v1954_v32  ;;  %v1953_v49 = vsub.f32 %v1945_v27, %v1951_v10  ;;  %v4118_v27 = vld [vmem:[%s5157_s9 + $0x28] sm:$0xff]  }
0x1822   :  { %3943 = vmatpush3.bf16.msra.mxu1 %v4118_v27 }
0x1823   :  { %v1956_v50 = vmul.f32 1.442695, %v1953_v49  ;;  %3944 = vmatprep.subr.bf16.mxu1 %v4292_v1 }
0x1824   :  { %v2108_v43 = vpop.xlane.xlu0 %2107 }
0x1825   :  { %4198 = vpow2.f32 %v1956_v50  ;;  %v2112_v51 = vsub.f32 %v2104_v38, %v2108_v43  ;;  %v4898_v50 = vld [vmem:[%s5161_s13 + $0x10] sm:$0x3f] }
0x1826   :  { %3945 = vmatpush3.bf16.msra.mxu1 %v4119_v33  ;;  %v2195_v43 = vrot.slane %v4898_v50, %v4442_v14  ;;  %v2289_v33 = vrot.slane %v4898_v50, %v4577_v18 }
0x1827   :  { %v2114_v53 = vmul.f32 1.442695, %v2112_v51  ;;  %3958 = vmatprep.subr.bf16.mxu1 %v4292_v1 }
0x1828   :  { %v2111_v47 = vpop.xlane.xlu1 %2110 }
0x1829   :  { %4200 = vpow2.f32 %v2114_v53  ;;  %v2113_v55 = vsub.f32 %v2105_v44, %v2111_v47 }
0x182b   :  { %v2116_v56 = vmul.f32 1.442695, %v2113_v55 }
0x182d   :  { %4202 = vpow2.f32 %v2116_v56 }
0x182e   :  { %v4197_v57 = vpop.eup %4196 }
0x182f   :  { %v1958_v58 = vsel %vm330_vm3, %v4197_v57, 0.0 }
0x1830   :  { %1959 = vadd.xlane.f32.xlu0 %v1958_v58 }
0x1832   :  { %v4199_v59 = vpop.eup %4198 }
0x1833   :  { %v1961_v16 = vsel %vm330_vm3, %v4199_v59, 0.0 }
0x1834   :  { %1962 = vadd.xlane.f32.xlu1 %v1961_v16 }
0x1836   :  { %v4201_v60 = vpop.eup %4200 }
0x1837   :  { %v2118_v0 = vsel %vm330_vm3, %v4201_v60, 0.0 }
0x1838   :  { %2119 = vadd.xlane.f32.xlu0 %v2118_v0 }
0x183a   :  { %v4203_v2 = vpop.eup %4202 }
0x183b   :  { %v2121_v61 = vsel %vm330_vm3, %v4203_v2, 0.0 }
0x183c   :  { %2122 = vadd.xlane.f32.xlu1 %v2121_v61 }
0x184d   :  { %2129 = vrot.lane.b32.xlu1 %v4833_v63, %s4298_s23 }
0x184e   :  { %1970 = vrot.lane.b32.xlu0 %v4833_v63, %s4299_s24 }
0x18b9   :  { %v1960_v54 = vpop.xlane.xlu0 %1959 }
0x18ba   :  { %4204 = vrcp.f32 %v1960_v54 }
0x18bd   :  { %v1963_v3 = vpop.xlane.xlu1 %1962 }
0x18be   :  { %4206 = vrcp.f32 %v1963_v3 }
0x18c1   :  { %v2120_v19 = vpop.xlane.xlu0 %2119 }
0x18c2   :  { %4208 = vrcp.f32 %v2120_v19 }
0x18c5   :  { %v1971_v4 = vpop.permute.xlu0 %1970  ;;  %v2123_v5 = vpop.xlane.xlu1 %2122 }
0x18c6   :  { %4210 = vrcp.f32 %v2123_v5  ;;  %3925 = vmatpush3.bf16.msra.mxu0 %v1971_v4 }
0x18c7   :  { %3936 = vmatprep.subr.bf16.mxu0 %v4292_v1  ;;  %v4205_v6 = vpop.eup %4204 }
0x18c8   :  { %v1965_v13 = vmul.f32 %v4205_v6, %v4197_v57 }
0x18c9   :  { %v2130_v20 = vpop.permute.xlu1 %2129 }
0x18cb   :  { %v4207_v11 = vpop.eup %4206 }
0x18cc   :  { %v1967_v15 = vmul.f32 %v4207_v11, %v4199_v59  ;;  %v4121_v11 = vld [vmem:[%s5158_s10 + $0x20] sm:$0xff]  }
0x18ce   :  { %v1968_v17 = vpack.c.bf16 %v1967_v15, %v1965_v13 }
0x18cf   :  { %v4209_v63 = vpop.eup %4208 }
0x18d0   :  { %3927 = vmatmul.mubr.msk.bf16.vlgmr.msra.gmra.mxu0 %vm330_vm3, %v1968_v17  ;;  %v2125_v22 = vmul.f32 %v4209_v63, %v4201_v60 }
0x18d1   :  { %3937 = vmatpush3.bf16.msra.mxu0 %v2130_v20  ;;  %3938 = vmatprep.mubr.msk.bf16.mxu0 %vm4293_vm0, %v4292_v1 }
0x18d2   :  { %3950 = vmatprep.subr.bf16.mxu0 %v4292_v1 }
0x18d3   :  { %v4211_v21 = vpop.eup %4210 }
0x18d4   :  { %v2127_v23 = vmul.f32 %v4211_v21, %v4203_v2 }
0x18d6   :  { %v2128_v25 = vpack.c.bf16 %v2127_v23, %v2125_v22 }
0x18d8   :  { %3939 = vmatmul.mubr.msk.bf16.vlgmr.msra.gmra.mxu0 %vm330_vm3, %v2128_v25  ;;  %v2283_v25 = vrot.slane %v4898_v50, %v4572_v12 }
0x18d9   :  { %3954 = vmatprep.mubr.msk.bf16.mxu0 %vm4293_vm0, %v4292_v1 }
0x1990   :  { %v2010_v28 = vpop.f32.mrf.mxu0 }
0x1992   :  { %v3928_v30 = vpop.f32.mrf.mxu0 }
0x1994   :  { %v2013_v36 = vpop.f32.mrf.mxu0 }
0x1996   :  { %v3929_v38 = vpop.f32.mrf.mxu0 }
0x1998   :  { %v2169_v40 = vpop.f32.mrf.mxu0 }
0x199a   :  { %v3940_v24 = vpop.f32.mrf.mxu0 }
0x199c   :  { %v2172_v41 = vpop.f32.mrf.mxu0 }
0x199d   :  { %v4075_v42 = vpack.i.bf16 %v2172_v41, %v2169_v40  ;;  %v4122_v41 = vld [vmem:[%s5160_s12 + $0x58] sm:$0xff]  }
0x199e   :  { %v3941_v44 = vpop.f32.mrf.mxu0 }
0x199f   :  { %4076 = vrot.lane.b32.xlu1 %v4075_v42, %s5178_s2  ;;  %v4123_v42 = vld [vmem:[%s5160_s12 + $0x50] sm:$0xff]   ;;  %v4124_v44 = vld [vmem:[%s5160_s12 + $0x48] sm:$0xff]  }
0x1a11   :  { %v4077_v45 = vpop.permute.xlu1 %4076 }
0x1a12   :  { %v4079_v29 = vunpack.i.h.bf16 %v4077_v45  ;;  %v4078_v48 = vunpack.i.l.bf16 %v4077_v45  ;;  %v4125_v45 = vld [vmem:[%s5160_s12 + $0x40] sm:$0xff]  }
0x1a14   :  { %v2185_v32 = vsel %vm330_vm3, %v2013_v36, %v4079_v29  ;;  %v2184_v10 = vsel %vm330_vm3, %v2010_v28, %v4078_v48  ;;  %v3591_v29 = vld [vmem:[%s5159_s11 + $0x2] ss:$0 sm:$0xff] }
0x1a15   :  { %v2186_v49 = vpack.c.bf16 %v2185_v32, %v2184_v10 }
0x1a17   :  { %3947 = vmatmul.mubr.msk.bf16.vlgmr.msra.gmra.mxu1 %vm179_vm2, %v2186_v49 }
0x1a18   :  { %3966 = vmatprep.mubr.msk.bf16.mxu1 %vm4293_vm0, %v4292_v1  ;;  %3959 = vmatpush3.bf16.msra.mxu1 %v4122_v41 }
0x1a19   :  { %3960 = vmatprep.subr.bf16.mxu1 %v4292_v1 }
0x1a1c   :  { %3961 = vmatpush3.bf16.msra.mxu1 %v4123_v42 }
0x1a1d   :  { %3962 = vmatprep.subr.bf16.mxu1 %v4292_v1 }
0x1a20   :  { %3963 = vmatpush3.bf16.msra.mxu1 %v4124_v44 }
0x1a21   :  { %3964 = vmatprep.subr.bf16.mxu1 %v4292_v1 }
0x1a24   :  { %3965 = vmatpush3.bf16.msra.mxu1 %v4125_v45  ;;  %v4127_v45 = vld [vmem:[%s5155_s7 + $0x30] sm:$0xff]  }
0x1a25   :  { %3984 = vmatprep.subr.bf16.mxu1 %v4292_v1 }
0x1ad7   :  { %v2245_v51 = vpop.f32.mrf.mxu1 }
0x1ad8   :  { %v2246_v53 = vadd.f32 %v2245_v51, %v2195_v43 }
0x1ad9   :  { %v3948_v47 = vpop.f32.mrf.mxu1 }
0x1ada   :  { %v2252_v55 = vadd.f32 %v2246_v53, %v4818_v46 }
0x1adb   :  { %v2248_v56 = vpop.f32.mrf.mxu1 }
0x1adc   :  { %v2249_v57 = vadd.f32 %v2248_v56, %v2195_v43  ;;  %v2254_v58 = vsel %vm179_vm2, %v2252_v55, 0.0 }
0x1add   :  { %2255 = vadd.xlane.f32.xlu0 %v2254_v58  ;;  %v3949_v59 = vpop.f32.mrf.mxu1 }
0x1ade   :  { %v2253_v16 = vadd.f32 %v2249_v57, %v4820_v52  ;;  %v4120_v52 = vld [vmem:[%s5158_s10 + $0x28] sm:$0xff]  }
0x1adf   :  { %3951 = vmatpush3.bf16.msra.mxu0 %v4120_v52  ;;  %v2393_v52 = vrot.slane %v4898_v50, %v4607_v62 }
0x1ae0   :  { %v2257_v60 = vsel %vm179_vm2, %v2253_v16, 0.0  ;;  %3952 = vmatprep.subr.bf16.mxu0 %v4292_v1 }
0x1ae1   :  { %2258 = vadd.xlane.f32.xlu1 %v2257_v60 }
0x1ae3   :  { %3953 = vmatpush3.bf16.msra.mxu0 %v4121_v11 }
0x1ae4   :  { %3970 = vmatprep.subr.bf16.mxu0 %v4292_v1 }
0x1b66   :  { %v2256_v0 = vpop.xlane.xlu0 %2255 }
0x1b67   :  { %v2260_v2 = vmul.f32 0.03125, %v2256_v0 }
0x1b69   :  { %v2262_v61 = vsub.f32 %v2252_v55, %v2260_v2 }
0x1b6a   :  { %v2259_v54 = vpop.xlane.xlu1 %2258 }
0x1b6b   :  { %v2261_v3 = vmul.f32 0.03125, %v2259_v54  ;;  %v2264_v19 = vmul.f32 %v2262_v61, %v2262_v61 }
0x1b6d   :  { %v2263_v4 = vsub.f32 %v2253_v16, %v2261_v3  ;;  %v2266_v46 = vsel %vm179_vm2, %v2264_v19, 0.0 }
0x1b6e   :  { %2267 = vadd.xlane.f32.xlu0 %v2266_v46 }
0x1b6f   :  { %v2265_v5 = vmul.f32 %v2263_v4, %v2263_v4 }
0x1b71   :  { %v2269_v6 = vsel %vm179_vm2, %v2265_v5, 0.0 }
0x1b72   :  { %2270 = vadd.xlane.f32.xlu0 %v2269_v6 }
0x1bf7   :  { %v2268_v13 = vpop.xlane.xlu0 %2267 }
0x1bf8   :  { %v2272_v15 = vmul.f32 0.03125, %v2268_v13 }
0x1bfa   :  { %v2274_v17 = vadd.f32 1e-12, %v2272_v15 }
0x1bfb   :  { %v2271_v20 = vpop.xlane.xlu0 %2270 }
0x1bfc   :  { %4212 = vrsqrt.f32 %v2274_v17  ;;  %v2273_v63 = vmul.f32 0.03125, %v2271_v20 }
0x1bfe   :  { %v2275_v21 = vadd.f32 1e-12, %v2273_v63 }
0x1c00   :  { %4214 = vrsqrt.f32 %v2275_v21 }
0x1c09   :  { %v4213_v22 = vpop.eup %4212 }
0x1c0a   :  { %v2278_v23 = vmul.f32 %v4213_v22, %v2262_v61 }
0x1c0c   :  { %v2284_v30 = vmul.f32 %v2283_v25, %v2278_v23 }
0x1c0d   :  { %v4215_v27 = vpop.eup %4214 }
0x1c0e   :  { %v2279_v28 = vmul.f32 %v4215_v27, %v2263_v4  ;;  %v2290_v38 = vadd.f32 %v2289_v33, %v2284_v30 }
0x1c10   :  { %v2285_v36 = vmul.f32 %v2283_v25, %v2279_v28 }
0x1c12   :  { %v2291_v40 = vadd.f32 %v2289_v33, %v2285_v36 }
0x1c14   :  { %v2292_v24 = vpack.c.bf16 %v2291_v40, %v2290_v38 }
0x1c16   :  { %3955 = vmatmul.mubr.msk.bf16.vlgmr.msra.gmra.mxu0 %vm179_vm2, %v2292_v24 }
0x1c17   :  { %3974 = vmatprep.mubr.msk.bf16.mxu0 %vm4293_vm0, %v4292_v1 }
0x1cd6   :  { %v2355_v48 = vpop.f32.mrf.mxu0 }
0x1cd7   :  { %v2356_v32 = vadd.f32 %v3591_v29, %v2355_v48 }
0x1cd8   :  { %v3956_v10 = vpop.f32.mrf.mxu0 }
0x1cd9   :  { %v2364_v49 = vmul.f32 0.044715, %v2356_v32  ;;  %v2362_v3 = vmul.f32 0.5, %v2356_v32 }
0x1cda   :  { %v2358_v43 = vpop.f32.mrf.mxu0 }
0x1cdb   :  { %v2366_v51 = vmul.f32 %v2364_v49, %v2356_v32  ;;  %v2359_v53 = vadd.f32 %v3591_v29, %v2358_v43 }
0x1cdc   :  { %v3957_v47 = vpop.f32.mrf.mxu0 }
0x1cdd   :  { %v2368_v55 = vmul.f32 %v2366_v51, %v2356_v32  ;;  %v2365_v56 = vmul.f32 0.044715, %v2359_v53  ;;  %v2363_v19 = vmul.f32 0.5, %v2359_v53  ;;  %v2493_v47 = vrot.slane %v4898_v50, %v4624_v35 }
0x1cdf   :  { %v2370_v57 = vadd.f32 %v2368_v55, %v2356_v32  ;;  %v2367_v58 = vmul.f32 %v2365_v56, %v2359_v53 }
0x1ce1   :  { %v2372_v59 = vmul.f32 0.7978846, %v2370_v57  ;;  %v2369_v16 = vmul.f32 %v2367_v58, %v2359_v53  ;;  %v2499_v58 = vrot.slane %v4898_v50, %v4629_v39 }
0x1ce3   :  { %4216 = vtanh.f32 %v2372_v59  ;;  %v2371_v60 = vadd.f32 %v2369_v16, %v2359_v53 }
0x1ce5   :  { %v2373_v0 = vmul.f32 0.7978846, %v2371_v60 }
0x1ce7   :  { %4218 = vtanh.f32 %v2373_v0 }
0x1cf0   :  { %v4217_v2 = vpop.eup %4216 }
0x1cf1   :  { %v2376_v61 = vadd.f32 1.0, %v4217_v2  ;;  %v3614_v2 = vld [vmem:[%s5156_s8 + $0x3] ss:$0 sm:$0xff] }
0x1cf3   :  { %v2378_v46 = vmul.f32 %v2376_v61, %v2362_v3 }
0x1cf4   :  { %v4219_v54 = vpop.eup %4218 }
0x1cf5   :  { %v2377_v4 = vadd.f32 1.0, %v4219_v54 }
0x1cf7   :  { %v2379_v5 = vmul.f32 %v2377_v4, %v2363_v19 }
0x1cf9   :  { %v2380_v6 = vpack.c.bf16 %v2379_v5, %v2378_v46 }
0x1cfb   :  { %3967 = vmatmul.mubr.msk.bf16.vlgmr.msra.gmra.mxu1 %vm130_vm1, %v2380_v6 }
0x1cfc   :  { %3986 = vmatprep.mubr.msk.bf16.mxu1 %vm4293_vm0, %v4292_v1 }
0x1dbb   :  { %v2455_v11 = vpop.f32.mrf.mxu1 }
0x1dbc   :  { %v2456_v13 = vadd.f32 %v2455_v11, %v2393_v52 }
0x1dbd   :  { %v3968_v15 = vpop.f32.mrf.mxu1 }
0x1dbe   :  { %v2462_v17 = vadd.f32 %v2456_v13, %v2290_v38 }
0x1dbf   :  { %v2458_v20 = vpop.f32.mrf.mxu1 }
0x1dc0   :  { %v2459_v63 = vadd.f32 %v2458_v20, %v2393_v52  ;;  %v2464_v21 = vsel %vm179_vm2, %v2462_v17, 0.0 }
0x1dc1   :  { %2465 = vadd.xlane.f32.xlu1 %v2464_v21  ;;  %v3969_v22 = vpop.f32.mrf.mxu1 }
0x1dc2   :  { %v2463_v23 = vadd.f32 %v2459_v63, %v2291_v40  ;;  %v4126_v40 = vld [vmem:[%s5155_s7 + $0x38] sm:$0xff]  }
0x1dc3   :  { %3971 = vmatpush3.bf16.msra.mxu0 %v4126_v40 }
0x1dc4   :  { %v2467_v25 = vsel %vm179_vm2, %v2463_v23, 0.0  ;;  %3972 = vmatprep.subr.bf16.mxu0 %v4292_v1 }
0x1dc5   :  { %2468 = vadd.xlane.f32.xlu0 %v2467_v25 }
0x1dc7   :  { %3973 = vmatpush3.bf16.msra.mxu0 %v4127_v45 }
0x1dc8   :  { %3978 = vmatprep.subr.bf16.mxu0 %v4292_v1 }
0x1e4a   :  { %v2466_v27 = vpop.xlane.xlu1 %2465 }
0x1e4b   :  { %v2470_v28 = vmul.f32 0.03125, %v2466_v27 }
0x1e4d   :  { %v2472_v30 = vsub.f32 %v2462_v17, %v2470_v28 }
0x1e4e   :  { %v2469_v33 = vpop.xlane.xlu0 %2468 }
0x1e4f   :  { %v2471_v36 = vmul.f32 0.03125, %v2469_v33  ;;  %v2474_v24 = vmul.f32 %v2472_v30, %v2472_v30 }
0x1e51   :  { %v2473_v41 = vsub.f32 %v2463_v23, %v2471_v36  ;;  %v2476_v42 = vsel %vm179_vm2, %v2474_v24, 0.0 }
0x1e52   :  { %2477 = vadd.xlane.f32.xlu1 %v2476_v42 }
0x1e53   :  { %v2475_v38 = vmul.f32 %v2473_v41, %v2473_v41 }
0x1e55   :  { %v2479_v44 = vsel %vm179_vm2, %v2475_v38, 0.0 }
0x1e56   :  { %2480 = vadd.xlane.f32.xlu0 %v2479_v44 }
0x1edb   :  { %v2478_v29 = vpop.xlane.xlu1 %2477 }
0x1edc   :  { %v2482_v48 = vmul.f32 0.03125, %v2478_v29 }
0x1ede   :  { %v2484_v32 = vadd.f32 1e-12, %v2482_v48 }
0x1edf   :  { %v2481_v10 = vpop.xlane.xlu0 %2480 }
0x1ee0   :  { %4220 = vrsqrt.f32 %v2484_v32  ;;  %v2483_v49 = vmul.f32 0.03125, %v2481_v10 }
0x1ee2   :  { %v2485_v43 = vadd.f32 1e-12, %v2483_v49 }
0x1ee4   :  { %4222 = vrsqrt.f32 %v2485_v43 }
0x1eed   :  { %v4221_v51 = vpop.eup %4220 }
0x1eee   :  { %v2488_v53 = vmul.f32 %v4221_v51, %v2472_v30 }
0x1ef0   :  { %v2494_v57 = vmul.f32 %v2493_v47, %v2488_v53 }
0x1ef1   :  { %v4223_v55 = vpop.eup %4222 }
0x1ef2   :  { %v2489_v56 = vmul.f32 %v4223_v55, %v2473_v41  ;;  %v4963_v16 = vadd.f32 %v2499_v58, %v2494_v57 }
0x1ef4   :  { %v2495_v59 = vmul.f32 %v2493_v47, %v2489_v56 }
0x1ef6   :  { %v4965_v60 = vadd.f32 %v2499_v58, %v2495_v59 }
0x1ef8   :  { %v2504_v0 = vpack.c.bf16 %v4965_v60, %v4963_v16 }
0x1efa   :  { %3975 = vmatmul.mubr.msk.bf16.vlgmr.msra.gmra.mxu0 %vm179_vm2, %v2504_v0 }
0x1efb   :  { %3980 = vmatprep.mubr.msk.bf16.mxu0 %vm4293_vm0, %v4292_v1 }
0x1fba   :  { %v2567_v61 = vpop.f32.mrf.mxu0 }
0x1fbb   :  { %v2568_v54 = vadd.f32 %v3614_v2, %v2567_v61 }
0x1fbc   :  { %v3976_v50 = vpop.f32.mrf.mxu0 }
0x1fbd   :  { %2577 = vrot.lane.b32.xlu1 %v2568_v54, %s4295_s30 }
0x1fbe   :  { %v2570_v3 = vpop.f32.mrf.mxu0 }
0x1fbf   :  { %v2571_v19 = vadd.f32 %v3614_v2, %v2570_v3 }
0x1fc0   :  { %v3977_v4 = vpop.f32.mrf.mxu0 }
0x1fc1   :  { %2735 = vrot.lane.b32.xlu1 %v2568_v54, %s4297_s19  ;;  %2579 = vrot.lane.b32.xlu0 %v2571_v19, %s4295_s30  ;;  %v4978_v46 = vpack.c.bf16 %v2571_v19, %v2568_v54 }
0x1fc5   :  { %2737 = vrot.lane.b32.xlu1 %v2571_v19, %s4297_s19  ;;  %2774 = vrot.lane.b32.xlu0 %v4978_v46, %s4296_s0 }
0x202f   :  { %v2578_v5 = vpop.permute.xlu1 %2577 }
0x2030   :  { %2583 = vxpose.xlu1.b32.start [1/2] (short) (narrow) %v2578_v5, 16 }
0x2033   :  { %v2736_v6 = vpop.permute.xlu1 %2735  ;;  %v2580_v52 = vpop.permute.xlu0 %2579 }
0x2034   :  { %2584 = vxpose.xlu1.b32.end [2/2] (short) (narrow) %v2580_v52, 16  ;;  %2741 = vxpose.xlu0.b32.start [1/2] (short) (narrow) %v2736_v6, 16 }
0x2037   :  { %v2738_v11 = vpop.permute.xlu1 %2737  ;;  %v2775_v13 = vpop.permute.xlu0 %2774 }
0x2038   :  { %2742 = vxpose.xlu0.b32.end [2/2] (short) (narrow) %v2738_v11, 16 }
0x20ac   :  { %v2599_v15 = vpop.trf.xlu1 }
0x20b0   :  { %v2600_v17 = vpop.trf.xlu1  ;;  %v2757_v20 = vpop.trf.xlu0 }
0x20b1   :  { %v2615_v63 = vpack.c.bf16 %v2600_v17, %v2599_v15 }
0x20b3   :  { %3979 = vmatpush3.bf16.msra.mxu0 %v2615_v63 }
0x20b4   :  { %v2758_v21 = vpop.trf.xlu0  ;;  %3990 = vmatprep.subr.bf16.mxu0 %v4292_v1 }
0x20b5   :  { %v2773_v22 = vpack.c.bf16 %v2758_v21, %v2757_v20 }
0x20b6   :  { %3981 = vmatmul.mubr.msk.bf16.vlgmr.msra.gmra.mxu0 %vm330_vm3, %v4978_v46 }
0x20b7   :  { %3991 = vmatpush3.bf16.msra.mxu0 %v2773_v22  ;;  %3992 = vmatprep.mubr.msk.bf16.mxu0 %vm4293_vm0, %v4292_v1 }
0x20b8   :  { %4002 = vmatprep.subr.bf16.mxu0 %v4292_v1 }
0x20be   :  { %3993 = vmatmul.mubr.msk.bf16.vlgmr.msra.gmra.mxu0 %vm330_vm3, %v2775_v13 }
0x20bf   :  { %4006 = vmatprep.mubr.msk.bf16.mxu0 %vm4293_vm0, %v4292_v1 }
0x2176   :  { %v2653_v23 = vpop.f32.mrf.mxu0 }
0x2177   :  { %v2660_v25 = vmul.f32 0.25, %v2653_v23 }
0x2178   :  { %v3982_v27 = vpop.f32.mrf.mxu0 }
0x2179   :  { %v2662_v28 = vadd.f32 %v4850_v7, %v2660_v25 }
0x217a   :  { %v2656_v30 = vpop.f32.mrf.mxu0 }
0x217b   :  { %v2661_v33 = vmul.f32 0.25, %v2656_v30  ;;  %v2664_v36 = vsel %vm330_vm3, %v2662_v28, -inf }
0x217c   :  { %2665 = vmax.xlane.f32.xlu0 %v2664_v36  ;;  %v3983_v24 = vpop.f32.mrf.mxu0  ;;  %v4128_v36 = vld [vmem:[%s5157_s9 + $0x38] sm:$0xff]  }
0x217d   :  { %v2663_v41 = vadd.f32 %v4857_v26, %v2661_v33  ;;  %4003 = vmatpush3.bf16.msra.mxu0 %v4128_v36 }
0x217e   :  { %v2813_v42 = vpop.f32.mrf.mxu0  ;;  %4004 = vmatprep.subr.bf16.mxu0 %v4292_v1 }
0x217f   :  { %v2820_v38 = vmul.f32 0.25, %v2813_v42  ;;  %v2667_v44 = vsel %vm330_vm3, %v2663_v41, -inf  ;;  %v4129_v42 = vld [vmem:[%s5157_s9 + $0x30] sm:$0xff]  }
0x2180   :  { %2668 = vmax.xlane.f32.xlu1 %v2667_v44  ;;  %v3994_v40 = vpop.f32.mrf.mxu0 }
0x2181   :  { %v2822_v45 = vadd.f32 %v4850_v7, %v2820_v38  ;;  %4005 = vmatpush3.bf16.msra.mxu0 %v4129_v42 }
0x2182   :  { %v2816_v29 = vpop.f32.mrf.mxu0  ;;  %4018 = vmatprep.subr.bf16.mxu0 %v4292_v1 }
0x2183   :  { %v2821_v48 = vmul.f32 0.25, %v2816_v29  ;;  %v2824_v32 = vsel %vm330_vm3, %v2822_v45, -inf }
0x2184   :  { %2825 = vmax.xlane.f32.xlu0 %v2824_v32  ;;  %v3995_v10 = vpop.f32.mrf.mxu0 }
0x2185   :  { %v2823_v49 = vadd.f32 %v4857_v26, %v2821_v48 }
0x2187   :  { %v2827_v43 = vsel %vm330_vm3, %v2823_v49, -inf }
0x2188   :  { %2828 = vmax.xlane.f32.xlu1 %v2827_v43 }
0x2205   :  { %v2666_v51 = vpop.xlane.xlu0 %2665 }
0x2206   :  { %v2670_v53 = vsub.f32 %v2662_v28, %v2666_v51 }
0x2208   :  { %v2672_v47 = vmul.f32 1.442695, %v2670_v53 }
0x2209   :  { %v2669_v55 = vpop.xlane.xlu1 %2668 }
0x220a   :  { %4224 = vpow2.f32 %v2672_v47  ;;  %v2671_v56 = vsub.f32 %v2663_v41, %v2669_v55  ;;  %v5033_v55 = vld [vmem:[%s5161_s13 + $0x18] sm:$0x3f] }
0x220c   :  { %v2674_v57 = vmul.f32 1.442695, %v2671_v56  ;;  %v2913_v56 = vrot.slane %v5033_v55, %v4442_v14 }
0x220d   :  { %v2826_v58 = vpop.xlane.xlu0 %2825 }
0x220e   :  { %4226 = vpow2.f32 %v2674_v57  ;;  %v2830_v7 = vsub.f32 %v2822_v45, %v2826_v58 }
0x2210   :  { %v2832_v59 = vmul.f32 1.442695, %v2830_v7 }
0x2211   :  { %v2829_v0 = vpop.xlane.xlu1 %2828 }
0x2212   :  { %4228 = vpow2.f32 %v2832_v59  ;;  %v2831_v2 = vsub.f32 %v2823_v49, %v2829_v0 }
0x2214   :  { %v2834_v61 = vmul.f32 1.442695, %v2831_v2  ;;  %v1603_v2 = vadd.f32 %v4803_v31, %v4807_v34 }
0x2216   :  { %4230 = vpow2.f32 %v2834_v61 }
0x2217   :  { %v4225_v26 = vpop.eup %4224 }
0x2218   :  { %v2676_v54 = vsel %vm330_vm3, %v4225_v26, 0.0 }
0x2219   :  { %2677 = vadd.xlane.f32.xlu0 %v2676_v54 }
0x221b   :  { %v4227_v50 = vpop.eup %4226 }
0x221c   :  { %v2679_v3 = vsel %vm330_vm3, %v4227_v50, 0.0 }
0x221d   :  { %2680 = vadd.xlane.f32.xlu1 %v2679_v3  ;;  %v1609_v3 = vadd.f32 %v1603_v2, %v4725_v8  ;;  %v1610_v8 = vadd.f32 %v4810_v37, %v4727_v9  ;;  %v4131_v9 = vld [vmem:[%s5158_s10 + $0x30] sm:$0xff]   ;;  %v3223_v2 = vld [vmem:[%s5162_s14 + $0x18] sm:$0xff] }
0x221f   :  { %v4229_v19 = vpop.eup %4228 }
0x2220   :  { %v2836_v4 = vsel %vm330_vm3, %v4229_v19, 0.0 }
0x2221   :  { %2837 = vadd.xlane.f32.xlu0 %v2836_v4 }
0x2223   :  { %v4231_v5 = vpop.eup %4230 }
0x2224   :  { %v2839_v6 = vsel %vm330_vm3, %v4231_v5, 0.0 }
0x2225   :  { %2840 = vadd.xlane.f32.xlu1 %v2839_v6 }
0x2236   :  { %2847 = vrot.lane.b32.xlu1 %v4978_v46, %s4298_s23  ;;  %s4301_s23 = smov 1  }
0x2237   :  { %2688 = vrot.lane.b32.xlu0 %v4978_v46, %s4299_s24 }
0x22a2   :  { %v2678_v52 = vpop.xlane.xlu0 %2677 }
0x22a3   :  { %4232 = vrcp.f32 %v2678_v52 }
0x22a6   :  { %v2681_v11 = vpop.xlane.xlu1 %2680 }
0x22a7   :  { %4234 = vrcp.f32 %v2681_v11 }
0x22aa   :  { %v2838_v13 = vpop.xlane.xlu0 %2837 }
0x22ab   :  { %4236 = vrcp.f32 %v2838_v13 }
0x22ae   :  { %v2689_v15 = vpop.permute.xlu0 %2688  ;;  %v2841_v17 = vpop.xlane.xlu1 %2840 }
0x22af   :  { %4238 = vrcp.f32 %v2841_v17  ;;  %3985 = vmatpush3.bf16.msra.mxu1 %v2689_v15 }
0x22b0   :  { %3996 = vmatprep.subr.bf16.mxu1 %v4292_v1  ;;  %v4233_v20 = vpop.eup %4232 }
0x22b1   :  { %v2683_v21 = vmul.f32 %v4233_v20, %v4225_v26 }
0x22b2   :  { %v2848_v25 = vpop.permute.xlu1 %2847 }
0x22b4   :  { %v4235_v63 = vpop.eup %4234 }
0x22b5   :  { %v2685_v22 = vmul.f32 %v4235_v63, %v4227_v50 }
0x22b7   :  { %v2686_v23 = vpack.c.bf16 %v2685_v22, %v2683_v21  ;;  %v1614_v21 = vsel %vm179_vm2, %v1610_v8, 0.0 }
0x22b8   :  { %v4237_v46 = vpop.eup %4236 }
0x22b9   :  { %3987 = vmatmul.mubr.msk.bf16.vlgmr.msra.gmra.mxu1 %vm330_vm3, %v2686_v23  ;;  %v2843_v28 = vmul.f32 %v4237_v46, %v4229_v19  ;;  %v1611_v19 = vsel %vm179_vm2, %v1609_v3, 0.0  ;;  %v4130_v23 = vld [vmem:[%s5158_s10 + $0x38] sm:$0xff]  }
0x22ba   :  { %3997 = vmatpush3.bf16.msra.mxu1 %v2848_v25  ;;  %3998 = vmatprep.mubr.msk.bf16.mxu1 %vm4293_vm0, %v4292_v1 }
0x22bb   :  { %4010 = vmatprep.subr.bf16.mxu1 %v4292_v1 }
0x22bc   :  { %v4239_v27 = vpop.eup %4238 }
0x22bd   :  { %v2845_v30 = vmul.f32 %v4239_v27, %v4231_v5 }
0x22bf   :  { %v2846_v33 = vpack.c.bf16 %v2845_v30, %v2843_v28 }
0x22c1   :  { %3999 = vmatmul.mubr.msk.bf16.vlgmr.msra.gmra.mxu1 %vm330_vm3, %v2846_v33 }
0x22c2   :  { %4014 = vmatprep.mubr.msk.bf16.mxu1 %vm4293_vm0, %v4292_v1  ;;  %4011 = vmatpush3.bf16.msra.mxu1 %v4130_v23 }
0x22c3   :  { %4012 = vmatprep.subr.bf16.mxu1 %v4292_v1 }
0x22c6   :  { %4013 = vmatpush3.bf16.msra.mxu1 %v4131_v9 }
0x22c7   :  { %4030 = vmatprep.subr.mxu1 %v3223_v2 }
0x2379   :  { %v2728_v24 = vpop.f32.mrf.mxu1 }
0x237b   :  { %v3988_v41 = vpop.f32.mrf.mxu1 }
0x237d   :  { %v2731_v38 = vpop.f32.mrf.mxu1 }
0x237f   :  { %v3989_v44 = vpop.f32.mrf.mxu1 }
0x2381   :  { %v2887_v40 = vpop.f32.mrf.mxu1 }
0x2383   :  { %v4000_v45 = vpop.f32.mrf.mxu1 }
0x2385   :  { %v2890_v29 = vpop.f32.mrf.mxu1 }
0x2386   :  { %v4080_v48 = vpack.i.bf16 %v2890_v29, %v2887_v40 }
0x2387   :  { %v4001_v32 = vpop.f32.mrf.mxu1 }
0x2388   :  { %4081 = vrot.lane.b32.xlu1 %v4080_v48, %s5178_s2  ;;  %v3001_v48 = vrot.slane %v5033_v55, %v4572_v12 }
0x23fa   :  { %v4082_v10 = vpop.permute.xlu1 %4081 }
0x23fb   :  { %v4084_v49 = vunpack.i.h.bf16 %v4082_v10  ;;  %v4083_v43 = vunpack.i.l.bf16 %v4082_v10 }
0x23fd   :  { %v2903_v51 = vsel %vm330_vm3, %v2731_v38, %v4084_v49  ;;  %v2902_v53 = vsel %vm330_vm3, %v2728_v24, %v4083_v43  ;;  %v3007_v43 = vrot.slane %v5033_v55, %v4577_v18 }
0x23fe   :  { %v2904_v47 = vpack.c.bf16 %v2903_v51, %v2902_v53  ;;  %v4269_v53 = vld [vmem:[%s5161_s13 + $0x8] sm:$0x3f] }
0x23ff   :  { %v1646_v12 = vrot.slane %v4269_v53, %v4629_v39 }
0x2400   :  { %4007 = vmatmul.mubr.msk.bf16.vlgmr.msra.gmra.mxu0 %vm179_vm2, %v2904_v47  ;;  %v1640_v47 = vrot.slane %v4269_v53, %v4624_v35 }
0x2401   :  { %4026 = vmatprep.mubr.msk.bf16.mxu0 %vm4293_vm0, %v4292_v1 }
0x24c0   :  { %v2963_v57 = vpop.f32.mrf.mxu0 }
0x24c1   :  { %v2964_v58 = vadd.f32 %v2963_v57, %v2913_v56 }
0x24c2   :  { %v4008_v7 = vpop.f32.mrf.mxu0 }
0x24c3   :  { %v2970_v59 = vadd.f32 %v2964_v58, %v4963_v16 }
0x24c4   :  { %v2966_v0 = vpop.f32.mrf.mxu0 }
0x24c5   :  { %v2967_v61 = vadd.f32 %v2966_v0, %v2913_v56  ;;  %v2972_v26 = vsel %vm179_vm2, %v2970_v59, 0.0 }
0x24c6   :  { %2973 = vadd.xlane.f32.xlu0 %v2972_v26  ;;  %v4009_v54 = vpop.f32.mrf.mxu0  ;;  %v3221_v26 = vld [vmem:[%s5162_s14 + $0x8] sm:$0xff] }
0x24c7   :  { %v2971_v50 = vadd.f32 %v2967_v61, %v4965_v60  ;;  %v3222_v61 = vld [vmem:[%s5162_s14 + $0x10] sm:$0xff]  ;;  %v3220_v54 = vld [vmem:[%s5162_s14] sm:$0xff] }
0x24c9   :  { %v2975_v14 = vsel %vm179_vm2, %v2971_v50, 0.0 }
0x24ca   :  { %2976 = vadd.xlane.f32.xlu1 %v2975_v14  ;;  %v4134_v14 = vld [vmem:[%s5160_s12 + $0x68] sm:$0xff]  }
0x24ce   :  { %1612 = vadd.xlane.f32.xlu1 %v1611_v19  ;;  %v4135_v19 = vld [vmem:[%s5160_s12 + $0x60] sm:$0xff]  }
0x254f   :  { %v2974_v16 = vpop.xlane.xlu0 %2973 }
0x2550   :  { %v2978_v4 = vmul.f32 0.03125, %v2974_v16 }
0x2552   :  { %v2980_v5 = vsub.f32 %v2970_v59, %v2978_v4 }
0x2553   :  { %v2977_v6 = vpop.xlane.xlu1 %2976 }
0x2554   :  { %v2979_v31 = vmul.f32 0.03125, %v2977_v6  ;;  %v2982_v34 = vmul.f32 %v2980_v5, %v2980_v5 }
0x2556   :  { %v2981_v52 = vsub.f32 %v2971_v50, %v2979_v31  ;;  %v2984_v11 = vsel %vm179_vm2, %v2982_v34, 0.0  ;;  %v4132_v50 = vld [vmem:[%s5160_s12 + $0x78] sm:$0xff]  }
0x2557   :  { %2985 = vadd.xlane.f32.xlu0 %v2984_v11  ;;  %v1613_v13 = vpop.xlane.xlu1 %1612  ;;  %4019 = vmatpush3.bf16.msra.mxu0 %v4132_v50  ;;  %v3634_v11 = vld [vmem:[%s5159_s11 + $0x3] ss:$0 sm:$0xff] }
0x2558   :  { %v1617_v60 = vmul.f32 0.03125, %v1613_v13  ;;  %v2983_v15 = vmul.f32 %v2981_v52, %v2981_v52  ;;  %4020 = vmatprep.subr.bf16.mxu0 %v4292_v1 }
0x255a   :  { %v1619_v17 = vsub.f32 %v1609_v3, %v1617_v60  ;;  %v2987_v20 = vsel %vm179_vm2, %v2983_v15, 0.0  ;;  %v4133_v3 = vld [vmem:[%s5160_s12 + $0x70] sm:$0xff]  }
0x255b   :  { %2988 = vadd.xlane.f32.xlu0 %v2987_v20  ;;  %4021 = vmatpush3.bf16.msra.mxu0 %v4133_v3 }
0x255c   :  { %v1621_v63 = vmul.f32 %v1619_v17, %v1619_v17  ;;  %4022 = vmatprep.subr.bf16.mxu0 %v4292_v1 }
0x255e   :  { %v1623_v22 = vsel %vm179_vm2, %v1621_v63, 0.0 }
0x255f   :  { %1615 = vadd.xlane.f32.xlu0 %v1614_v21  ;;  %1624 = vadd.xlane.f32.xlu1 %v1623_v22 }
0x2560   :  { %4023 = vmatpush3.bf16.msra.mxu0 %v4134_v14 }
0x2561   :  { %4024 = vmatprep.subr.bf16.mxu0 %v4292_v1 }
0x2564   :  { %4025 = vmatpush3.bf16.msra.mxu0 %v4135_v19 }
0x25e0   :  { %v2986_v37 = vpop.xlane.xlu0 %2985 }
0x25e1   :  { %v2990_v25 = vmul.f32 0.03125, %v2986_v37 }
0x25e3   :  { %v2992_v46 = vadd.f32 1e-12, %v2990_v25 }
0x25e4   :  { %v2989_v27 = vpop.xlane.xlu0 %2988 }
0x25e5   :  { %4240 = vrsqrt.f32 %v2992_v46  ;;  %v2991_v28 = vmul.f32 0.03125, %v2989_v27 }
0x25e7   :  { %v2993_v30 = vadd.f32 1e-12, %v2991_v28 }
0x25e8   :  { %v1616_v33 = vpop.xlane.xlu0 %1615  ;;  %v1625_v36 = vpop.xlane.xlu1 %1624 }
0x25e9   :  { %4242 = vrsqrt.f32 %v2993_v30  ;;  %v1618_v24 = vmul.f32 0.03125, %v1616_v33  ;;  %v1629_v41 = vmul.f32 0.03125, %v1625_v36 }
0x25eb   :  { %v1620_v42 = vsub.f32 %v1610_v8, %v1618_v24  ;;  %v1631_v38 = vadd.f32 1e-12, %v1629_v41 }
0x25ed   :  { %4244 = vrsqrt.f32 %v1631_v38  ;;  %v1622_v44 = vmul.f32 %v1620_v42, %v1620_v42 }
0x25ef   :  { %v1626_v40 = vsel %vm179_vm2, %v1622_v44, 0.0 }
0x25f0   :  { %1627 = vadd.xlane.f32.xlu0 %v1626_v40 }
0x25f2   :  { %v4241_v45 = vpop.eup %4240 }
0x25f3   :  { %v2996_v29 = vmul.f32 %v4241_v45, %v2980_v5  ;;  %v3651_v45 = vld [vmem:[%s5163_s15] ss:$0 sm:$0xff] }
0x25f5   :  { %v3002_v49 = vmul.f32 %v3001_v48, %v2996_v29 }
0x25f6   :  { %v4243_v32 = vpop.eup %4242 }
0x25f7   :  { %v2997_v10 = vmul.f32 %v4243_v32, %v2981_v52  ;;  %v5067_v57 = vadd.f32 %v3007_v43, %v3002_v49  ;;  %v4302_v49 = vmov 1  }
0x25f8   :  { %4085 = vset.pattern.permute.xlu1 %v4302_v49  ;;  %4086 = vset.pattern.permute.xlu0 %v4302_v49  ;;  %v3382_v49 = vld [vmem:[%s5164_s16 + $0x10] sm:$0xff] }
0x25f9   :  { %v3003_v51 = vmul.f32 %v3001_v48, %v2997_v10 }
0x25fa   :  { %v4245_v56 = vpop.eup %4244 }
0x25fb   :  { %v5069_v58 = vadd.f32 %v3007_v43, %v3003_v51  ;;  %v1635_v7 = vmul.f32 %v4245_v56, %v1619_v17  ;;  %v3111_v43 = vrot.slane %v5033_v55, %v4607_v62 }
0x25fd   :  { %v3010_v59 = vpack.c.bf16 %v5069_v58, %v5067_v57  ;;  %v1641_v0 = vmul.f32 %v1640_v47, %v1635_v7 }
0x25ff   :  { %4015 = vmatmul.mubr.msk.bf16.vlgmr.msra.gmra.mxu1 %vm179_vm2, %v3010_v59  ;;  %v1647_v18 = vadd.f32 %v1646_v12, %v1641_v0 }
0x2600   :  { %4031 = vmatpush3.msra.mxu1 %v3223_v2 }
0x2601   :  { %4038 = vmatprep.mubr.msk.f32.mxu1 %vm179_vm2, %v1647_v18  ;;  %4032 = vmatprep.subr.mxu1 %v3222_v61 }
0x2602   :  { %4033 = vmatpush3.msra.mxu1 %v3222_v61 }
0x2603   :  { %4034 = vmatprep.subr.mxu1 %v3221_v26 }
0x2604   :  { %4035 = vmatpush3.msra.mxu1 %v3221_v26 }
0x2605   :  { %4036 = vmatprep.subr.mxu1 %v3220_v54 }
0x2606   :  { %4037 = vmatpush3.msra.mxu1 %v3220_v54 }
0x2607   :  { %4041 = vmatprep.subr.mxu1 %v4292_v1 }
0x2679   :  { %v1628_v16 = vpop.xlane.xlu0 %1627 }
0x267a   :  { %v1630_v4 = vmul.f32 0.03125, %v1628_v16 }
0x267c   :  { %v1632_v5 = vadd.f32 1e-12, %v1630_v4 }
0x267e   :  { %4246 = vrsqrt.f32 %v1632_v5 }
0x268b   :  { %v4247_v6 = vpop.eup %4246 }
0x268c   :  { %v1636_v31 = vmul.f32 %v4247_v6, %v1620_v42 }
0x268e   :  { %v1642_v34 = vmul.f32 %v1640_v47, %v1636_v31 }
0x2690   :  { %v1648_v52 = vadd.f32 %v1646_v12, %v1642_v34 }
0x2692   :  { %4039 = vmatmul.mubr.msk.f32.vlgmr.msra.gmra.mxu1 %vm179_vm2, %v1648_v52 }
0x2693   :  { %4049 = vmatprep.mubr.msk.f32.mxu1 %vm4293_vm0, %v4292_v1 }
0x26bf   :  { %v3073_v13 = vpop.f32.mrf.mxu1 }
0x26c0   :  { %v3074_v60 = vadd.f32 %v3634_v11, %v3073_v13 }
0x26c1   :  { %v4016_v15 = vpop.f32.mrf.mxu1 }
0x26c2   :  { %v3082_v8 = vmul.f32 0.044715, %v3074_v60  ;;  %v3080_v24 = vmul.f32 0.5, %v3074_v60 }
0x26c3   :  { %v3076_v17 = vpop.f32.mrf.mxu1 }
0x26c4   :  { %v3084_v20 = vmul.f32 %v3082_v8, %v3074_v60  ;;  %v3077_v63 = vadd.f32 %v3634_v11, %v3076_v17 }
0x26c5   :  { %v4017_v21 = vpop.f32.mrf.mxu1 }
0x26c6   :  { %v3086_v22 = vmul.f32 %v3084_v20, %v3074_v60  ;;  %v3083_v23 = vmul.f32 0.044715, %v3077_v63  ;;  %v3081_v41 = vmul.f32 0.5, %v3077_v63 }
0x26c8   :  { %v3088_v9 = vadd.f32 %v3086_v22, %v3074_v60  ;;  %v3085_v37 = vmul.f32 %v3083_v23, %v3077_v63 }
0x26ca   :  { %v3090_v25 = vmul.f32 0.7978846, %v3088_v9  ;;  %v3087_v46 = vmul.f32 %v3085_v37, %v3077_v63 }
0x26cc   :  { %4248 = vtanh.f32 %v3090_v25  ;;  %v3089_v27 = vadd.f32 %v3087_v46, %v3077_v63 }
0x26ce   :  { %v3091_v28 = vmul.f32 0.7978846, %v3089_v27 }
0x26d0   :  { %4250 = vtanh.f32 %v3091_v28 }
0x26d9   :  { %v4249_v30 = vpop.eup %4248 }
0x26da   :  { %v3094_v33 = vadd.f32 1.0, %v4249_v30 }
0x26dc   :  { %v3096_v38 = vmul.f32 %v3094_v33, %v3080_v24 }
0x26dd   :  { %v4251_v36 = vpop.eup %4250 }
0x26de   :  { %v3095_v42 = vadd.f32 1.0, %v4251_v36 }
0x26e0   :  { %v3097_v44 = vmul.f32 %v3095_v42, %v3081_v41 }
0x26e2   :  { %v3098_v40 = vpack.c.bf16 %v3097_v44, %v3096_v38 }
0x26e4   :  { %4027 = vmatmul.mubr.msk.bf16.vlgmr.msra.gmra.mxu0 %vm130_vm1, %v3098_v40 }
0x2752   :  { %v4040_v29 = vpop.f32.mrf.mxu1 }
0x2753   :  { %v3309_v48 = vadd.f32 %v4040_v29, %v3651_v45 }
0x2754   :  { %v3303_v32 = vpop.f32.mrf.mxu1 }
0x2755   :  { %v3304_v10 = vadd.f32 %v3651_v45, %v3303_v32  ;;  %3316 = vrot.lane.b32.xlu0 %v3309_v48, %s4301_s23 }
0x2757   :  { %3314 = vrot.lane.b32.xlu1 %v3304_v10, %s4301_s23 }
0x27a4   :  { %v3173_v51 = vpop.f32.mrf.mxu0 }
0x27a5   :  { %v3174_v53 = vadd.f32 %v3173_v51, %v3111_v43  ;;  %v3380_v51 = vld [vmem:[%s5164_s16] sm:$0xff] }
0x27a6   :  { %v4028_v47 = vpop.f32.mrf.mxu0 }
0x27a7   :  { %v3180_v56 = vadd.f32 %v3174_v53, %v5067_v57 }
0x27a8   :  { %v3176_v7 = vpop.f32.mrf.mxu0 }
0x27a9   :  { %v3177_v12 = vadd.f32 %v3176_v7, %v3111_v43  ;;  %v3182_v59 = vsel %vm179_vm2, %v3180_v56, 0.0  ;;  %v3381_v43 = vld [vmem:[%s5164_s16 + $0x8] sm:$0xff] }
0x27aa   :  { %3183 = vadd.xlane.f32.xlu1 %v3182_v59  ;;  %v4029_v0 = vpop.f32.mrf.mxu0 }
0x27ab   :  { %v3181_v18 = vadd.f32 %v3177_v12, %v5069_v58 }
0x27ad   :  { %v3185_v2 = vsel %vm179_vm2, %v3181_v18, 0.0 }
0x27ae   :  { %3186 = vadd.xlane.f32.xlu0 %v3185_v2 }
0x27c7   :  { %v3317_v61 = vpop.permute.xlu0 %3316 }
0x27c8   :  { %v3321_v26 = vsub.f32 %v3309_v48, %v3317_v61 }
0x27c9   :  { %v3315_v54 = vpop.permute.xlu1 %3314 }
0x27ca   :  { %v3655_v62 = vclamps-f32 %v3321_v26, 30.0  ;;  %v3320_v50 = vsub.f32 %v3304_v10, %v3315_v54  ;;  %v3383_v10 = vld [vmem:[%s5164_s16 + $0x18] sm:$0xff] }
0x27cb   :  { %4042 = vmatpush3.msra.mxu1 %v3383_v10 }
0x27cc   :  { %v3327_v3 = vsub.f32 0.0, %v3655_v62  ;;  %v3654_v14 = vclamps-f32 %v3320_v50, 30.0  ;;  %4043 = vmatprep.subr.mxu1 %v4292_v1 }
0x27cd   :  { %4044 = vmatpush3.msra.mxu1 %v3382_v49 }
0x27ce   :  { %v3330_v19 = vmul.f32 1.442695, %v3327_v3  ;;  %v3326_v57 = vsub.f32 0.0, %v3654_v14  ;;  %4045 = vmatprep.subr.mxu1 %v4292_v1 }
0x27cf   :  { %4046 = vmatpush3.msra.mxu1 %v3381_v43 }
0x27d0   :  { %4252 = vpow2.f32 %v3330_v19  ;;  %v3328_v16 = vmul.f32 1.442695, %v3326_v57  ;;  %4047 = vmatprep.subr.mxu1 %v4292_v1  ;;  %v3217_v1 = vrot.slane %v5033_v55, %v4629_v39 }
0x27d1   :  { %4048 = vmatpush3.msra.mxu1 %v3380_v51 }
0x27d2   :  { %4254 = vpow2.f32 %v3328_v16 }
0x27dd   :  { %v4253_v4 = vpop.eup %4252 }
0x27de   :  { %v3333_v5 = vadd.f32 1.0, %v4253_v4 }
0x27df   :  { %v4255_v6 = vpop.eup %4254 }
0x27e0   :  { %4256 = vrcp.f32 %v3333_v5  ;;  %v3332_v58 = vadd.f32 1.0, %v4255_v6 }
0x27e2   :  { %4258 = vrcp.f32 %v3332_v58 }
0x27ed   :  { %v4257_v31 = vpop.eup %4256 }
0x27ee   :  { %v3352_v11 = vsel %vm3338_vm4, %v4257_v31, 0.0 }
0x27ef   :  { %v4259_v34 = vpop.eup %4258  ;;  %v3353_v9 = vrot.slane %v3352_v11, 4 }
0x27f0   :  { %v3339_v52 = vsel %vm3338_vm4, %v4259_v34, 0.0 }
0x27f1   :  { %v3366_v13 = vadd.f32 %v3352_v11, %v3339_v52  ;;  %v3354_v30 = vadd.f32 %v3353_v9, %v3352_v11  ;;  %v3340_v41 = vrot.slane %v3339_v52, 4 }
0x27f3   :  { %v3367_v60 = vrot.slane %v3366_v13, 4  ;;  %v3355_v24 = vrot.slane %v3354_v30, 2  ;;  %v3341_v38 = vadd.f32 %v3340_v41, %v3339_v52 }
0x27f5   :  { %v3368_v15 = vadd.f32 %v3367_v60, %v3366_v13  ;;  %v3356_v42 = vadd.f32 %v3355_v24, %v3354_v30  ;;  %v3342_v40 = vrot.slane %v3341_v38, 2 }
0x27f7   :  { %v3369_v8 = vrot.slane %v3368_v15, 2  ;;  %v3357_v44 = vrot.slane %v3356_v42, 1  ;;  %v3343_v29 = vadd.f32 %v3342_v40, %v3341_v38 }
0x27f9   :  { %v3370_v17 = vadd.f32 %v3369_v8, %v3368_v15  ;;  %v3358_v45 = vadd.f32 %v3357_v44, %v3356_v42  ;;  %v3344_v48 = vrot.slane %v3343_v29, 1 }
0x27fb   :  { %v3371_v20 = vrot.slane %v3370_v17, 1  ;;  %v3345_v32 = vadd.f32 %v3344_v48, %v3343_v29 }
0x27fd   :  { %v3372_v63 = vadd.f32 %v3371_v20, %v3370_v17 }
0x27ff   :  { %3375 = vperm.xlu1 %4085, %v3372_v63  }
0x2833   :  { %v3184_v21 = vpop.xlane.xlu1 %3183 }
0x2834   :  { %v3188_v22 = vmul.f32 0.03125, %v3184_v21 }
0x2836   :  { %v3190_v23 = vsub.f32 %v3180_v56, %v3188_v22 }
0x2837   :  { %v3187_v37 = vpop.xlane.xlu0 %3186 }
0x2838   :  { %v3189_v25 = vmul.f32 0.03125, %v3187_v37  ;;  %v3192_v46 = vmul.f32 %v3190_v23, %v3190_v23 }
0x283a   :  { %v3191_v27 = vsub.f32 %v3181_v18, %v3189_v25  ;;  %v3194_v28 = vsel %vm179_vm2, %v3192_v46, 0.0  ;;  %v3211_v18 = vrot.slane %v5033_v55, %v4624_v35  ;;  %v3384_v35 = vld [vmem:[%s5165_s17] sm:$0x1] }
0x283b   :  { %3195 = vadd.xlane.f32.xlu1 %v3194_v28 }
0x283c   :  { %v3193_v33 = vmul.f32 %v3191_v27, %v3191_v27 }
0x283e   :  { %v3197_v36 = vsel %vm179_vm2, %v3193_v33, 0.0 }
0x283f   :  { %3198 = vadd.xlane.f32.xlu0 %v3197_v36 }
0x284c   :  { %3361 = vperm.xlu1 %4085, %v3358_v45  }
0x2855   :  { %3348 = vperm.xlu0 %4086, %v3345_v32  }
0x287a   :  { %v3376_v53 = vpop.permute.xlu1 %3375 }
0x28c4   :  { %v3196_v47 = vpop.xlane.xlu1 %3195 }
0x28c5   :  { %v3200_v56 = vmul.f32 0.03125, %v3196_v47 }
0x28c7   :  { %v3202_v7 = vadd.f32 1e-12, %v3200_v56 }
0x28c8   :  { %v3199_v12 = vpop.xlane.xlu0 %3198  ;;  %v3362_v19 = vpop.permute.xlu1 %3361 }
0x28c9   :  { %4260 = vrsqrt.f32 %v3202_v7  ;;  %v3201_v59 = vmul.f32 0.03125, %v3199_v12 }
0x28cb   :  { %v3203_v0 = vadd.f32 1e-12, %v3201_v59 }
0x28cd   :  { %4262 = vrsqrt.f32 %v3203_v0 }
0x28ce   :  { %4264 = vrcp.f32 %v3376_v53 }
0x28d0   :  { %v3349_v57 = vpop.permute.xlu0 %3348 }
0x28d6   :  { %v4261_v2 = vpop.eup %4260 }
0x28d7   :  { %v3206_v61 = vmul.f32 %v4261_v2, %v3190_v23 }
0x28d9   :  { %v3212_v26 = vmul.f32 %v3211_v18, %v3206_v61 }
0x28da   :  { %v4263_v54 = vpop.eup %4262 }
0x28db   :  { %v3207_v62 = vmul.f32 %v4263_v54, %v3191_v27  ;;  %v3218_v3 = vadd.f32 %v3217_v1, %v3212_v26  ;;  %v4265_v6 = vpop.eup %4264 }
0x28dd   :  { %v3213_v50 = vmul.f32 %v3211_v18, %v3207_v62  ;;  %v3351_v4 = vmul.f32 %v3349_v57, %v3218_v3 }
0x28df   :  { %v3219_v14 = vadd.f32 %v3217_v1, %v3213_v50 }
0x28e1   :  { %v3364_v16 = vmul.f32 %v3362_v19, %v3219_v14 }
0x28e3   :  { %v3365_v5 = vadd.f32 %v3364_v16, %v3351_v4 }
0x28e5   :  { %v3379_v58 = vmul.f32 %v4265_v6, %v3365_v5 }
0x28e7   :  { %4050 = vmatmul.mubr.msk.f32.vlgmr.msra.gmra.mxu1 %vm179_vm2, %v3379_v58 }
0x29a7   :  { %v3454_v39 = vpop.f32.mrf.mxu1 }
0x29a8   :  { %v3455_v55 = vadd.f32 %v3454_v39, %v3384_v35 }
0x29a9   :  { %v4051_v31 = vpop.f32.mrf.mxu1 }
0x29aa   :  { %3459 = vst.msk [vmem:[#allocation2] sm:$0x1] %vm3458_vm5, %v3455_v55 }
0x29ab   :  { %4281 = shalt.err (!%p4278_p4)
}
0x29ac   :  { %3469 = dma.vmem_to_hbm [thread:$0]  %s3467_s29, 16, %s5166_s18, [#allocation3]  }
0x29ad   :  { %4290 = dma.done.wait [#allocation3], 16  }
0x29ae   :  { %4291 = vsyncadd [#allocation3], 4294967280 }
0x29af   :  { %3473 = vsyncpa [#allocation3], 1 }

</bundles_post_ra>
